<compile_context>
chip_gen: v7x
topology: tpu7x:2x2x1
jax: 0.10.0
libtpu: 0.0.40
codegen_flags: <defaults>
</compile_context>

<pallas_src>
import functools

import jax
import jax.numpy as jnp
import numpy as np
from jax import lax
from jax.experimental import pallas as pl
from jax.experimental.pallas import tpu as pltpu


def _window_attention_kernel(
    x_ref,        # (M, C)           input dtype (f32/bf16), M = b_blk * N
    wqkvh_ref,    # (H, C, 3*hd)     bf16, qk scale folded into Q columns
    bqkvh_ref,    # (H, 1, 3*hd)     f32,  scale folded into Q part
    wproj_ref,    # (C, C)           bf16
    bproj_ref,    # (1, C)           f32
    bias_ref,     # (H, nW, N, N)    bf16, rel-pos bias + window mask
    o_ref,        # (M, C)           x.dtype
    ctx_ref,      # (M, C)           bf16 VMEM scratch (per-head contexts)
    *,
    num_heads: int,
    head_dim: int,
    b_blk: int,
    n_tok: int,
    n_win: int,
    unroll_heads: bool,
):
    M = b_blk * n_tok
    reps = b_blk // n_win

    # Cast activations to bf16 in-kernel (input crosses HBM once, in its native dtype).
    x = x_ref[...].astype(jnp.bfloat16)

    def compute_head(h, off):
        # Per-head fused qkv projection: K = C contraction, (M, 3*hd) output.
        qkv = jnp.dot(x, wqkvh_ref[h], preferred_element_type=jnp.float32)
        qkv = qkv + bqkvh_ref[h]                                    # (M, 3*hd) f32
        q = qkv[:, :head_dim].reshape(b_blk, n_tok, head_dim).astype(jnp.bfloat16)
        k = qkv[:, head_dim:2 * head_dim].reshape(b_blk, n_tok, head_dim).astype(jnp.bfloat16)
        v = qkv[:, 2 * head_dim:].reshape(b_blk, n_tok, head_dim).astype(jnp.bfloat16)

        # Attention logits per window; contract last dims (no k transpose).
        s = jnp.einsum("bqd,bkd->bqk", q, k,
                       preferred_element_type=jnp.float32)          # (b_blk, N, N)
        # Rel-pos bias + window mask: one copy per window phase, broadcast over
        # the reps repeats (leading-dim-only reshape, no data movement).
        s = (s.reshape(reps, n_win, n_tok, n_tok)
             + bias_ref[h].astype(jnp.float32)).reshape(b_blk, n_tok, n_tok)

        # Softmax over keys (f32 math, EUP approx reciprocal for the divide).
        s = s - jnp.max(s, axis=-1, keepdims=True)
        p = jnp.exp(s)
        p = p * pl.reciprocal(jnp.sum(p, axis=-1, keepdims=True), approx=True)

        ctx = jnp.einsum("bqk,bkd->bqd", p.astype(jnp.bfloat16), v,
                         preferred_element_type=jnp.float32)        # (b_blk, N, hd)
        ctx_ref[:, pl.ds(off, head_dim)] = ctx.reshape(M, head_dim).astype(jnp.bfloat16)

    if unroll_heads:
        # Small head counts: static unroll (offsets are compile-time constants).
        for h in range(num_heads):
            compute_head(h, h * head_dim)
    else:
        # Large head counts (Swin stages with 12-48 heads): bounded code size.
        def body(h, carry):
            compute_head(h, pl.multiple_of(h * head_dim, head_dim))
            return carry
        lax.fori_loop(0, num_heads, body, 0)

    # Single output projection with K = C contraction (all heads at once).
    out = jnp.dot(ctx_ref[...], wproj_ref[...], preferred_element_type=jnp.float32)
    o_ref[...] = (out + bproj_ref[...]).astype(o_ref.dtype)


def _vmem_capacity_bytes():
    try:
        return int(pltpu.get_tpu_info().vmem_capacity_bytes)
    except Exception:
        return 64 * 1024 * 1024   # conservative default (v7x per-TensorCore size)


def _pad(v, m):
    return ((v + m - 1) // m) * m


def _estimate_vmem_bytes(b_blk, *, n_tok, C, num_heads, head_dim, n_win,
                         in_bytes, out_bytes, const_bufs):
    """Rough per-grid-step VMEM footprint, padded to (sublane, 128) tiles."""
    M = b_blk * n_tok
    Cp = _pad(C, 128)
    Np = _pad(n_tok, 128)
    hd3 = _pad(3 * head_dim, 128)
    # Resident constants.
    const = (num_heads * C * hd3 * 2                          # per-head qkv W (bf16)
             + num_heads * 8 * hd3 * 4                        # per-head qkv b (f32)
             + C * Cp * 2                                     # proj W (bf16)
             + 8 * Cp * 4                                     # proj b (f32)
             + num_heads * n_win * _pad(n_tok, 16) * Np * 2)  # combined bias (bf16)
    const *= const_bufs
    # Pipelined activation blocks (double buffered input / output).
    act = 2 * M * Cp * in_bytes + 2 * M * Cp * out_bytes
    # Live in-kernel values: x bf16, per-head qkv f32, logits/probs f32,
    # ctx scratch bf16, projection result f32.
    live = (M * Cp * 2 + M * hd3 * 4
            + 2 * b_blk * _pad(n_tok, 8) * Np * 4
            + M * Cp * 2 + M * Cp * 4)
    return const + act + live


def _choose_block_windows(B_, n_win, n_tok, est_fn, budget):
    """Largest b_blk = g*nW (g | B) whose estimated footprint fits `budget`,
    preferring an even grid-step count >= 2 (v7x has 2 TensorCores)."""
    B = B_ // n_win
    cands = []
    for g in range(1, B + 1):
        if B % g:
            continue
        b_blk = g * n_win
        # (8, 128) rule: second-minor dim of the (M, C) block must be 8-aligned
        # unless the block spans the whole array.
        if (b_blk * n_tok) % 8 != 0 and b_blk != B_:
            continue
        cands.append(b_blk)
    if not cands:
        cands = [B_]
    fit = [b for b in cands if est_fn(b) <= budget] or [min(cands)]
    steps = lambda b: B_ // b
    even_multi = [b for b in fit if steps(b) >= 2 and steps(b) % 2 == 0]
    multi = [b for b in fit if steps(b) >= 2]
    pool = even_multi or multi or fit
    return max(pool)


def _const_index_map(ndim):
    zeros = (0,) * ndim
    return lambda b: zeros


def window_attention_pallas(x, params, rel_bias, mask, *, num_heads,
                            block_windows=None, unroll_heads_max=8):
    """x: (B_, N, C); rel_bias: (H, N, N); mask: (nW, N, N) additive or None."""
    B_, N, C = x.shape
    head_dim = C // num_heads
    scale = head_dim ** (-0.5)

    if mask is None:
        mask = jnp.zeros((1, N, N), jnp.float32)
    nW = mask.shape[0]
    assert B_ % nW == 0

    w_qkv, b_qkv, w_proj, b_proj = params

    # ---- constant operands (prepared once, outside the kernel) --------------
    # Per-head qkv weight blocks (H, C, 3*hd) with the qk scale folded into Q.
    wq = (w_qkv[:, :C] * scale).reshape(C, num_heads, head_dim)
    wk = w_qkv[:, C:2 * C].reshape(C, num_heads, head_dim)
    wv = w_qkv[:, 2 * C:].reshape(C, num_heads, head_dim)
    wqkvh = jnp.transpose(jnp.concatenate([wq, wk, wv], axis=-1),
                          (1, 0, 2)).astype(jnp.bfloat16)            # (H, C, 3*hd)
    bq = (b_qkv[:C] * scale).reshape(num_heads, head_dim)
    bk = b_qkv[C:2 * C].reshape(num_heads, head_dim)
    bv = b_qkv[2 * C:].reshape(num_heads, head_dim)
    bqkvh = jnp.concatenate([bq, bk, bv], axis=-1).reshape(
        num_heads, 1, 3 * head_dim).astype(jnp.float32)              # (H, 1, 3*hd)

    w_proj_bf = w_proj.astype(jnp.bfloat16)                          # (C, C)
    b_proj2 = b_proj.reshape(1, C).astype(jnp.float32)               # (1, C)

    # Pre-combined rel-pos bias + window mask: ONE copy per window phase (nW),
    # stored bf16; broadcast over block repeats happens inside the kernel.
    comb = (rel_bias.astype(jnp.float32)[:, None, :, :]
            + mask.astype(jnp.float32)[None, :, :, :]).astype(jnp.bfloat16)

    in_dtype = x.dtype
    out_dtype = x.dtype
    in_bytes = np.dtype(in_dtype).itemsize
    out_bytes = np.dtype(out_dtype).itemsize

    vmem_cap = _vmem_capacity_bytes()
    est = functools.partial(
        _estimate_vmem_bytes, n_tok=N, C=C, num_heads=num_heads,
        head_dim=head_dim, n_win=nW, in_bytes=in_bytes, out_bytes=out_bytes,
        const_bufs=1)

    if block_windows is not None:
        b_blk = block_windows
    else:
        b_blk = _choose_block_windows(B_, nW, N, est, int(0.7 * vmem_cap))
    assert b_blk % nW == 0 and B_ % b_blk == 0
    grid = (B_ // b_blk,)
    M = b_blk * N

    vmem_limit = int(min(0.8 * vmem_cap, max(1.5 * est(b_blk), 32 * 2 ** 20)))

    unroll_heads = num_heads <= unroll_heads_max
    kernel = functools.partial(
        _window_attention_kernel,
        num_heads=num_heads, head_dim=head_dim, b_blk=b_blk, n_tok=N,
        n_win=nW, unroll_heads=unroll_heads)

    # x passed in its native dtype; no wrapper-side cast pass.
    x2 = x.reshape(B_ * N, C)

    def build(single_buffer_consts):
        def const_spec(shape):
            idx = _const_index_map(len(shape))
            if single_buffer_consts:
                return pl.BlockSpec(shape, idx, pipeline_mode=pl.Buffered(1))
            return pl.BlockSpec(shape, idx)

        return pl.pallas_call(
            kernel,
            out_shape=jax.ShapeDtypeStruct((B_ * N, C), out_dtype),
            grid_spec=pltpu.PrefetchScalarGridSpec(
                num_scalar_prefetch=0,
                grid=grid,
                in_specs=[
                    pl.BlockSpec((M, C), lambda b: (b, 0)),       # x slab
                    const_spec((num_heads, C, 3 * head_dim)),     # per-head w_qkv
                    const_spec((num_heads, 1, 3 * head_dim)),     # per-head b_qkv
                    const_spec((C, C)),                           # w_proj
                    const_spec((1, C)),                           # b_proj
                    const_spec((num_heads, nW, N, N)),            # bias + mask
                ],
                out_specs=pl.BlockSpec((M, C), lambda b: (b, 0)),
                scratch_shapes=[pltpu.VMEM((M, C), jnp.bfloat16)],
            ),
            compiler_params=pltpu.CompilerParams(
                dimension_semantics=("parallel",),
                vmem_limit_bytes=vmem_limit,
            ),
        )

    args = (x2, wqkvh, bqkvh, w_proj_bf, b_proj2, comb)
    try:
        out2 = jax.block_until_ready(build(True)(*args))
    except Exception:
        # Fallback for JAX builds that reject single-buffered pipeline_mode.
        out2 = jax.block_until_ready(build(False)(*args))

    return out2.reshape(B_, N, C)


def make_relative_position_index(window_size):
    """Identical to the PyTorch buffer computation (done in numpy)."""
    Wh, Ww = window_size
    coords_h = np.arange(Wh)
    coords_w = np.arange(Ww)
    coords = np.stack(np.meshgrid(coords_h, coords_w, indexing="ij"))  # (2, Wh, Ww)
    coords_flatten = coords.reshape(2, -1)                             # (2, N)
    rel = coords_flatten[:, :, None] - coords_flatten[:, None, :]      # (2, N, N)
    rel = rel.transpose(1, 2, 0).copy()                                # (N, N, 2)
    rel[:, :, 0] += Wh - 1
    rel[:, :, 1] += Ww - 1
    rel[:, :, 0] *= 2 * Ww - 1
    return rel.sum(-1)                                                 # (N, N)


def window_attention_reference(x, params, rel_bias, mask, *, num_heads):
    """Pure-JAX f32 reference of the intended forward pass."""
    B_, N, C = x.shape
    hd = C // num_heads
    scale = hd ** (-0.5)
    wqkv, bqkv, wproj, bproj = params
    nW = mask.shape[0]

    qkv = x @ wqkv + bqkv                                  # (B_, N, 3C)
    qkv = qkv.reshape(B_, N, 3, num_heads, hd).transpose(2, 0, 3, 1, 4)
    q, k, v = qkv[0], qkv[1], qkv[2]                       # (B_, H, N, hd)
    q = q * scale
    attn = jnp.einsum("bhid,bhjd->bhij", q, k)             # (B_, H, N, N)
    attn = attn + rel_bias[None]
    attn = attn.reshape(B_ // nW, nW, num_heads, N, N) + mask[None, :, None]
    attn = attn.reshape(B_, num_heads, N, N)
    attn = jax.nn.softmax(attn, axis=-1)
    out = jnp.einsum("bhij,bhjd->bhid", attn, v)           # (B_, H, N, hd)
    out = out.transpose(0, 2, 1, 3).reshape(B_, N, C)
    return out @ wproj + bproj


if __name__ == "__main__":
    # Small Swin-like configuration.
    dim = 32
    num_heads = 4
    window_size = (4, 4)
    Wh, Ww = window_size
    N = Wh * Ww                  # 16 tokens per window
    B = 2
    nW = 4                       # number of distinct window masks
    B_ = B * nW                  # 8 windows total

    key = jax.random.PRNGKey(0)
    k_x, k_tbl, k_wqkv, k_bqkv, k_wproj, k_bproj = jax.random.split(key, 6)

    x = jax.random.normal(k_x, (B_, N, dim), dtype=jnp.float32)

    # Parameters (deterministic, in-script).
    # nn.Linear stores weight as (out, in); here we keep (in, out) and use x @ W.
    w_qkv = jax.random.normal(k_wqkv, (dim, 3 * dim), dtype=jnp.float32) * 0.02
    b_qkv = jax.random.normal(k_bqkv, (3 * dim,), dtype=jnp.float32) * 0.02
    w_proj = jax.random.normal(k_wproj, (dim, dim), dtype=jnp.float32) * 0.02
    b_proj = jax.random.normal(k_bproj, (dim,), dtype=jnp.float32) * 0.02
    params = (w_qkv, b_qkv, w_proj, b_proj)

    # relative_position_bias_table ~ trunc_normal(std=0.02)
    table = 0.02 * jax.random.truncated_normal(
        k_tbl, -2.0, 2.0, ((2 * Wh - 1) * (2 * Ww - 1), num_heads),
        dtype=jnp.float32)
    rel_idx = make_relative_position_index(window_size)          # (N, N)
    rel_bias = table[rel_idx.reshape(-1)].reshape(N, N, num_heads)
    rel_bias = jnp.transpose(rel_bias, (2, 0, 1))                # (H, N, N)

    # Shifted-window style additive mask (0 / -100 blocks), one per window.
    mask_np = np.zeros((nW, N, N), dtype=np.float32)
    half = N // 2
    mask_np[1, :half, half:] = -100.0
    mask_np[1, half:, :half] = -100.0
    mask_np[3, :half, half:] = -100.0
    mask_np[3, half:, :half] = -100.0
    mask = jnp.asarray(mask_np)

    ref = window_attention_reference(x, params, rel_bias, mask,
                                     num_heads=num_heads)

    # Default block choice (multi-step grid, reps == 1).
    out = window_attention_pallas(x, params, rel_bias, mask, num_heads=num_heads)
    out = jax.block_until_ready(out)
    # bf16 MXU inputs / bf16 bias (f32 accumulation) -> relaxed tolerance.
    np.testing.assert_allclose(np.asarray(out), np.asarray(ref),
                               rtol=5e-2, atol=5e-3)

    # Full-batch block (reps > 1) exercises the in-kernel mask broadcast path.
    out_full = window_attention_pallas(x, params, rel_bias, mask,
                                       num_heads=num_heads, block_windows=B_)
    out_full = jax.block_until_ready(out_full)
    np.testing.assert_allclose(np.asarray(out_full), np.asarray(ref),
                               rtol=5e-2, atol=5e-3)

    print("KERNEL_OK")
</pallas_src>

<mosaic_0001>
module attributes {stable_mosaic.version = 11 : i64} {
  func.func @_window_attention_kernel(%arg0: i32, %arg1: memref<64x32xf32, #tpu.memory_space<vmem>>, %arg2: memref<4x32x24xbf16, #tpu.memory_space<vmem>>, %arg3: memref<4x1x24xf32, #tpu.memory_space<vmem>>, %arg4: memref<32x32xbf16, #tpu.memory_space<vmem>>, %arg5: memref<1x32xf32, #tpu.memory_space<vmem>>, %arg6: memref<4x4x16x16xbf16, #tpu.memory_space<vmem>>, %arg7: memref<64x32xf32, #tpu.memory_space<vmem>>, %arg8: memref<64x32xbf16, #tpu.memory_space<vmem>>) attributes {dimension_semantics = [#tpu.dimension_semantics<parallel>], iteration_bounds = array<i64: 2>, scalar_prefetch = 0 : i64, scratch_operands = 1 : i64, tpu.core_type = #tpu.core_type<tc>, window_params = [{transform_indices = @transform_0, window_bounds = array<i64: 64, 32>}, {pipeline_mode = #tpu.pipeline_mode<synchronous>, transform_indices = @transform_1, window_bounds = array<i64: 4, 32, 24>}, {pipeline_mode = #tpu.pipeline_mode<synchronous>, transform_indices = @transform_2, window_bounds = array<i64: 4, 1, 24>}, {pipeline_mode = #tpu.pipeline_mode<synchronous>, transform_indices = @transform_3, window_bounds = array<i64: 32, 32>}, {pipeline_mode = #tpu.pipeline_mode<synchronous>, transform_indices = @transform_4, window_bounds = array<i64: 1, 32>}, {pipeline_mode = #tpu.pipeline_mode<synchronous>, transform_indices = @transform_5, window_bounds = array<i64: 4, 4, 16, 16>}, {transform_indices = @transform_6, window_bounds = array<i64: 64, 32>}]} {
    %c0 = arith.constant 0 : index
    %c0_0 = arith.constant 0 : index
    %0 = vector.load %arg1[%c0, %c0_0] : memref<64x32xf32, #tpu.memory_space<vmem>>, vector<64x32xf32>
    %1 = arith.truncf %0 : vector<64x32xf32> to vector<64x32xbf16>
    %c0_1 = arith.constant 0 : index
    %c0_2 = arith.constant 0 : index
    %c0_3 = arith.constant 0 : index
    %2 = vector.load %arg2[%c0_1, %c0_2, %c0_3] : memref<4x32x24xbf16, #tpu.memory_space<vmem>>, vector<1x32x24xbf16>
    %3 = vector.shape_cast %2 : vector<1x32x24xbf16> to vector<32x24xbf16>
    %cst = arith.constant dense<0.000000e+00> : vector<64x24xf32>
    %4 = tpu.matmul %1, %3, %cst {dimension_numbers = #tpu.dot_dimension_numbers<[1], [0], [0], [1], [0, 0, 1, 1], [], []>} : vector<64x32xbf16>, vector<32x24xbf16>, vector<64x24xf32> -> vector<64x24xf32>
    %c0_4 = arith.constant 0 : index
    %c0_5 = arith.constant 0 : index
    %c0_6 = arith.constant 0 : index
    %5 = vector.load %arg3[%c0_4, %c0_5, %c0_6] : memref<4x1x24xf32, #tpu.memory_space<vmem>>, vector<1x1x24xf32>
    %6 = vector.shape_cast %5 : vector<1x1x24xf32> to vector<1x24xf32>
    %7 = vector.broadcast %6 : vector<1x24xf32> to vector<64x24xf32>
    %8 = arith.addf %4, %7 : vector<64x24xf32>
    %9 = vector.extract_strided_slice %8 {offsets = [0, 0], sizes = [64, 8], strides = [1, 1]} : vector<64x24xf32> to vector<64x8xf32>
    %10 = vector.shape_cast %9 : vector<64x8xf32> to vector<4x16x8xf32>
    %11 = arith.truncf %10 : vector<4x16x8xf32> to vector<4x16x8xbf16>
    %12 = vector.extract_strided_slice %8 {offsets = [0, 8], sizes = [64, 8], strides = [1, 1]} : vector<64x24xf32> to vector<64x8xf32>
    %13 = vector.shape_cast %12 : vector<64x8xf32> to vector<4x16x8xf32>
    %14 = arith.truncf %13 : vector<4x16x8xf32> to vector<4x16x8xbf16>
    %15 = vector.extract_strided_slice %8 {offsets = [0, 16], sizes = [64, 8], strides = [1, 1]} : vector<64x24xf32> to vector<64x8xf32>
    %16 = vector.shape_cast %15 : vector<64x8xf32> to vector<4x16x8xf32>
    %17 = arith.truncf %16 : vector<4x16x8xf32> to vector<4x16x8xbf16>
    "tpu.trace_start"() <{level = 10 : i32, message = "bqd,bkd->bqk"}> : () -> ()
    %cst_7 = arith.constant dense<0.000000e+00> : vector<4x16x16xf32>
    %18 = tpu.matmul %11, %14, %cst_7 {dimension_numbers = #tpu.dot_dimension_numbers<[2], [2], [1], [1], [0, 0, 0, 1, 1, 1], [0], [0]>} : vector<4x16x8xbf16>, vector<4x16x8xbf16>, vector<4x16x16xf32> -> vector<4x16x16xf32>
    "tpu.trace_stop"() : () -> ()
    %19 = vector.shape_cast %18 : vector<4x16x16xf32> to vector<1x4x16x16xf32>
    %c0_8 = arith.constant 0 : index
    %c0_9 = arith.constant 0 : index
    %c0_10 = arith.constant 0 : index
    %c0_11 = arith.constant 0 : index
    %20 = vector.load %arg6[%c0_8, %c0_9, %c0_10, %c0_11] : memref<4x4x16x16xbf16, #tpu.memory_space<vmem>>, vector<1x4x16x16xbf16>
    %21 = vector.shape_cast %20 : vector<1x4x16x16xbf16> to vector<4x16x16xbf16>
    %22 = arith.extf %21 : vector<4x16x16xbf16> to vector<4x16x16xf32>
    %23 = vector.shape_cast %22 : vector<4x16x16xf32> to vector<1x4x16x16xf32>
    %24 = arith.addf %19, %23 : vector<1x4x16x16xf32>
    %25 = vector.shape_cast %24 : vector<1x4x16x16xf32> to vector<4x16x16xf32>
    %cst_12 = arith.constant dense<0xFF800000> : vector<4x16xf32>
    %26 = vector.multi_reduction <maximumf>, %25, %cst_12 [2] : vector<4x16x16xf32> to vector<4x16xf32>
    %27 = vector.shape_cast %26 : vector<4x16xf32> to vector<4x16x1xf32>
    %28 = vector.broadcast %27 : vector<4x16x1xf32> to vector<4x16x16xf32>
    %29 = arith.subf %25, %28 : vector<4x16x16xf32>
    %30 = math.exp %29 : vector<4x16x16xf32>
    %cst_13 = arith.constant dense<0.000000e+00> : vector<4x16xf32>
    %31 = vector.multi_reduction <add>, %30, %cst_13 [2] : vector<4x16x16xf32> to vector<4x16xf32>
    %32 = vector.shape_cast %31 : vector<4x16xf32> to vector<4x16x1xf32>
    %33 = tpu.reciprocal %32 {approx = true} : vector<4x16x1xf32> -> vector<4x16x1xf32>
    %34 = vector.broadcast %33 : vector<4x16x1xf32> to vector<4x16x16xf32>
    %35 = arith.mulf %30, %34 : vector<4x16x16xf32>
    %36 = arith.truncf %35 : vector<4x16x16xf32> to vector<4x16x16xbf16>
    "tpu.trace_start"() <{level = 10 : i32, message = "bqk,bkd->bqd"}> : () -> ()
    %cst_14 = arith.constant dense<0.000000e+00> : vector<4x16x8xf32>
    %37 = tpu.matmul %36, %17, %cst_14 {dimension_numbers = #tpu.dot_dimension_numbers<[2], [1], [1], [2], [0, 0, 0, 1, 1, 2], [0], [0]>} : vector<4x16x16xbf16>, vector<4x16x8xbf16>, vector<4x16x8xf32> -> vector<4x16x8xf32>
    "tpu.trace_stop"() : () -> ()
    %38 = vector.shape_cast %37 : vector<4x16x8xf32> to vector<64x8xf32>
    %39 = arith.truncf %38 : vector<64x8xf32> to vector<64x8xbf16>
    %c0_15 = arith.constant 0 : index
    %c0_16 = arith.constant 0 : index
    %40 = vector.load %arg8[%c0_15, %c0_16] : memref<64x32xbf16, #tpu.memory_space<vmem>>, vector<64x8xbf16>
    tpu.vector_store %arg8[%c0_15, %c0_16], %39 {strides = array<i32>} : memref<64x32xbf16, #tpu.memory_space<vmem>>, vector<64x8xbf16>,
    %c1 = arith.constant 1 : index
    %c0_17 = arith.constant 0 : index
    %c0_18 = arith.constant 0 : index
    %41 = vector.load %arg2[%c1, %c0_17, %c0_18] : memref<4x32x24xbf16, #tpu.memory_space<vmem>>, vector<1x32x24xbf16>
    %42 = vector.shape_cast %41 : vector<1x32x24xbf16> to vector<32x24xbf16>
    %cst_19 = arith.constant dense<0.000000e+00> : vector<64x24xf32>
    %43 = tpu.matmul %1, %42, %cst_19 {dimension_numbers = #tpu.dot_dimension_numbers<[1], [0], [0], [1], [0, 0, 1, 1], [], []>} : vector<64x32xbf16>, vector<32x24xbf16>, vector<64x24xf32> -> vector<64x24xf32>
    %c1_20 = arith.constant 1 : index
    %c0_21 = arith.constant 0 : index
    %c0_22 = arith.constant 0 : index
    %44 = vector.load %arg3[%c1_20, %c0_21, %c0_22] : memref<4x1x24xf32, #tpu.memory_space<vmem>>, vector<1x1x24xf32>
    %45 = vector.shape_cast %44 : vector<1x1x24xf32> to vector<1x24xf32>
    %46 = vector.broadcast %45 : vector<1x24xf32> to vector<64x24xf32>
    %47 = arith.addf %43, %46 : vector<64x24xf32>
    %48 = vector.extract_strided_slice %47 {offsets = [0, 0], sizes = [64, 8], strides = [1, 1]} : vector<64x24xf32> to vector<64x8xf32>
    %49 = vector.shape_cast %48 : vector<64x8xf32> to vector<4x16x8xf32>
    %50 = arith.truncf %49 : vector<4x16x8xf32> to vector<4x16x8xbf16>
    %51 = vector.extract_strided_slice %47 {offsets = [0, 8], sizes = [64, 8], strides = [1, 1]} : vector<64x24xf32> to vector<64x8xf32>
    %52 = vector.shape_cast %51 : vector<64x8xf32> to vector<4x16x8xf32>
    %53 = arith.truncf %52 : vector<4x16x8xf32> to vector<4x16x8xbf16>
    %54 = vector.extract_strided_slice %47 {offsets = [0, 16], sizes = [64, 8], strides = [1, 1]} : vector<64x24xf32> to vector<64x8xf32>
    %55 = vector.shape_cast %54 : vector<64x8xf32> to vector<4x16x8xf32>
    %56 = arith.truncf %55 : vector<4x16x8xf32> to vector<4x16x8xbf16>
    "tpu.trace_start"() <{level = 10 : i32, message = "bqd,bkd->bqk"}> : () -> ()
    %cst_23 = arith.constant dense<0.000000e+00> : vector<4x16x16xf32>
    %57 = tpu.matmul %50, %53, %cst_23 {dimension_numbers = #tpu.dot_dimension_numbers<[2], [2], [1], [1], [0, 0, 0, 1, 1, 1], [0], [0]>} : vector<4x16x8xbf16>, vector<4x16x8xbf16>, vector<4x16x16xf32> -> vector<4x16x16xf32>
    "tpu.trace_stop"() : () -> ()
    %58 = vector.shape_cast %57 : vector<4x16x16xf32> to vector<1x4x16x16xf32>
    %c1_24 = arith.constant 1 : index
    %c0_25 = arith.constant 0 : index
    %c0_26 = arith.constant 0 : index
    %c0_27 = arith.constant 0 : index
    %59 = vector.load %arg6[%c1_24, %c0_25, %c0_26, %c0_27] : memref<4x4x16x16xbf16, #tpu.memory_space<vmem>>, vector<1x4x16x16xbf16>
    %60 = vector.shape_cast %59 : vector<1x4x16x16xbf16> to vector<4x16x16xbf16>
    %61 = arith.extf %60 : vector<4x16x16xbf16> to vector<4x16x16xf32>
    %62 = vector.shape_cast %61 : vector<4x16x16xf32> to vector<1x4x16x16xf32>
    %63 = arith.addf %58, %62 : vector<1x4x16x16xf32>
    %64 = vector.shape_cast %63 : vector<1x4x16x16xf32> to vector<4x16x16xf32>
    %cst_28 = arith.constant dense<0xFF800000> : vector<4x16xf32>
    %65 = vector.multi_reduction <maximumf>, %64, %cst_28 [2] : vector<4x16x16xf32> to vector<4x16xf32>
    %66 = vector.shape_cast %65 : vector<4x16xf32> to vector<4x16x1xf32>
    %67 = vector.broadcast %66 : vector<4x16x1xf32> to vector<4x16x16xf32>
    %68 = arith.subf %64, %67 : vector<4x16x16xf32>
    %69 = math.exp %68 : vector<4x16x16xf32>
    %cst_29 = arith.constant dense<0.000000e+00> : vector<4x16xf32>
    %70 = vector.multi_reduction <add>, %69, %cst_29 [2] : vector<4x16x16xf32> to vector<4x16xf32>
    %71 = vector.shape_cast %70 : vector<4x16xf32> to vector<4x16x1xf32>
    %72 = tpu.reciprocal %71 {approx = true} : vector<4x16x1xf32> -> vector<4x16x1xf32>
    %73 = vector.broadcast %72 : vector<4x16x1xf32> to vector<4x16x16xf32>
    %74 = arith.mulf %69, %73 : vector<4x16x16xf32>
    %75 = arith.truncf %74 : vector<4x16x16xf32> to vector<4x16x16xbf16>
    "tpu.trace_start"() <{level = 10 : i32, message = "bqk,bkd->bqd"}> : () -> ()
    %cst_30 = arith.constant dense<0.000000e+00> : vector<4x16x8xf32>
    %76 = tpu.matmul %75, %56, %cst_30 {dimension_numbers = #tpu.dot_dimension_numbers<[2], [1], [1], [2], [0, 0, 0, 1, 1, 2], [0], [0]>} : vector<4x16x16xbf16>, vector<4x16x8xbf16>, vector<4x16x8xf32> -> vector<4x16x8xf32>
    "tpu.trace_stop"() : () -> ()
    %77 = vector.shape_cast %76 : vector<4x16x8xf32> to vector<64x8xf32>
    %78 = arith.truncf %77 : vector<64x8xf32> to vector<64x8xbf16>
    %c0_31 = arith.constant 0 : index
    %c8 = arith.constant 8 : index
    %79 = vector.load %arg8[%c0_31, %c8] : memref<64x32xbf16, #tpu.memory_space<vmem>>, vector<64x8xbf16>
    tpu.vector_store %arg8[%c0_31, %c8], %78 {strides = array<i32>} : memref<64x32xbf16, #tpu.memory_space<vmem>>, vector<64x8xbf16>,
    %c2 = arith.constant 2 : index
    %c0_32 = arith.constant 0 : index
    %c0_33 = arith.constant 0 : index
    %80 = vector.load %arg2[%c2, %c0_32, %c0_33] : memref<4x32x24xbf16, #tpu.memory_space<vmem>>, vector<1x32x24xbf16>
    %81 = vector.shape_cast %80 : vector<1x32x24xbf16> to vector<32x24xbf16>
    %cst_34 = arith.constant dense<0.000000e+00> : vector<64x24xf32>
    %82 = tpu.matmul %1, %81, %cst_34 {dimension_numbers = #tpu.dot_dimension_numbers<[1], [0], [0], [1], [0, 0, 1, 1], [], []>} : vector<64x32xbf16>, vector<32x24xbf16>, vector<64x24xf32> -> vector<64x24xf32>
    %c2_35 = arith.constant 2 : index
    %c0_36 = arith.constant 0 : index
    %c0_37 = arith.constant 0 : index
    %83 = vector.load %arg3[%c2_35, %c0_36, %c0_37] : memref<4x1x24xf32, #tpu.memory_space<vmem>>, vector<1x1x24xf32>
    %84 = vector.shape_cast %83 : vector<1x1x24xf32> to vector<1x24xf32>
    %85 = vector.broadcast %84 : vector<1x24xf32> to vector<64x24xf32>
    %86 = arith.addf %82, %85 : vector<64x24xf32>
    %87 = vector.extract_strided_slice %86 {offsets = [0, 0], sizes = [64, 8], strides = [1, 1]} : vector<64x24xf32> to vector<64x8xf32>
    %88 = vector.shape_cast %87 : vector<64x8xf32> to vector<4x16x8xf32>
    %89 = arith.truncf %88 : vector<4x16x8xf32> to vector<4x16x8xbf16>
    %90 = vector.extract_strided_slice %86 {offsets = [0, 8], sizes = [64, 8], strides = [1, 1]} : vector<64x24xf32> to vector<64x8xf32>
    %91 = vector.shape_cast %90 : vector<64x8xf32> to vector<4x16x8xf32>
    %92 = arith.truncf %91 : vector<4x16x8xf32> to vector<4x16x8xbf16>
    %93 = vector.extract_strided_slice %86 {offsets = [0, 16], sizes = [64, 8], strides = [1, 1]} : vector<64x24xf32> to vector<64x8xf32>
    %94 = vector.shape_cast %93 : vector<64x8xf32> to vector<4x16x8xf32>
    %95 = arith.truncf %94 : vector<4x16x8xf32> to vector<4x16x8xbf16>
    "tpu.trace_start"() <{level = 10 : i32, message = "bqd,bkd->bqk"}> : () -> ()
    %cst_38 = arith.constant dense<0.000000e+00> : vector<4x16x16xf32>
    %96 = tpu.matmul %89, %92, %cst_38 {dimension_numbers = #tpu.dot_dimension_numbers<[2], [2], [1], [1], [0, 0, 0, 1, 1, 1], [0], [0]>} : vector<4x16x8xbf16>, vector<4x16x8xbf16>, vector<4x16x16xf32> -> vector<4x16x16xf32>
    "tpu.trace_stop"() : () -> ()
    %97 = vector.shape_cast %96 : vector<4x16x16xf32> to vector<1x4x16x16xf32>
    %c2_39 = arith.constant 2 : index
    %c0_40 = arith.constant 0 : index
    %c0_41 = arith.constant 0 : index
    %c0_42 = arith.constant 0 : index
    %98 = vector.load %arg6[%c2_39, %c0_40, %c0_41, %c0_42] : memref<4x4x16x16xbf16, #tpu.memory_space<vmem>>, vector<1x4x16x16xbf16>
    %99 = vector.shape_cast %98 : vector<1x4x16x16xbf16> to vector<4x16x16xbf16>
    %100 = arith.extf %99 : vector<4x16x16xbf16> to vector<4x16x16xf32>
    %101 = vector.shape_cast %100 : vector<4x16x16xf32> to vector<1x4x16x16xf32>
    %102 = arith.addf %97, %101 : vector<1x4x16x16xf32>
    %103 = vector.shape_cast %102 : vector<1x4x16x16xf32> to vector<4x16x16xf32>
    %cst_43 = arith.constant dense<0xFF800000> : vector<4x16xf32>
    %104 = vector.multi_reduction <maximumf>, %103, %cst_43 [2] : vector<4x16x16xf32> to vector<4x16xf32>
    %105 = vector.shape_cast %104 : vector<4x16xf32> to vector<4x16x1xf32>
    %106 = vector.broadcast %105 : vector<4x16x1xf32> to vector<4x16x16xf32>
    %107 = arith.subf %103, %106 : vector<4x16x16xf32>
    %108 = math.exp %107 : vector<4x16x16xf32>
    %cst_44 = arith.constant dense<0.000000e+00> : vector<4x16xf32>
    %109 = vector.multi_reduction <add>, %108, %cst_44 [2] : vector<4x16x16xf32> to vector<4x16xf32>
    %110 = vector.shape_cast %109 : vector<4x16xf32> to vector<4x16x1xf32>
    %111 = tpu.reciprocal %110 {approx = true} : vector<4x16x1xf32> -> vector<4x16x1xf32>
    %112 = vector.broadcast %111 : vector<4x16x1xf32> to vector<4x16x16xf32>
    %113 = arith.mulf %108, %112 : vector<4x16x16xf32>
    %114 = arith.truncf %113 : vector<4x16x16xf32> to vector<4x16x16xbf16>
    "tpu.trace_start"() <{level = 10 : i32, message = "bqk,bkd->bqd"}> : () -> ()
    %cst_45 = arith.constant dense<0.000000e+00> : vector<4x16x8xf32>
    %115 = tpu.matmul %114, %95, %cst_45 {dimension_numbers = #tpu.dot_dimension_numbers<[2], [1], [1], [2], [0, 0, 0, 1, 1, 2], [0], [0]>} : vector<4x16x16xbf16>, vector<4x16x8xbf16>, vector<4x16x8xf32> -> vector<4x16x8xf32>
    "tpu.trace_stop"() : () -> ()
    %116 = vector.shape_cast %115 : vector<4x16x8xf32> to vector<64x8xf32>
    %117 = arith.truncf %116 : vector<64x8xf32> to vector<64x8xbf16>
    %c0_46 = arith.constant 0 : index
    %c16 = arith.constant 16 : index
    %118 = vector.load %arg8[%c0_46, %c16] : memref<64x32xbf16, #tpu.memory_space<vmem>>, vector<64x8xbf16>
    tpu.vector_store %arg8[%c0_46, %c16], %117 {strides = array<i32>} : memref<64x32xbf16, #tpu.memory_space<vmem>>, vector<64x8xbf16>,
    %c3 = arith.constant 3 : index
    %c0_47 = arith.constant 0 : index
    %c0_48 = arith.constant 0 : index
    %119 = vector.load %arg2[%c3, %c0_47, %c0_48] : memref<4x32x24xbf16, #tpu.memory_space<vmem>>, vector<1x32x24xbf16>
    %120 = vector.shape_cast %119 : vector<1x32x24xbf16> to vector<32x24xbf16>
    %cst_49 = arith.constant dense<0.000000e+00> : vector<64x24xf32>
    %121 = tpu.matmul %1, %120, %cst_49 {dimension_numbers = #tpu.dot_dimension_numbers<[1], [0], [0], [1], [0, 0, 1, 1], [], []>} : vector<64x32xbf16>, vector<32x24xbf16>, vector<64x24xf32> -> vector<64x24xf32>
    %c3_50 = arith.constant 3 : index
    %c0_51 = arith.constant 0 : index
    %c0_52 = arith.constant 0 : index
    %122 = vector.load %arg3[%c3_50, %c0_51, %c0_52] : memref<4x1x24xf32, #tpu.memory_space<vmem>>, vector<1x1x24xf32>
    %123 = vector.shape_cast %122 : vector<1x1x24xf32> to vector<1x24xf32>
    %124 = vector.broadcast %123 : vector<1x24xf32> to vector<64x24xf32>
    %125 = arith.addf %121, %124 : vector<64x24xf32>
    %126 = vector.extract_strided_slice %125 {offsets = [0, 0], sizes = [64, 8], strides = [1, 1]} : vector<64x24xf32> to vector<64x8xf32>
    %127 = vector.shape_cast %126 : vector<64x8xf32> to vector<4x16x8xf32>
    %128 = arith.truncf %127 : vector<4x16x8xf32> to vector<4x16x8xbf16>
    %129 = vector.extract_strided_slice %125 {offsets = [0, 8], sizes = [64, 8], strides = [1, 1]} : vector<64x24xf32> to vector<64x8xf32>
    %130 = vector.shape_cast %129 : vector<64x8xf32> to vector<4x16x8xf32>
    %131 = arith.truncf %130 : vector<4x16x8xf32> to vector<4x16x8xbf16>
    %132 = vector.extract_strided_slice %125 {offsets = [0, 16], sizes = [64, 8], strides = [1, 1]} : vector<64x24xf32> to vector<64x8xf32>
    %133 = vector.shape_cast %132 : vector<64x8xf32> to vector<4x16x8xf32>
    %134 = arith.truncf %133 : vector<4x16x8xf32> to vector<4x16x8xbf16>
    "tpu.trace_start"() <{level = 10 : i32, message = "bqd,bkd->bqk"}> : () -> ()
    %cst_53 = arith.constant dense<0.000000e+00> : vector<4x16x16xf32>
    %135 = tpu.matmul %128, %131, %cst_53 {dimension_numbers = #tpu.dot_dimension_numbers<[2], [2], [1], [1], [0, 0, 0, 1, 1, 1], [0], [0]>} : vector<4x16x8xbf16>, vector<4x16x8xbf16>, vector<4x16x16xf32> -> vector<4x16x16xf32>
    "tpu.trace_stop"() : () -> ()
    %136 = vector.shape_cast %135 : vector<4x16x16xf32> to vector<1x4x16x16xf32>
    %c3_54 = arith.constant 3 : index
    %c0_55 = arith.constant 0 : index
    %c0_56 = arith.constant 0 : index
    %c0_57 = arith.constant 0 : index
    %137 = vector.load %arg6[%c3_54, %c0_55, %c0_56, %c0_57] : memref<4x4x16x16xbf16, #tpu.memory_space<vmem>>, vector<1x4x16x16xbf16>
    %138 = vector.shape_cast %137 : vector<1x4x16x16xbf16> to vector<4x16x16xbf16>
    %139 = arith.extf %138 : vector<4x16x16xbf16> to vector<4x16x16xf32>
    %140 = vector.shape_cast %139 : vector<4x16x16xf32> to vector<1x4x16x16xf32>
    %141 = arith.addf %136, %140 : vector<1x4x16x16xf32>
    %142 = vector.shape_cast %141 : vector<1x4x16x16xf32> to vector<4x16x16xf32>
    %cst_58 = arith.constant dense<0xFF800000> : vector<4x16xf32>
    %143 = vector.multi_reduction <maximumf>, %142, %cst_58 [2] : vector<4x16x16xf32> to vector<4x16xf32>
    %144 = vector.shape_cast %143 : vector<4x16xf32> to vector<4x16x1xf32>
    %145 = vector.broadcast %144 : vector<4x16x1xf32> to vector<4x16x16xf32>
    %146 = arith.subf %142, %145 : vector<4x16x16xf32>
    %147 = math.exp %146 : vector<4x16x16xf32>
    %cst_59 = arith.constant dense<0.000000e+00> : vector<4x16xf32>
    %148 = vector.multi_reduction <add>, %147, %cst_59 [2] : vector<4x16x16xf32> to vector<4x16xf32>
    %149 = vector.shape_cast %148 : vector<4x16xf32> to vector<4x16x1xf32>
    %150 = tpu.reciprocal %149 {approx = true} : vector<4x16x1xf32> -> vector<4x16x1xf32>
    %151 = vector.broadcast %150 : vector<4x16x1xf32> to vector<4x16x16xf32>
    %152 = arith.mulf %147, %151 : vector<4x16x16xf32>
    %153 = arith.truncf %152 : vector<4x16x16xf32> to vector<4x16x16xbf16>
    "tpu.trace_start"() <{level = 10 : i32, message = "bqk,bkd->bqd"}> : () -> ()
    %cst_60 = arith.constant dense<0.000000e+00> : vector<4x16x8xf32>
    %154 = tpu.matmul %153, %134, %cst_60 {dimension_numbers = #tpu.dot_dimension_numbers<[2], [1], [1], [2], [0, 0, 0, 1, 1, 2], [0], [0]>} : vector<4x16x16xbf16>, vector<4x16x8xbf16>, vector<4x16x8xf32> -> vector<4x16x8xf32>
    "tpu.trace_stop"() : () -> ()
    %155 = vector.shape_cast %154 : vector<4x16x8xf32> to vector<64x8xf32>
    %156 = arith.truncf %155 : vector<64x8xf32> to vector<64x8xbf16>
    %c0_61 = arith.constant 0 : index
    %c24 = arith.constant 24 : index
    %157 = vector.load %arg8[%c0_61, %c24] : memref<64x32xbf16, #tpu.memory_space<vmem>>, vector<64x8xbf16>
    tpu.vector_store %arg8[%c0_61, %c24], %156 {strides = array<i32>} : memref<64x32xbf16, #tpu.memory_space<vmem>>, vector<64x8xbf16>,
    %c0_62 = arith.constant 0 : index
    %c0_63 = arith.constant 0 : index
    %158 = vector.load %arg8[%c0_62, %c0_63] : memref<64x32xbf16, #tpu.memory_space<vmem>>, vector<64x32xbf16>
    %c0_64 = arith.constant 0 : index
    %c0_65 = arith.constant 0 : index
    %159 = vector.load %arg4[%c0_64, %c0_65] : memref<32x32xbf16, #tpu.memory_space<vmem>>, vector<32x32xbf16>
    %cst_66 = arith.constant dense<0.000000e+00> : vector<64x32xf32>
    %160 = tpu.matmul %158, %159, %cst_66 {dimension_numbers = #tpu.dot_dimension_numbers<[1], [0], [0], [1], [0, 0, 1, 1], [], []>} : vector<64x32xbf16>, vector<32x32xbf16>, vector<64x32xf32> -> vector<64x32xf32>
    %c0_67 = arith.constant 0 : index
    %c0_68 = arith.constant 0 : index
    %161 = vector.load %arg5[%c0_67, %c0_68] : memref<1x32xf32, #tpu.memory_space<vmem>>, vector<1x32xf32>
    %162 = vector.broadcast %161 : vector<1x32xf32> to vector<64x32xf32>
    %163 = arith.addf %160, %162 : vector<64x32xf32>
    %c0_69 = arith.constant 0 : index
    %c0_70 = arith.constant 0 : index
    %164 = vector.load %arg7[%c0_69, %c0_70] : memref<64x32xf32, #tpu.memory_space<vmem>>, vector<64x32xf32>
    tpu.vector_store %arg7[%c0_69, %c0_70], %163 {strides = array<i32>} : memref<64x32xf32, #tpu.memory_space<vmem>>, vector<64x32xf32>,
    return
  }
  func.func @transform_0(%arg0: i32) -> (i32, i32) {
    %c0_i32 = arith.constant 0 : i32
    %c0_i32_0 = arith.constant 0 : i32
    return %arg0, %c0_i32 : i32, i32
  }
  func.func @transform_1(%arg0: i32) -> (i32, i32, i32) {
    %c0_i32 = arith.constant 0 : i32
    %c0_i32_0 = arith.constant 0 : i32
    %c0_i32_1 = arith.constant 0 : i32
    %c0_i32_2 = arith.constant 0 : i32
    return %c0_i32, %c0_i32_0, %c0_i32_1 : i32, i32, i32
  }
  func.func @transform_2(%arg0: i32) -> (i32, i32, i32) {
    %c0_i32 = arith.constant 0 : i32
    %c0_i32_0 = arith.constant 0 : i32
    %c0_i32_1 = arith.constant 0 : i32
    %c0_i32_2 = arith.constant 0 : i32
    return %c0_i32, %c0_i32_0, %c0_i32_1 : i32, i32, i32
  }
  func.func @transform_3(%arg0: i32) -> (i32, i32) {
    %c0_i32 = arith.constant 0 : i32
    %c0_i32_0 = arith.constant 0 : i32
    %c0_i32_1 = arith.constant 0 : i32
    return %c0_i32, %c0_i32_0 : i32, i32
  }
  func.func @transform_4(%arg0: i32) -> (i32, i32) {
    %c0_i32 = arith.constant 0 : i32
    %c0_i32_0 = arith.constant 0 : i32
    %c0_i32_1 = arith.constant 0 : i32
    return %c0_i32, %c0_i32_0 : i32, i32
  }
  func.func @transform_5(%arg0: i32) -> (i32, i32, i32, i32) {
    %c0_i32 = arith.constant 0 : i32
    %c0_i32_0 = arith.constant 0 : i32
    %c0_i32_1 = arith.constant 0 : i32
    %c0_i32_2 = arith.constant 0 : i32
    %c0_i32_3 = arith.constant 0 : i32
    return %c0_i32, %c0_i32_0, %c0_i32_1, %c0_i32_2 : i32, i32, i32, i32
  }
  func.func @transform_6(%arg0: i32) -> (i32, i32) {
    %c0_i32 = arith.constant 0 : i32
    %c0_i32_0 = arith.constant 0 : i32
    return %arg0, %c0_i32 : i32, i32
  }
}

module attributes {stable_mosaic.version = 11 : i64} {
  func.func @_window_attention_kernel(%arg0: i32, %arg1: memref<64x32xf32, #tpu.memory_space<vmem>>, %arg2: memref<4x32x24xbf16, #tpu.memory_space<vmem>>, %arg3: memref<4x1x24xf32, #tpu.memory_space<vmem>>, %arg4: memref<32x32xbf16, #tpu.memory_space<vmem>>, %arg5: memref<1x32xf32, #tpu.memory_space<vmem>>, %arg6: memref<4x4x16x16xbf16, #tpu.memory_space<vmem>>, %arg7: memref<64x32xf32, #tpu.memory_space<vmem>>, %arg8: memref<64x32xbf16, #tpu.memory_space<vmem>>) attributes {dimension_semantics = [#tpu.dimension_semantics<parallel>], iteration_bounds = array<i64: 2>, scalar_prefetch = 0 : i64, scratch_operands = 1 : i64, tpu.core_type = #tpu.core_type<tc>, window_params = [{transform_indices = @transform_0, window_bounds = array<i64: 64, 32>}, {pipeline_mode = #tpu.pipeline_mode<synchronous>, transform_indices = @transform_1, window_bounds = array<i64: 4, 32, 24>}, {pipeline_mode = #tpu.pipeline_mode<synchronous>, transform_indices = @transform_2, window_bounds = array<i64: 4, 1, 24>}, {pipeline_mode = #tpu.pipeline_mode<synchronous>, transform_indices = @transform_3, window_bounds = array<i64: 32, 32>}, {pipeline_mode = #tpu.pipeline_mode<synchronous>, transform_indices = @transform_4, window_bounds = array<i64: 1, 32>}, {pipeline_mode = #tpu.pipeline_mode<synchronous>, transform_indices = @transform_5, window_bounds = array<i64: 4, 4, 16, 16>}, {transform_indices = @transform_6, window_bounds = array<i64: 64, 32>}]} {
    %c0 = arith.constant 0 : index
    %c0_0 = arith.constant 0 : index
    %0 = vector.load %arg1[%c0, %c0_0] : memref<64x32xf32, #tpu.memory_space<vmem>>, vector<64x32xf32>
    %1 = arith.truncf %0 : vector<64x32xf32> to vector<64x32xbf16>
    %c0_1 = arith.constant 0 : index
    %c0_2 = arith.constant 0 : index
    %c0_3 = arith.constant 0 : index
    %2 = vector.load %arg2[%c0_1, %c0_2, %c0_3] : memref<4x32x24xbf16, #tpu.memory_space<vmem>>, vector<1x32x24xbf16>
    %3 = vector.shape_cast %2 : vector<1x32x24xbf16> to vector<32x24xbf16>
    %cst = arith.constant dense<0.000000e+00> : vector<64x24xf32>
    %4 = tpu.matmul %1, %3, %cst {dimension_numbers = #tpu.dot_dimension_numbers<[1], [0], [0], [1], [0, 0, 1, 1], [], []>} : vector<64x32xbf16>, vector<32x24xbf16>, vector<64x24xf32> -> vector<64x24xf32>
    %c0_4 = arith.constant 0 : index
    %c0_5 = arith.constant 0 : index
    %c0_6 = arith.constant 0 : index
    %5 = vector.load %arg3[%c0_4, %c0_5, %c0_6] : memref<4x1x24xf32, #tpu.memory_space<vmem>>, vector<1x1x24xf32>
    %6 = vector.shape_cast %5 : vector<1x1x24xf32> to vector<1x24xf32>
    %7 = vector.broadcast %6 : vector<1x24xf32> to vector<64x24xf32>
    %8 = arith.addf %4, %7 : vector<64x24xf32>
    %9 = vector.extract_strided_slice %8 {offsets = [0, 0], sizes = [64, 8], strides = [1, 1]} : vector<64x24xf32> to vector<64x8xf32>
    %10 = vector.shape_cast %9 : vector<64x8xf32> to vector<4x16x8xf32>
    %11 = arith.truncf %10 : vector<4x16x8xf32> to vector<4x16x8xbf16>
    %12 = vector.extract_strided_slice %8 {offsets = [0, 8], sizes = [64, 8], strides = [1, 1]} : vector<64x24xf32> to vector<64x8xf32>
    %13 = vector.shape_cast %12 : vector<64x8xf32> to vector<4x16x8xf32>
    %14 = arith.truncf %13 : vector<4x16x8xf32> to vector<4x16x8xbf16>
    %15 = vector.extract_strided_slice %8 {offsets = [0, 16], sizes = [64, 8], strides = [1, 1]} : vector<64x24xf32> to vector<64x8xf32>
    %16 = vector.shape_cast %15 : vector<64x8xf32> to vector<4x16x8xf32>
    %17 = arith.truncf %16 : vector<4x16x8xf32> to vector<4x16x8xbf16>
    "tpu.trace_start"() <{level = 10 : i32, message = "bqd,bkd->bqk"}> : () -> ()
    %cst_7 = arith.constant dense<0.000000e+00> : vector<4x16x16xf32>
    %18 = tpu.matmul %11, %14, %cst_7 {dimension_numbers = #tpu.dot_dimension_numbers<[2], [2], [1], [1], [0, 0, 0, 1, 1, 1], [0], [0]>} : vector<4x16x8xbf16>, vector<4x16x8xbf16>, vector<4x16x16xf32> -> vector<4x16x16xf32>
    "tpu.trace_stop"() : () -> ()
    %19 = vector.shape_cast %18 : vector<4x16x16xf32> to vector<1x4x16x16xf32>
    %c0_8 = arith.constant 0 : index
    %c0_9 = arith.constant 0 : index
    %c0_10 = arith.constant 0 : index
    %c0_11 = arith.constant 0 : index
    %20 = vector.load %arg6[%c0_8, %c0_9, %c0_10, %c0_11] : memref<4x4x16x16xbf16, #tpu.memory_space<vmem>>, vector<1x4x16x16xbf16>
    %21 = vector.shape_cast %20 : vector<1x4x16x16xbf16> to vector<4x16x16xbf16>
    %22 = arith.extf %21 : vector<4x16x16xbf16> to vector<4x16x16xf32>
    %23 = vector.shape_cast %22 : vector<4x16x16xf32> to vector<1x4x16x16xf32>
    %24 = arith.addf %19, %23 : vector<1x4x16x16xf32>
    %25 = vector.shape_cast %24 : vector<1x4x16x16xf32> to vector<4x16x16xf32>
    %cst_12 = arith.constant dense<0xFF800000> : vector<4x16xf32>
    %26 = vector.multi_reduction <maximumf>, %25, %cst_12 [2] : vector<4x16x16xf32> to vector<4x16xf32>
    %27 = vector.shape_cast %26 : vector<4x16xf32> to vector<4x16x1xf32>
    %28 = vector.broadcast %27 : vector<4x16x1xf32> to vector<4x16x16xf32>
    %29 = arith.subf %25, %28 : vector<4x16x16xf32>
    %30 = math.exp %29 : vector<4x16x16xf32>
    %cst_13 = arith.constant dense<0.000000e+00> : vector<4x16xf32>
    %31 = vector.multi_reduction <add>, %30, %cst_13 [2] : vector<4x16x16xf32> to vector<4x16xf32>
    %32 = vector.shape_cast %31 : vector<4x16xf32> to vector<4x16x1xf32>
    %33 = tpu.reciprocal %32 {approx = true} : vector<4x16x1xf32> -> vector<4x16x1xf32>
    %34 = vector.broadcast %33 : vector<4x16x1xf32> to vector<4x16x16xf32>
    %35 = arith.mulf %30, %34 : vector<4x16x16xf32>
    %36 = arith.truncf %35 : vector<4x16x16xf32> to vector<4x16x16xbf16>
    "tpu.trace_start"() <{level = 10 : i32, message = "bqk,bkd->bqd"}> : () -> ()
    %cst_14 = arith.constant dense<0.000000e+00> : vector<4x16x8xf32>
    %37 = tpu.matmul %36, %17, %cst_14 {dimension_numbers = #tpu.dot_dimension_numbers<[2], [1], [1], [2], [0, 0, 0, 1, 1, 2], [0], [0]>} : vector<4x16x16xbf16>, vector<4x16x8xbf16>, vector<4x16x8xf32> -> vector<4x16x8xf32>
    "tpu.trace_stop"() : () -> ()
    %38 = vector.shape_cast %37 : vector<4x16x8xf32> to vector<64x8xf32>
    %39 = arith.truncf %38 : vector<64x8xf32> to vector<64x8xbf16>
    %c0_15 = arith.constant 0 : index
    %c0_16 = arith.constant 0 : index
    %40 = vector.load %arg8[%c0_15, %c0_16] : memref<64x32xbf16, #tpu.memory_space<vmem>>, vector<64x8xbf16>
    tpu.vector_store %arg8[%c0_15, %c0_16], %39 {strides = array<i32>} : memref<64x32xbf16, #tpu.memory_space<vmem>>, vector<64x8xbf16>,
    %c1 = arith.constant 1 : index
    %c0_17 = arith.constant 0 : index
    %c0_18 = arith.constant 0 : index
    %41 = vector.load %arg2[%c1, %c0_17, %c0_18] : memref<4x32x24xbf16, #tpu.memory_space<vmem>>, vector<1x32x24xbf16>
    %42 = vector.shape_cast %41 : vector<1x32x24xbf16> to vector<32x24xbf16>
    %cst_19 = arith.constant dense<0.000000e+00> : vector<64x24xf32>
    %43 = tpu.matmul %1, %42, %cst_19 {dimension_numbers = #tpu.dot_dimension_numbers<[1], [0], [0], [1], [0, 0, 1, 1], [], []>} : vector<64x32xbf16>, vector<32x24xbf16>, vector<64x24xf32> -> vector<64x24xf32>
    %c1_20 = arith.constant 1 : index
    %c0_21 = arith.constant 0 : index
    %c0_22 = arith.constant 0 : index
    %44 = vector.load %arg3[%c1_20, %c0_21, %c0_22] : memref<4x1x24xf32, #tpu.memory_space<vmem>>, vector<1x1x24xf32>
    %45 = vector.shape_cast %44 : vector<1x1x24xf32> to vector<1x24xf32>
    %46 = vector.broadcast %45 : vector<1x24xf32> to vector<64x24xf32>
    %47 = arith.addf %43, %46 : vector<64x24xf32>
    %48 = vector.extract_strided_slice %47 {offsets = [0, 0], sizes = [64, 8], strides = [1, 1]} : vector<64x24xf32> to vector<64x8xf32>
    %49 = vector.shape_cast %48 : vector<64x8xf32> to vector<4x16x8xf32>
    %50 = arith.truncf %49 : vector<4x16x8xf32> to vector<4x16x8xbf16>
    %51 = vector.extract_strided_slice %47 {offsets = [0, 8], sizes = [64, 8], strides = [1, 1]} : vector<64x24xf32> to vector<64x8xf32>
    %52 = vector.shape_cast %51 : vector<64x8xf32> to vector<4x16x8xf32>
    %53 = arith.truncf %52 : vector<4x16x8xf32> to vector<4x16x8xbf16>
    %54 = vector.extract_strided_slice %47 {offsets = [0, 16], sizes = [64, 8], strides = [1, 1]} : vector<64x24xf32> to vector<64x8xf32>
    %55 = vector.shape_cast %54 : vector<64x8xf32> to vector<4x16x8xf32>
    %56 = arith.truncf %55 : vector<4x16x8xf32> to vector<4x16x8xbf16>
    "tpu.trace_start"() <{level = 10 : i32, message = "bqd,bkd->bqk"}> : () -> ()
    %cst_23 = arith.constant dense<0.000000e+00> : vector<4x16x16xf32>
    %57 = tpu.matmul %50, %53, %cst_23 {dimension_numbers = #tpu.dot_dimension_numbers<[2], [2], [1], [1], [0, 0, 0, 1, 1, 1], [0], [0]>} : vector<4x16x8xbf16>, vector<4x16x8xbf16>, vector<4x16x16xf32> -> vector<4x16x16xf32>
    "tpu.trace_stop"() : () -> ()
    %58 = vector.shape_cast %57 : vector<4x16x16xf32> to vector<1x4x16x16xf32>
    %c1_24 = arith.constant 1 : index
    %c0_25 = arith.constant 0 : index
    %c0_26 = arith.constant 0 : index
    %c0_27 = arith.constant 0 : index
    %59 = vector.load %arg6[%c1_24, %c0_25, %c0_26, %c0_27] : memref<4x4x16x16xbf16, #tpu.memory_space<vmem>>, vector<1x4x16x16xbf16>
    %60 = vector.shape_cast %59 : vector<1x4x16x16xbf16> to vector<4x16x16xbf16>
    %61 = arith.extf %60 : vector<4x16x16xbf16> to vector<4x16x16xf32>
    %62 = vector.shape_cast %61 : vector<4x16x16xf32> to vector<1x4x16x16xf32>
    %63 = arith.addf %58, %62 : vector<1x4x16x16xf32>
    %64 = vector.shape_cast %63 : vector<1x4x16x16xf32> to vector<4x16x16xf32>
    %cst_28 = arith.constant dense<0xFF800000> : vector<4x16xf32>
    %65 = vector.multi_reduction <maximumf>, %64, %cst_28 [2] : vector<4x16x16xf32> to vector<4x16xf32>
    %66 = vector.shape_cast %65 : vector<4x16xf32> to vector<4x16x1xf32>
    %67 = vector.broadcast %66 : vector<4x16x1xf32> to vector<4x16x16xf32>
    %68 = arith.subf %64, %67 : vector<4x16x16xf32>
    %69 = math.exp %68 : vector<4x16x16xf32>
    %cst_29 = arith.constant dense<0.000000e+00> : vector<4x16xf32>
    %70 = vector.multi_reduction <add>, %69, %cst_29 [2] : vector<4x16x16xf32> to vector<4x16xf32>
    %71 = vector.shape_cast %70 : vector<4x16xf32> to vector<4x16x1xf32>
    %72 = tpu.reciprocal %71 {approx = true} : vector<4x16x1xf32> -> vector<4x16x1xf32>
    %73 = vector.broadcast %72 : vector<4x16x1xf32> to vector<4x16x16xf32>
    %74 = arith.mulf %69, %73 : vector<4x16x16xf32>
    %75 = arith.truncf %74 : vector<4x16x16xf32> to vector<4x16x16xbf16>
    "tpu.trace_start"() <{level = 10 : i32, message = "bqk,bkd->bqd"}> : () -> ()
    %cst_30 = arith.constant dense<0.000000e+00> : vector<4x16x8xf32>
    %76 = tpu.matmul %75, %56, %cst_30 {dimension_numbers = #tpu.dot_dimension_numbers<[2], [1], [1], [2], [0, 0, 0, 1, 1, 2], [0], [0]>} : vector<4x16x16xbf16>, vector<4x16x8xbf16>, vector<4x16x8xf32> -> vector<4x16x8xf32>
    "tpu.trace_stop"() : () -> ()
    %77 = vector.shape_cast %76 : vector<4x16x8xf32> to vector<64x8xf32>
    %78 = arith.truncf %77 : vector<64x8xf32> to vector<64x8xbf16>
    %c0_31 = arith.constant 0 : index
    %c8 = arith.constant 8 : index
    %79 = vector.load %arg8[%c0_31, %c8] : memref<64x32xbf16, #tpu.memory_space<vmem>>, vector<64x8xbf16>
    tpu.vector_store %arg8[%c0_31, %c8], %78 {strides = array<i32>} : memref<64x32xbf16, #tpu.memory_space<vmem>>, vector<64x8xbf16>,
    %c2 = arith.constant 2 : index
    %c0_32 = arith.constant 0 : index
    %c0_33 = arith.constant 0 : index
    %80 = vector.load %arg2[%c2, %c0_32, %c0_33] : memref<4x32x24xbf16, #tpu.memory_space<vmem>>, vector<1x32x24xbf16>
    %81 = vector.shape_cast %80 : vector<1x32x24xbf16> to vector<32x24xbf16>
    %cst_34 = arith.constant dense<0.000000e+00> : vector<64x24xf32>
    %82 = tpu.matmul %1, %81, %cst_34 {dimension_numbers = #tpu.dot_dimension_numbers<[1], [0], [0], [1], [0, 0, 1, 1], [], []>} : vector<64x32xbf16>, vector<32x24xbf16>, vector<64x24xf32> -> vector<64x24xf32>
    %c2_35 = arith.constant 2 : index
    %c0_36 = arith.constant 0 : index
    %c0_37 = arith.constant 0 : index
    %83 = vector.load %arg3[%c2_35, %c0_36, %c0_37] : memref<4x1x24xf32, #tpu.memory_space<vmem>>, vector<1x1x24xf32>
    %84 = vector.shape_cast %83 : vector<1x1x24xf32> to vector<1x24xf32>
    %85 = vector.broadcast %84 : vector<1x24xf32> to vector<64x24xf32>
    %86 = arith.addf %82, %85 : vector<64x24xf32>
    %87 = vector.extract_strided_slice %86 {offsets = [0, 0], sizes = [64, 8], strides = [1, 1]} : vector<64x24xf32> to vector<64x8xf32>
    %88 = vector.shape_cast %87 : vector<64x8xf32> to vector<4x16x8xf32>
    %89 = arith.truncf %88 : vector<4x16x8xf32> to vector<4x16x8xbf16>
    %90 = vector.extract_strided_slice %86 {offsets = [0, 8], sizes = [64, 8], strides = [1, 1]} : vector<64x24xf32> to vector<64x8xf32>
    %91 = vector.shape_cast %90 : vector<64x8xf32> to vector<4x16x8xf32>
    %92 = arith.truncf %91 : vector<4x16x8xf32> to vector<4x16x8xbf16>
    %93 = vector.extract_strided_slice %86 {offsets = [0, 16], sizes = [64, 8], strides = [1, 1]} : vector<64x24xf32> to vector<64x8xf32>
    %94 = vector.shape_cast %93 : vector<64x8xf32> to vector<4x16x8xf32>
    %95 = arith.truncf %94 : vector<4x16x8xf32> to vector<4x16x8xbf16>
    "tpu.trace_start"() <{level = 10 : i32, message = "bqd,bkd->bqk"}> : () -> ()
    %cst_38 = arith.constant dense<0.000000e+00> : vector<4x16x16xf32>
    %96 = tpu.matmul %89, %92, %cst_38 {dimension_numbers = #tpu.dot_dimension_numbers<[2], [2], [1], [1], [0, 0, 0, 1, 1, 1], [0], [0]>} : vector<4x16x8xbf16>, vector<4x16x8xbf16>, vector<4x16x16xf32> -> vector<4x16x16xf32>
    "tpu.trace_stop"() : () -> ()
    %97 = vector.shape_cast %96 : vector<4x16x16xf32> to vector<1x4x16x16xf32>
    %c2_39 = arith.constant 2 : index
    %c0_40 = arith.constant 0 : index
    %c0_41 = arith.constant 0 : index
    %c0_42 = arith.constant 0 : index
    %98 = vector.load %arg6[%c2_39, %c0_40, %c0_41, %c0_42] : memref<4x4x16x16xbf16, #tpu.memory_space<vmem>>, vector<1x4x16x16xbf16>
    %99 = vector.shape_cast %98 : vector<1x4x16x16xbf16> to vector<4x16x16xbf16>
    %100 = arith.extf %99 : vector<4x16x16xbf16> to vector<4x16x16xf32>
    %101 = vector.shape_cast %100 : vector<4x16x16xf32> to vector<1x4x16x16xf32>
    %102 = arith.addf %97, %101 : vector<1x4x16x16xf32>
    %103 = vector.shape_cast %102 : vector<1x4x16x16xf32> to vector<4x16x16xf32>
    %cst_43 = arith.constant dense<0xFF800000> : vector<4x16xf32>
    %104 = vector.multi_reduction <maximumf>, %103, %cst_43 [2] : vector<4x16x16xf32> to vector<4x16xf32>
    %105 = vector.shape_cast %104 : vector<4x16xf32> to vector<4x16x1xf32>
    %106 = vector.broadcast %105 : vector<4x16x1xf32> to vector<4x16x16xf32>
    %107 = arith.subf %103, %106 : vector<4x16x16xf32>
    %108 = math.exp %107 : vector<4x16x16xf32>
    %cst_44 = arith.constant dense<0.000000e+00> : vector<4x16xf32>
    %109 = vector.multi_reduction <add>, %108, %cst_44 [2] : vector<4x16x16xf32> to vector<4x16xf32>
    %110 = vector.shape_cast %109 : vector<4x16xf32> to vector<4x16x1xf32>
    %111 = tpu.reciprocal %110 {approx = true} : vector<4x16x1xf32> -> vector<4x16x1xf32>
    %112 = vector.broadcast %111 : vector<4x16x1xf32> to vector<4x16x16xf32>
    %113 = arith.mulf %108, %112 : vector<4x16x16xf32>
    %114 = arith.truncf %113 : vector<4x16x16xf32> to vector<4x16x16xbf16>
    "tpu.trace_start"() <{level = 10 : i32, message = "bqk,bkd->bqd"}> : () -> ()
    %cst_45 = arith.constant dense<0.000000e+00> : vector<4x16x8xf32>
    %115 = tpu.matmul %114, %95, %cst_45 {dimension_numbers = #tpu.dot_dimension_numbers<[2], [1], [1], [2], [0, 0, 0, 1, 1, 2], [0], [0]>} : vector<4x16x16xbf16>, vector<4x16x8xbf16>, vector<4x16x8xf32> -> vector<4x16x8xf32>
    "tpu.trace_stop"() : () -> ()
    %116 = vector.shape_cast %115 : vector<4x16x8xf32> to vector<64x8xf32>
    %117 = arith.truncf %116 : vector<64x8xf32> to vector<64x8xbf16>
    %c0_46 = arith.constant 0 : index
    %c16 = arith.constant 16 : index
    %118 = vector.load %arg8[%c0_46, %c16] : memref<64x32xbf16, #tpu.memory_space<vmem>>, vector<64x8xbf16>
    tpu.vector_store %arg8[%c0_46, %c16], %117 {strides = array<i32>} : memref<64x32xbf16, #tpu.memory_space<vmem>>, vector<64x8xbf16>,
    %c3 = arith.constant 3 : index
    %c0_47 = arith.constant 0 : index
    %c0_48 = arith.constant 0 : index
    %119 = vector.load %arg2[%c3, %c0_47, %c0_48] : memref<4x32x24xbf16, #tpu.memory_space<vmem>>, vector<1x32x24xbf16>
    %120 = vector.shape_cast %119 : vector<1x32x24xbf16> to vector<32x24xbf16>
    %cst_49 = arith.constant dense<0.000000e+00> : vector<64x24xf32>
    %121 = tpu.matmul %1, %120, %cst_49 {dimension_numbers = #tpu.dot_dimension_numbers<[1], [0], [0], [1], [0, 0, 1, 1], [], []>} : vector<64x32xbf16>, vector<32x24xbf16>, vector<64x24xf32> -> vector<64x24xf32>
    %c3_50 = arith.constant 3 : index
    %c0_51 = arith.constant 0 : index
    %c0_52 = arith.constant 0 : index
    %122 = vector.load %arg3[%c3_50, %c0_51, %c0_52] : memref<4x1x24xf32, #tpu.memory_space<vmem>>, vector<1x1x24xf32>
    %123 = vector.shape_cast %122 : vector<1x1x24xf32> to vector<1x24xf32>
    %124 = vector.broadcast %123 : vector<1x24xf32> to vector<64x24xf32>
    %125 = arith.addf %121, %124 : vector<64x24xf32>
    %126 = vector.extract_strided_slice %125 {offsets = [0, 0], sizes = [64, 8], strides = [1, 1]} : vector<64x24xf32> to vector<64x8xf32>
    %127 = vector.shape_cast %126 : vector<64x8xf32> to vector<4x16x8xf32>
    %128 = arith.truncf %127 : vector<4x16x8xf32> to vector<4x16x8xbf16>
    %129 = vector.extract_strided_slice %125 {offsets = [0, 8], sizes = [64, 8], strides = [1, 1]} : vector<64x24xf32> to vector<64x8xf32>
    %130 = vector.shape_cast %129 : vector<64x8xf32> to vector<4x16x8xf32>
    %131 = arith.truncf %130 : vector<4x16x8xf32> to vector<4x16x8xbf16>
    %132 = vector.extract_strided_slice %125 {offsets = [0, 16], sizes = [64, 8], strides = [1, 1]} : vector<64x24xf32> to vector<64x8xf32>
    %133 = vector.shape_cast %132 : vector<64x8xf32> to vector<4x16x8xf32>
    %134 = arith.truncf %133 : vector<4x16x8xf32> to vector<4x16x8xbf16>
    "tpu.trace_start"() <{level = 10 : i32, message = "bqd,bkd->bqk"}> : () -> ()
    %cst_53 = arith.constant dense<0.000000e+00> : vector<4x16x16xf32>
    %135 = tpu.matmul %128, %131, %cst_53 {dimension_numbers = #tpu.dot_dimension_numbers<[2], [2], [1], [1], [0, 0, 0, 1, 1, 1], [0], [0]>} : vector<4x16x8xbf16>, vector<4x16x8xbf16>, vector<4x16x16xf32> -> vector<4x16x16xf32>
    "tpu.trace_stop"() : () -> ()
    %136 = vector.shape_cast %135 : vector<4x16x16xf32> to vector<1x4x16x16xf32>
    %c3_54 = arith.constant 3 : index
    %c0_55 = arith.constant 0 : index
    %c0_56 = arith.constant 0 : index
    %c0_57 = arith.constant 0 : index
    %137 = vector.load %arg6[%c3_54, %c0_55, %c0_56, %c0_57] : memref<4x4x16x16xbf16, #tpu.memory_space<vmem>>, vector<1x4x16x16xbf16>
    %138 = vector.shape_cast %137 : vector<1x4x16x16xbf16> to vector<4x16x16xbf16>
    %139 = arith.extf %138 : vector<4x16x16xbf16> to vector<4x16x16xf32>
    %140 = vector.shape_cast %139 : vector<4x16x16xf32> to vector<1x4x16x16xf32>
    %141 = arith.addf %136, %140 : vector<1x4x16x16xf32>
    %142 = vector.shape_cast %141 : vector<1x4x16x16xf32> to vector<4x16x16xf32>
    %cst_58 = arith.constant dense<0xFF800000> : vector<4x16xf32>
    %143 = vector.multi_reduction <maximumf>, %142, %cst_58 [2] : vector<4x16x16xf32> to vector<4x16xf32>
    %144 = vector.shape_cast %143 : vector<4x16xf32> to vector<4x16x1xf32>
    %145 = vector.broadcast %144 : vector<4x16x1xf32> to vector<4x16x16xf32>
    %146 = arith.subf %142, %145 : vector<4x16x16xf32>
    %147 = math.exp %146 : vector<4x16x16xf32>
    %cst_59 = arith.constant dense<0.000000e+00> : vector<4x16xf32>
    %148 = vector.multi_reduction <add>, %147, %cst_59 [2] : vector<4x16x16xf32> to vector<4x16xf32>
    %149 = vector.shape_cast %148 : vector<4x16xf32> to vector<4x16x1xf32>
    %150 = tpu.reciprocal %149 {approx = true} : vector<4x16x1xf32> -> vector<4x16x1xf32>
    %151 = vector.broadcast %150 : vector<4x16x1xf32> to vector<4x16x16xf32>
    %152 = arith.mulf %147, %151 : vector<4x16x16xf32>
    %153 = arith.truncf %152 : vector<4x16x16xf32> to vector<4x16x16xbf16>
    "tpu.trace_start"() <{level = 10 : i32, message = "bqk,bkd->bqd"}> : () -> ()
    %cst_60 = arith.constant dense<0.000000e+00> : vector<4x16x8xf32>
    %154 = tpu.matmul %153, %134, %cst_60 {dimension_numbers = #tpu.dot_dimension_numbers<[2], [1], [1], [2], [0, 0, 0, 1, 1, 2], [0], [0]>} : vector<4x16x16xbf16>, vector<4x16x8xbf16>, vector<4x16x8xf32> -> vector<4x16x8xf32>
    "tpu.trace_stop"() : () -> ()
    %155 = vector.shape_cast %154 : vector<4x16x8xf32> to vector<64x8xf32>
    %156 = arith.truncf %155 : vector<64x8xf32> to vector<64x8xbf16>
    %c0_61 = arith.constant 0 : index
    %c24 = arith.constant 24 : index
    %157 = vector.load %arg8[%c0_61, %c24] : memref<64x32xbf16, #tpu.memory_space<vmem>>, vector<64x8xbf16>
    tpu.vector_store %arg8[%c0_61, %c24], %156 {strides = array<i32>} : memref<64x32xbf16, #tpu.memory_space<vmem>>, vector<64x8xbf16>,
    %c0_62 = arith.constant 0 : index
    %c0_63 = arith.constant 0 : index
    %158 = vector.load %arg8[%c0_62, %c0_63] : memref<64x32xbf16, #tpu.memory_space<vmem>>, vector<64x32xbf16>
    %c0_64 = arith.constant 0 : index
    %c0_65 = arith.constant 0 : index
    %159 = vector.load %arg4[%c0_64, %c0_65] : memref<32x32xbf16, #tpu.memory_space<vmem>>, vector<32x32xbf16>
    %cst_66 = arith.constant dense<0.000000e+00> : vector<64x32xf32>
    %160 = tpu.matmul %158, %159, %cst_66 {dimension_numbers = #tpu.dot_dimension_numbers<[1], [0], [0], [1], [0, 0, 1, 1], [], []>} : vector<64x32xbf16>, vector<32x32xbf16>, vector<64x32xf32> -> vector<64x32xf32>
    %c0_67 = arith.constant 0 : index
    %c0_68 = arith.constant 0 : index
    %161 = vector.load %arg5[%c0_67, %c0_68] : memref<1x32xf32, #tpu.memory_space<vmem>>, vector<1x32xf32>
    %162 = vector.broadcast %161 : vector<1x32xf32> to vector<64x32xf32>
    %163 = arith.addf %160, %162 : vector<64x32xf32>
    %c0_69 = arith.constant 0 : index
    %c0_70 = arith.constant 0 : index
    %164 = vector.load %arg7[%c0_69, %c0_70] : memref<64x32xf32, #tpu.memory_space<vmem>>, vector<64x32xf32>
    tpu.vector_store %arg7[%c0_69, %c0_70], %163 {strides = array<i32>} : memref<64x32xf32, #tpu.memory_space<vmem>>, vector<64x32xf32>,
    return
  }
  func.func @transform_0(%arg0: i32) -> (i32, i32) {
    %c0_i32 = arith.constant 0 : i32
    %c0_i32_0 = arith.constant 0 : i32
    return %arg0, %c0_i32 : i32, i32
  }
  func.func @transform_1(%arg0: i32) -> (i32, i32, i32) {
    %c0_i32 = arith.constant 0 : i32
    %c0_i32_0 = arith.constant 0 : i32
    %c0_i32_1 = arith.constant 0 : i32
    %c0_i32_2 = arith.constant 0 : i32
    return %c0_i32, %c0_i32_0, %c0_i32_1 : i32, i32, i32
  }
  func.func @transform_2(%arg0: i32) -> (i32, i32, i32) {
    %c0_i32 = arith.constant 0 : i32
    %c0_i32_0 = arith.constant 0 : i32
    %c0_i32_1 = arith.constant 0 : i32
    %c0_i32_2 = arith.constant 0 : i32
    return %c0_i32, %c0_i32_0, %c0_i32_1 : i32, i32, i32
  }
  func.func @transform_3(%arg0: i32) -> (i32, i32) {
    %c0_i32 = arith.constant 0 : i32
    %c0_i32_0 = arith.constant 0 : i32
    %c0_i32_1 = arith.constant 0 : i32
    return %c0_i32, %c0_i32_0 : i32, i32
  }
  func.func @transform_4(%arg0: i32) -> (i32, i32) {
    %c0_i32 = arith.constant 0 : i32
    %c0_i32_0 = arith.constant 0 : i32
    %c0_i32_1 = arith.constant 0 : i32
    return %c0_i32, %c0_i32_0 : i32, i32
  }
  func.func @transform_5(%arg0: i32) -> (i32, i32, i32, i32) {
    %c0_i32 = arith.constant 0 : i32
    %c0_i32_0 = arith.constant 0 : i32
    %c0_i32_1 = arith.constant 0 : i32
    %c0_i32_2 = arith.constant 0 : i32
    %c0_i32_3 = arith.constant 0 : i32
    return %c0_i32, %c0_i32_0, %c0_i32_1, %c0_i32_2 : i32, i32, i32, i32
  }
  func.func @transform_6(%arg0: i32) -> (i32, i32) {
    %c0_i32 = arith.constant 0 : i32
    %c0_i32_0 = arith.constant 0 : i32
    return %arg0, %c0_i32 : i32, i32
  }
}

</mosaic_0001>

<bundles_post_ra>
// kernel: tpu_custom_call.1
= control target key start
LH: loop header
LB: loop body
LE: loop exit
PB: predicated region body
PF: predicated region fallthrough
CT: control target
= control target key end

     0   :  { %s3676_s21 = smov 0   ;;  %s4297_s0 = inlined_call_operand.vmem [shape: f32[128,32], index: 0, kind: input, shape index: {}]   ;;  %s4298_s1 = inlined_call_operand.vmem [shape: bf16[4,32,24], index: 1, kind: input, shape index: {}]   ;;  %s4299_s2 = inlined_call_operand.vmem [shape: f32[4,1,24], index: 2, kind: input, shape index: {}]   ;;  %s4300_s3 = inlined_call_operand.vmem [shape: bf16[32,32], index: 3, kind: input, shape index: {}]   ;;  %s4301_s4 = inlined_call_operand.vmem [shape: f32[1,32], index: 4, kind: input, shape index: {}]   ;;  %s4302_s5 = inlined_call_operand.vmem [shape: bf16[4,4,16,16], index: 5, kind: input, shape index: {}]   ;;  %s4303_s6 = inlined_call_operand.vmem [shape: f32[128,32], index: 6, kind: output, shape index: {}]  }
   0x1 LB: > { %s2927_s22 = sadd.s32 4294967295, %s3632_s21   ;;  %p2931_p0 = scmp.ge.s32.totalorder %s3632_s21, 1  ;;  %s3632_s21 = sphi %s3676_s21, %s16_s21  }
   0x2   : > { %p213_p1 = scmp.lt.s32.totalorder %s3632_s21, 3 }
   0x4   : > { %p214_p2 = pnand %p2931_p0, %p213_p1 }
   0x5   : > { %v3488_v0 = vld [vmem:[%s4298_s1] sm:$0xff] (!%p214_p2)   ;;  %s2932_s25 = sshll.u32 (!%p214_p2), %s2927_s22, 3  ;;  %v3489_v1 = vld [vmem:[%s4298_s1 + $0x8] sm:$0xff] (!%p214_p2)   ;;  %vm291_vm0 = vcmask (!%p214_p2), 261120   ;;  %v3634_v14 = vmov (!%p214_p2), 0.0   ;;  %vm3635_vm1 = vmmov (!%p214_p2), 0  }
   0x6   : > { %217 = sbr.rel (%p214_p2) target bundleno = 4314 (0x10da), region = 44  ;;  %p244_p3 = scmp.lt.s32.totalorder (!%p214_p2), %s2932_s25, 15  ;;  %3217 = vmatprep.subr.bf16.mxu0 (!%p214_p2), %v3488_v0  ;;  %3469 = vmatprep.subr.bf16.mxu1 (!%p214_p2), %v3488_v0  ;;  %v2936_v16 = vld [vmem:[%s4299_s2] ss:$0 sm:$0xff] (!%p214_p2)  ;;  %vm376_vm2 = vcmask (!%p214_p2), 64512   ;;  %v3109_v44 = vld [vmem:[%s4302_s5 + $0x10] sm:$0xff] (!%p214_p2)  }
   0x7   : > { %3218 = vmatpush3.bf16.msra.mxu0 (!%p214_p2), %v3488_v0  ;;  %3471 = vmatpush3.bf16.msra.mxu1 (!%p214_p2), %v3488_v0  ;;  %s3636_s10 = smov (!%p214_p2), 120   ;;  %v3045_v42 = vld [vmem:[%s4302_s5] sm:$0xff] (!%p214_p2)   ;;  %vm598_vm3 = vcmask (!%p214_p2), 130048   ;;  %v3054_v48 = vunpack.c.l.bf16 (!%p214_p2), %v3109_v44  ;;  %v3055_v53 = vunpack.c.h.bf16 (!%p214_p2), %v3109_v44  ;;  %s3637_s15 = smov (!%p214_p2), 112   ;;  %vm1506_vm4 = vcmask (!%p214_p2), 130112  }
   0x8   : > { %3219 = vmatprep.subr.bf16.mxu0 (!%p214_p2), %v3489_v1  ;;  %3470 = vmatprep.subr.bf16.mxu1 (!%p214_p2), %v3489_v1  ;;  %v3046_v43 = vunpack.c.l.bf16 (!%p214_p2), %v3045_v42  ;;  %v3047_v50 = vunpack.c.h.bf16 (!%p214_p2), %v3045_v42  ;;  %s3638_s24 = smov (!%p214_p2), 8   ;;  %s3639_s26 = smov (!%p214_p2), 16   ;;  %vm2130_vm5 = vcmask (!%p214_p2), 195712   ;;  %vm2754_vm6 = vcmask (!%p214_p2), 261312  }
   0xb   : > { %3220 = vmatpush3.bf16.msra.mxu0 (!%p214_p2), %v3489_v1  ;;  %3472 = vmatpush3.bf16.msra.mxu1 (!%p214_p2), %v3489_v1 }
   0xc   : > { %3229 = vmatprep.subr.bf16.mxu1 (!%p214_p2), %v3634_v14  ;;  %3241 = vmatprep.subr.bf16.mxu0 (!%p214_p2), %v3634_v14 }
   0xd   : > { %s4305_s25 = smov (!%p244_p3, %s2932_s25), 15 }
   0xe   : > { %s2933_s28 = sshll.u32 %s4305_s25, 3 }
   0xf   : > { %s247_s7 = scalar_lea.vmem %s4297_s0, %s2933_s28  ;;  %s253_s13 = scalar_lea.vmem %s4303_s6, %s2933_s28 }
  0x10   : > { %v256_v2 = vld [vmem:[%s247_s7] sm:$0xff]  ;;  %v257_v3 = vld [vmem:[%s247_s7 + $0x8] sm:$0xff]  ;;  %v258_v4 = vld [vmem:[%s247_s7 + $0x10] sm:$0xff] }
  0x11   : > { %v3698_v5 = vpack.c.bf16 %v257_v3, %v256_v2  ;;  %v259_v6 = vld [vmem:[%s247_s7 + $0x18] sm:$0xff]  ;;  %v260_v7 = vld [vmem:[%s247_s7 + $0x20] sm:$0xff]  ;;  %v261_v8 = vld [vmem:[%s247_s7 + $0x28] sm:$0xff] }
  0x12   : > { %v3700_v9 = vpack.c.bf16 %v259_v6, %v258_v4  ;;  %v3702_v10 = vpack.c.bf16 %v261_v8, %v260_v7  ;;  %v262_v11 = vld [vmem:[%s247_s7 + $0x30] sm:$0xff]  ;;  %v263_v12 = vld [vmem:[%s247_s7 + $0x38] sm:$0xff]  ;;  %s3640_s7 = smov 24  }
  0x13   : > { %3221 = vmatprep.mubr.msk.bf16.mxu0 %vm291_vm0, %v3698_v5  ;;  %v3706_v13 = vpack.c.bf16 %v263_v12, %v262_v11 }
  0x14   : > { %3222 = vmatmul.mubr.msk.bf16.vlgmr.msra.gmra.mrb[0].mxu0 %vm291_vm0, %v3700_v9  ;;  %3225 = vmatprep.mubr.msk.bf16.mxu1 %vm291_vm0, %v3702_v10 }
  0x15   : > { %3226 = vmatmul.mubr.msk.bf16.vlgmr.msra.gmra.mrb[0].mxu1 %vm291_vm0, %v3706_v13  ;;  %3243 = vmatprep.mubr.msk.bf16.mxu0 %vm3635_vm1, %v3634_v14 }
  0x16   : > { %3231 = vmatprep.mubr.msk.bf16.mxu1 %vm3635_vm1, %v3634_v14 }
  0xe7   : > { %v3223_v15 = vpop.f32.mrb[0].mxu0 }
  0xe8   : > { %v338_v17 = vpop.f32.mrb[1].mxu0  ;;  %v3227_v18 = vpop.f32.mrb[0].mxu1  ;;  %v347_v22 = vadd.f32 %v3223_v15, %v2936_v16 }
  0xe9   : > { %v363_v19 = vadd.f32 %v3227_v18, %v2936_v16  ;;  %v3224_v20 = vpop.f32.mrb[2].mxu0  ;;  %v354_v21 = vpop.f32.mrb[1].mxu1  ;;  %v339_v27 = vadd.f32 %v2936_v16, %v338_v17 }
  0xea   : > { %v350_v23 = vadd.f32 %v3224_v20, %v2936_v16  ;;  %v355_v24 = vadd.f32 %v2936_v16, %v354_v21  ;;  %v341_v25 = vpop.f32.mrb[3].mxu0  ;;  %v3228_v26 = vpop.f32.mrb[2].mxu1 }
  0xeb   : > { %v342_v28 = vadd.f32 %v2936_v16, %v341_v25  ;;  %v366_v29 = vadd.f32 %v3228_v26, %v2936_v16  ;;  %v357_v30 = vpop.f32.mrb[3].mxu1 }
  0xec   : > { %v3723_v31 = vpack.c.bf16 %v350_v23, %v347_v22  ;;  %v358_v32 = vadd.f32 %v2936_v16, %v357_v30 }
  0xed   : > { %v3725_v33 = vpack.c.bf16 %v342_v28, %v339_v27  ;;  %v3727_v34 = vpack.c.bf16 %v366_v29, %v363_v19 }
  0xee   : > { %v3729_v35 = vpack.c.bf16 %v358_v32, %v355_v24  ;;  %v3108_v32 = vld [vmem:[%s4302_s5 + $0x8] sm:$0xff]  }
  0xef   : > { %374 = vrot.lane.b32.xlu0 %v3725_v33, %s3636_s10 }
  0xf3   : > { %475 = vrot.lane.b32.xlu0 %v3729_v35, %s3636_s10 }
  0xf7   : > { %425 = vrot.lane.b32.xlu0 %v3723_v31, %s3636_s10 }
 0x161   : > { %v375_v36 = vpop.permute.xlu0 %374 }
 0x162   : > { %v381_v37 = vsel %vm376_vm2, %v375_v36, 0  ;;  %v3051_v36 = vunpack.c.h.bf16 %v3108_v32 }
 0x163   : > { %3230 = vmatpush3.bf16.xpose.msra.mxu1 %v381_v37 }
 0x164   : > { %3235 = vmatprep.subr.bf16.mxu1 %v3634_v14 }
 0x165   : > { %v476_v38 = vpop.permute.xlu0 %475 }
 0x166   : > { %v481_v39 = vsel %vm376_vm2, %v476_v38, 0 }
 0x167   : > { %3242 = vmatpush3.bf16.xpose.msra.mxu0 %v481_v39  ;;  %v3050_v39 = vunpack.c.l.bf16 %v3108_v32 }
 0x168   : > { %3253 = vmatprep.subr.bf16.mxu0 %v3634_v14 }
 0x169   : > { %v426_v40 = vpop.permute.xlu0 %425 }
 0x16a   : > { %v431_v41 = vsel %vm376_vm2, %v426_v40, 0  ;;  %3232 = vmatmul.mubr.msk.bf16.vlgmr.msra.gmra.mrb[4].mxu1 %vm376_vm2, %v3725_v33 }
 0x16b   : > { %3236 = vmatpush3.bf16.xpose.msra.mxu1 %v431_v41  ;;  %3237 = vmatprep.mubr.msk.bf16.mxu1 %vm3635_vm1, %v3634_v14 }
 0x16c   : > { %3247 = vmatprep.subr.bf16.mxu1 %v3634_v14 }
 0x16e   : > { %3244 = vmatmul.mubr.msk.bf16.vlgmr.msra.gmra.mrb[4].mxu0 %vm376_vm2, %v3729_v35 }
 0x16f   : > { %3255 = vmatprep.mubr.msk.bf16.mxu0 %vm3635_vm1, %v3634_v14 }
 0x172   : > { %3238 = vmatmul.mubr.msk.bf16.vlgmr.msra.gmra.mrb[8].mxu1 %vm376_vm2, %v3723_v31 }
 0x173   : > { %3249 = vmatprep.mubr.msk.bf16.mxu1 %vm3635_vm1, %v3634_v14 }
 0x23d   : > { %v417_v45 = vpop.f32.mrb[4].mxu1 }
 0x23e   : > { %v590_v46 = vadd.f32 %v3046_v43, %v417_v45  ;;  %v3233_v47 = vpop.f32.mrb[5].mxu1 }
 0x23f   : > { %v420_v49 = vpop.f32.mrb[6].mxu1 }
 0x240   : > { %v3234_v51 = vpop.f32.mrb[7].mxu1  ;;  %v599_v52 = vsel %vm598_vm3, %v590_v46, -inf  ;;  %v591_v58 = vadd.f32 %v3047_v50, %v420_v49  ;;  %v3490_v50 = vld [vmem:[%s4298_s1 + $0x10] sm:$0xff]  }
 0x241   : > { %600 = vmax.xlane.f32.xlu1 %v599_v52  ;;  %v517_v54 = vpop.f32.mrb[4].mxu0 }
 0x242   : > { %v594_v55 = vadd.f32 %v3054_v48, %v517_v54  ;;  %v3245_v56 = vpop.f32.mrb[5].mxu0  ;;  %v602_v3 = vsel %vm598_vm3, %v591_v58, -inf }
 0x243   : > { %v520_v57 = vpop.f32.mrb[6].mxu0 }
 0x244   : > { %v595_v59 = vadd.f32 %v3055_v53, %v520_v57  ;;  %v3246_v60 = vpop.f32.mrb[7].mxu0  ;;  %v611_v61 = vsel %vm598_vm3, %v594_v55, -inf  ;;  %v3491_v57 = vld [vmem:[%s4298_s1 + $0x18] sm:$0xff]  }
 0x245   : > { %612 = vmax.xlane.f32.xlu1 %v611_v61  ;;  %v467_v62 = vpop.f32.mrb[8].mxu1 }
 0x246   : > { %v3239_v63 = vpop.f32.mrb[9].mxu1  ;;  %v614_v0 = vsel %vm598_vm3, %v595_v59, -inf  ;;  %v592_v40 = vadd.f32 %v3050_v39, %v467_v62 }
 0x247   : > { %615 = vmax.xlane.f32.xlu0 %v614_v0  ;;  %v470_v1 = vpop.f32.mrb[10].mxu1 }
 0x248   : > { %v3240_v2 = vpop.f32.mrb[11].mxu1  ;;  %v593_v37 = vadd.f32 %v3051_v36, %v470_v1  ;;  %v605_v41 = vsel %vm598_vm3, %v592_v40, -inf  ;;  %v3110_v1 = vld [vmem:[%s4302_s5 + $0x18] sm:$0xff]  }
 0x249   : > { %603 = vmax.xlane.f32.xlu1 %v602_v3  ;;  %v3058_v3 = vunpack.c.l.bf16 %v3110_v1 }
 0x24a   : > { %v608_v38 = vsel %vm598_vm3, %v593_v37, -inf }
 0x25a   : > { %525 = vrot.lane.b32.xlu1 %v3727_v34, %s3636_s10 }
 0x2ce   : > { %v601_v4 = vpop.xlane.xlu1 %600 }
 0x2cf   : > { %v623_v6 = vsub.f32 %v590_v46, %v601_v4  ;;  %v3059_v4 = vunpack.c.h.bf16 %v3110_v1 }
 0x2d1   : > { %v631_v7 = vmul.f32 1.442695, %v623_v6 }
 0x2d2   : > { %v613_v8 = vpop.xlane.xlu1 %612 }
 0x2d3   : > { %3498 = vpow2.f32 %v631_v7  ;;  %v627_v11 = vsub.f32 %v594_v55, %v613_v8 }
 0x2d4   : > { %v616_v12 = vpop.xlane.xlu0 %615 }
 0x2d5   : > { %v639_v15 = vmul.f32 1.442695, %v627_v11  ;;  %v628_v16 = vsub.f32 %v595_v59, %v616_v12 }
 0x2d6   : > { %v604_v17 = vpop.xlane.xlu1 %603 }
 0x2d7   : > { %3500 = vpow2.f32 %v639_v15  ;;  %v624_v18 = vsub.f32 %v591_v58, %v604_v17  ;;  %v641_v19 = vmul.f32 1.442695, %v628_v16 }
 0x2d9   : > { %v633_v20 = vmul.f32 1.442695, %v624_v18 }
 0x2da   : > { %v526_v21 = vpop.permute.xlu1 %525 }
 0x2db   : > { %3502 = vpow2.f32 %v633_v20  ;;  %v531_v22 = vsel %vm376_vm2, %v526_v21, 0 }
 0x2dc   : > { %3248 = vmatpush3.bf16.xpose.msra.mxu1 %v531_v22  ;;  %3504 = vpow2.f32 %v641_v19 }
 0x2dd   : > { %v3499_v23 = vpop.eup %3498  ;;  %3259 = vmatprep.subr.bf16.mxu1 %v3634_v14 }
 0x2de   : > { %v647_v24 = vsel %vm598_vm3, %v3499_v23, 0.0 }
 0x2df   : > { %648 = vadd.xlane.f32.xlu1 %v647_v24 }
 0x2e1   : > { %v3501_v25 = vpop.eup %3500 }
 0x2e2   : > { %v659_v26 = vsel %vm598_vm3, %v3501_v25, 0.0 }
 0x2e3   : > { %660 = vadd.xlane.f32.xlu0 %v659_v26  ;;  %3250 = vmatmul.mubr.msk.bf16.vlgmr.msra.gmra.mrb[12].mxu1 %vm376_vm2, %v3727_v34 }
 0x2e4   : > { %3261 = vmatprep.mubr.msk.bf16.mxu1 %vm3635_vm1, %v3634_v14 }
 0x2e5   : > { %v3503_v27 = vpop.eup %3502 }
 0x2e6   : > { %v650_v28 = vsel %vm598_vm3, %v3503_v27, 0.0  ;;  %v3505_v29 = vpop.eup %3504 }
 0x2e7   : > { %651 = vadd.xlane.f32.xlu0 %v650_v28  ;;  %v662_v30 = vsel %vm598_vm3, %v3505_v29, 0.0 }
 0x2eb   : > { %663 = vadd.xlane.f32.xlu0 %v662_v30 }
 0x2f0   : > { %785 = vrot.lane.b32.xlu1 %v3729_v35, %s3637_s15 }
 0x301   : > { %691 = vrot.lane.b32.xlu0 %v3725_v33, %s3637_s15 }
 0x314   : > { %609 = vmax.xlane.f32.xlu1 %v608_v38 }
 0x320   : > { %606 = vmax.xlane.f32.xlu0 %v605_v41 }
 0x36c   : > { %v649_v42 = vpop.xlane.xlu1 %648 }
 0x36d   : > { %3506 = vrcp.f32 %v649_v42 }
 0x370   : > { %v661_v43 = vpop.xlane.xlu0 %660  ;;  %v786_v52 = vpop.permute.xlu1 %785 }
 0x374   : > { %v652_v35 = vpop.xlane.xlu0 %651 }
 0x375   : > { %3508 = vrcp.f32 %v652_v35  ;;  %v2956_v35 = vld [vmem:[%s4299_s2 + $0x1] ss:$0 sm:$0xff] }
 0x377   : > { %v3507_v45 = vpop.eup %3506 }
 0x378   : > { %v664_v33 = vpop.xlane.xlu0 %663  ;;  %v679_v47 = vmul.f32 %v3507_v45, %v3499_v23 }
 0x379   : > { %3510 = vrcp.f32 %v664_v33 }
 0x37a   : > { %3512 = vrcp.f32 %v661_v43 }
 0x37c   : > { %v692_v44 = vpop.permute.xlu0 %691 }
 0x37d   : > { %3254 = vmatpush3.bf16.msra.mxu0 %v692_v44 }
 0x37e   : > { %3265 = vmatprep.subr.bf16.mxu0 %v3634_v14 }
 0x37f   : > { %v3509_v46 = vpop.eup %3508 }
 0x380   : > { %v680_v48 = vmul.f32 %v3509_v46, %v3503_v27 }
 0x382   : > { %v687_v49 = vpack.c.bf16 %v680_v48, %v679_v47 }
 0x383   : > { %v3511_v51 = vpop.eup %3510 }
 0x384   : > { %3256 = vmatmul.mubr.msk.bf16.vlgmr.msra.gmra.mrb[8].mxu0 %vm598_vm3, %v687_v49  ;;  %v3513_v53 = vpop.eup %3512  ;;  %v684_v54 = vmul.f32 %v3511_v51, %v3505_v29 }
 0x385   : > { %3266 = vmatpush3.bf16.msra.mxu0 %v786_v52  ;;  %3267 = vmatprep.mubr.msk.bf16.mxu0 %vm3635_vm1, %v3634_v14  ;;  %v683_v55 = vmul.f32 %v3513_v53, %v3501_v25 }
 0x386   : > { %3277 = vmatprep.subr.bf16.mxu0 %v3490_v50 }
 0x387   : > { %v689_v56 = vpack.c.bf16 %v684_v54, %v683_v55 }
 0x38c   : > { %3268 = vmatmul.mubr.msk.bf16.vlgmr.msra.gmra.mrb[12].mxu0 %vm598_vm3, %v689_v56 }
 0x38d   : > { %3278 = vmatpush3.bf16.msra.mxu0 %v3490_v50  ;;  %3281 = vmatprep.mubr.msk.bf16.mxu0 %vm291_vm0, %v3698_v5 }
 0x38e   : > { %3279 = vmatprep.subr.bf16.mxu0 %v3491_v57 }
 0x391   : > { %3280 = vmatpush3.bf16.msra.mxu0 %v3491_v57 }
 0x392   : > { %3301 = vmatprep.subr.bf16.mxu0 %v3634_v14 }
 0x394   : > { %3282 = vmatmul.mubr.msk.bf16.vlgmr.msra.gmra.mrb[16].mxu0 %vm291_vm0, %v3700_v9 }
 0x395   : > { %3285 = vmatprep.mubr.msk.bf16.mxu0 %vm291_vm0, %v3702_v10 }
 0x39c   : > { %3286 = vmatmul.mubr.msk.bf16.gmra.mrb[20].mxu0 %vm291_vm0, %v3706_v13 }
 0x39d   : > { %3303 = vmatprep.mubr.msk.bf16.mxu0 %vm3635_vm1, %v3634_v14 }
 0x3a1   : > { %v610_v58 = vpop.xlane.xlu1 %609 }
 0x3a2   : > { %v626_v59 = vsub.f32 %v593_v37, %v610_v58 }
 0x3a4   : > { %v637_v60 = vmul.f32 1.442695, %v626_v59 }
 0x3a6   : > { %3514 = vpow2.f32 %v637_v60 }
 0x3ad   : > { %v607_v61 = vpop.xlane.xlu0 %606 }
 0x3ae   : > { %v625_v62 = vsub.f32 %v592_v40, %v607_v61 }
 0x3b0   : > { %v3808_v63 = vpop.eup %3514  ;;  %v635_v0 = vmul.f32 1.442695, %v625_v62 }
 0x3b1   : > { %v656_v2 = vsel %vm598_vm3, %v3808_v63, 0.0 }
 0x3b2   : > { %657 = vadd.xlane.f32.xlu1 %v656_v2  ;;  %3516 = vpow2.f32 %v635_v0 }
 0x3b6   : > { %v567_v6 = vpop.f32.mrb[12].mxu1 }
 0x3b7   : > { %v596_v7 = vadd.f32 %v3058_v3, %v567_v6  ;;  %v3251_v8 = vpop.f32.mrb[13].mxu1 }
 0x3b8   : > { %v570_v11 = vpop.f32.mrb[14].mxu1 }
 0x3b9   : > { %v597_v12 = vadd.f32 %v3059_v4, %v570_v11  ;;  %v3252_v15 = vpop.f32.mrb[15].mxu1  ;;  %v617_v16 = vsel %vm598_vm3, %v596_v7, -inf }
 0x3ba   : > { %618 = vmax.xlane.f32.xlu0 %v617_v16 }
 0x3bb   : > { %v620_v17 = vsel %vm598_vm3, %v597_v12, -inf }
 0x3bc   : > { %v3817_v18 = vpop.eup %3516 }
 0x3bd   : > { %v653_v19 = vsel %vm598_vm3, %v3817_v18, 0.0 }
 0x3be   : > { %621 = vmax.xlane.f32.xlu0 %v620_v17 }
 0x3c2   : > { %654 = vadd.xlane.f32.xlu0 %v653_v19 }
 0x3c3   : > { %832 = vrot.lane.b32.xlu1 %v3727_v34, %s3637_s15 }
 0x447   : > { %v619_v20 = vpop.xlane.xlu0 %618 }
 0x448   : > { %v629_v21 = vsub.f32 %v596_v7, %v619_v20 }
 0x44a   : > { %v643_v22 = vmul.f32 1.442695, %v629_v21 }
 0x44b   : > { %v622_v23 = vpop.xlane.xlu0 %621 }
 0x44c   : > { %3518 = vpow2.f32 %v643_v22  ;;  %v630_v24 = vsub.f32 %v597_v12, %v622_v23 }
 0x44e   : > { %v645_v25 = vmul.f32 1.442695, %v630_v24 }
 0x44f   : > { %v655_v62 = vpop.xlane.xlu0 %654 }
 0x450   : > { %3520 = vpow2.f32 %v645_v25 }
 0x451   : > { %3522 = vrcp.f32 %v655_v62 }
 0x456   : > { %v3823_v26 = vpop.eup %3518 }
 0x457   : > { %v731_v27 = vpop.f32.mrb[8].mxu0  ;;  %v665_v28 = vsel %vm598_vm3, %v3823_v26, 0.0 }
 0x458   : > { %v3257_v29 = vpop.f32.mrb[9].mxu0  ;;  %666 = vadd.xlane.f32.xlu0 %v665_v28 }
 0x459   : > { %v734_v30 = vpop.f32.mrb[10].mxu0 }
 0x45a   : > { %v3827_v32 = vpop.eup %3520  ;;  %v879_v34 = vpack.c.bf16 %v734_v30, %v731_v27  ;;  %v3258_v36 = vpop.f32.mrb[11].mxu0 }
 0x45b   : > { %v668_v37 = vsel %vm598_vm3, %v3827_v32, 0.0  ;;  %v3523_v0 = vpop.eup %3522 }
 0x45c   : > { %883 = vst.msk [vmem:[#allocation2] sm:$0xff] %vm376_vm2, %v879_v34  ;;  %669 = vadd.xlane.f32.xlu1 %v668_v37  ;;  %v681_v4 = vmul.f32 %v3523_v0, %v3817_v18  ;;  %v3111_v37 = vld [vmem:[%s4302_s5 + $0x20] sm:$0xff]  }
 0x45f   : > { %v825_v38 = vpop.f32.mrb[12].mxu0 }
 0x460   : > { %v3269_v39 = vpop.f32.mrb[13].mxu0 }
 0x461   : > { %v828_v40 = vpop.f32.mrb[14].mxu0 }
 0x462   : > { %v881_v41 = vpack.c.bf16 %v828_v40, %v825_v38  ;;  %v3270_v42 = vpop.f32.mrb[15].mxu0  ;;  %v3113_v40 = vld [vmem:[%s4302_s5 + $0x30] sm:$0xff]  }
 0x463   : > { %v3070_v42 = vunpack.c.l.bf16 %v3113_v40 }
 0x464   : > { %885 = vst.msk [vmem:[#allocation2 + $0x10] sm:$0xff] %vm376_vm2, %v881_v41  ;;  %v3062_v41 = vunpack.c.l.bf16 %v3111_v37 }
 0x467   : > { %v3283_v43 = vpop.f32.mrb[16].mxu0 }
 0x468   : > { %v955_v33 = vadd.f32 %v3283_v43, %v2956_v35  ;;  %v946_v44 = vpop.f32.mrb[17].mxu0  ;;  %v3063_v43 = vunpack.c.h.bf16 %v3111_v37 }
 0x469   : > { %v947_v45 = vadd.f32 %v2956_v35, %v946_v44  ;;  %v3284_v46 = vpop.f32.mrb[18].mxu0 }
 0x46a   : > { %v958_v47 = vadd.f32 %v3284_v46, %v2956_v35  ;;  %v949_v48 = vpop.f32.mrb[19].mxu0 }
 0x46b   : > { %v950_v49 = vadd.f32 %v2956_v35, %v949_v48 }
 0x46c   : > { %v3836_v50 = vpack.c.bf16 %v958_v47, %v955_v33  ;;  %v3071_v47 = vunpack.c.h.bf16 %v3113_v40 }
 0x46d   : > { %v3838_v51 = vpack.c.bf16 %v950_v49, %v947_v45 }
 0x46e   : > { %738 = vrot.lane.b32.xlu0 %v3723_v31, %s3637_s15  ;;  %v658_v31 = vpop.xlane.xlu1 %657 }
 0x46f   : > { %v3287_v52 = vpop.f32.mrb[20].mxu0  ;;  %982 = vrot.lane.b32.xlu1 %v3838_v51, %s3636_s10  ;;  %3524 = vrcp.f32 %v658_v31 }
 0x470   : > { %v971_v53 = vadd.f32 %v3287_v52, %v2956_v35  ;;  %v962_v54 = vpop.f32.mrb[21].mxu0 }
 0x471   : > { %v963_v55 = vadd.f32 %v2956_v35, %v962_v54  ;;  %v3288_v56 = vpop.f32.mrb[22].mxu0 }
 0x472   : > { %v974_v57 = vadd.f32 %v3288_v56, %v2956_v35  ;;  %v965_v58 = vpop.f32.mrb[23].mxu0  ;;  %v833_v1 = vpop.permute.xlu1 %832 }
 0x473   : > { %v966_v59 = vadd.f32 %v2956_v35, %v965_v58 }
 0x474   : > { %v3844_v60 = vpack.c.bf16 %v974_v57, %v971_v53 }
 0x475   : > { %v3846_v61 = vpack.c.bf16 %v966_v59, %v963_v55 }
 0x477   : > { %1082 = vrot.lane.b32.xlu0 %v3846_v61, %s3636_s10 }
 0x479   : > { %v3525_v3 = vpop.eup %3524 }
 0x47a   : > { %v682_v6 = vmul.f32 %v3525_v3, %v3808_v63 }
 0x47c   : > { %v688_v11 = vpack.c.bf16 %v682_v6, %v681_v4 }
 0x4e5   : > { %v667_v2 = vpop.xlane.xlu0 %666 }
 0x4e6   : > { %3526 = vrcp.f32 %v667_v2 }
 0x4e9   : > { %v670_v7 = vpop.xlane.xlu1 %669  ;;  %v739_v8 = vpop.permute.xlu0 %738 }
 0x4ea   : > { %3528 = vrcp.f32 %v670_v7  ;;  %3260 = vmatpush3.bf16.msra.mxu1 %v739_v8 }
 0x4eb   : > { %3271 = vmatprep.subr.bf16.mxu1 %v3634_v14 }
 0x4ed   : > { %3262 = vmatmul.mubr.msk.bf16.vlgmr.msra.gmra.mrb[16].mxu1 %vm598_vm3, %v688_v11  ;;  %v1083_v12 = vpop.permute.xlu0 %1082  ;;  %v983_v19 = vpop.permute.xlu1 %982 }
 0x4ee   : > { %v1088_v15 = vsel %vm376_vm2, %v1083_v12, 0  ;;  %3272 = vmatpush3.bf16.msra.mxu1 %v833_v1  ;;  %3273 = vmatprep.mubr.msk.bf16.mxu1 %vm3635_vm1, %v3634_v14  ;;  %v988_v21 = vsel %vm376_vm2, %v983_v19, 0 }
 0x4ef   : > { %3302 = vmatpush3.bf16.xpose.msra.mxu0 %v1088_v15  ;;  %3289 = vmatprep.subr.bf16.mxu1 %v3634_v14 }
 0x4f0   : > { %3313 = vmatprep.subr.bf16.mxu0 %v3634_v14  ;;  %v3527_v63 = vpop.eup %3526 }
 0x4f1   : > { %v685_v17 = vmul.f32 %v3527_v63, %v3823_v26 }
 0x4f4   : > { %v3529_v16 = vpop.eup %3528 }
 0x4f5   : > { %v686_v18 = vmul.f32 %v3529_v16, %v3827_v32 }
 0x4f6   : > { %3304 = vmatmul.mubr.msk.bf16.vlgmr.msra.gmra.mrb[24].mxu0 %vm376_vm2, %v3846_v61 }
 0x4f7   : > { %v690_v20 = vpack.c.bf16 %v686_v18, %v685_v17  ;;  %3315 = vmatprep.mubr.msk.bf16.mxu0 %vm3635_vm1, %v3634_v14 }
 0x4f9   : > { %3274 = vmatmul.mubr.msk.bf16.vlgmr.msra.gmra.mrb[20].mxu1 %vm598_vm3, %v690_v20 }
 0x4fa   : > { %3290 = vmatpush3.bf16.xpose.msra.mxu1 %v988_v21  ;;  %3291 = vmatprep.mubr.msk.bf16.mxu1 %vm3635_vm1, %v3634_v14 }
 0x4fb   : > { %3295 = vmatprep.subr.bf16.mxu1 %v3634_v14 }
 0x501   : > { %3292 = vmatmul.mubr.msk.bf16.vlgmr.msra.gmra.mrb[24].mxu1 %vm376_vm2, %v3838_v51 }
 0x502   : > { %3297 = vmatprep.mubr.msk.bf16.mxu1 %vm3635_vm1, %v3634_v14 }
 0x5c0   : > { %v778_v22 = vpop.f32.mrb[16].mxu1 }
 0x5c1   : > { %v3263_v23 = vpop.f32.mrb[17].mxu1 }
 0x5c2   : > { %v781_v24 = vpop.f32.mrb[18].mxu1 }
 0x5c3   : > { %v880_v25 = vpack.c.bf16 %v781_v24, %v778_v22  ;;  %v3264_v26 = vpop.f32.mrb[19].mxu1 }
 0x5c5   : > { %884 = vst.msk [vmem:[#allocation2 + $0x8] sm:$0xff] %vm376_vm2, %v880_v25 }
 0x5c9   : > { %v1124_v27 = vpop.f32.mrb[24].mxu0 }
 0x5ca   : > { %v3305_v28 = vpop.f32.mrb[25].mxu0  ;;  %v1202_v46 = vadd.f32 %v3070_v42, %v1124_v27  ;;  %v3112_v42 = vld [vmem:[%s4302_s5 + $0x28] sm:$0xff]  }
 0x5cb   : > { %v1127_v29 = vpop.f32.mrb[26].mxu0 }
 0x5cc   : > { %v872_v30 = vpop.f32.mrb[20].mxu1  ;;  %v3306_v32 = vpop.f32.mrb[27].mxu0  ;;  %v1203_v54 = vadd.f32 %v3071_v47, %v1127_v29  ;;  %v1218_v55 = vsel %vm598_vm3, %v1202_v46, -inf  ;;  %v3114_v47 = vld [vmem:[%s4302_s5 + $0x38] sm:$0xff]  }
 0x5cd   : > { %v3275_v34 = vpop.f32.mrb[21].mxu1 }
 0x5ce   : > { %v875_v36 = vpop.f32.mrb[22].mxu1  ;;  %v1221_v56 = vsel %vm598_vm3, %v1203_v54, -inf }
 0x5cf   : > { %v882_v38 = vpack.c.bf16 %v875_v36, %v872_v30  ;;  %v3276_v39 = vpop.f32.mrb[23].mxu1 }
 0x5d1   : > { %886 = vst.msk [vmem:[#allocation2 + $0x18] sm:$0xff] %vm376_vm2, %v882_v38 }
 0x5d4   : > { %v1024_v35 = vpop.f32.mrb[24].mxu1 }
 0x5d5   : > { %v1198_v33 = vadd.f32 %v3062_v41, %v1024_v35  ;;  %v3293_v44 = vpop.f32.mrb[25].mxu1  ;;  %v3493_v41 = vld [vmem:[%s4298_s1 + $0x28] sm:$0xff]   ;;  %v3067_v35 = vunpack.c.h.bf16 %v3112_v42 }
 0x5d6   : > { %v1027_v45 = vpop.f32.mrb[26].mxu1 }
 0x5d7   : > { %v1199_v48 = vadd.f32 %v3063_v43, %v1027_v45  ;;  %v3294_v49 = vpop.f32.mrb[27].mxu1  ;;  %v1206_v52 = vsel %vm598_vm3, %v1198_v33, -inf  ;;  %v3066_v43 = vunpack.c.l.bf16 %v3112_v42 }
 0x5d8   : > { %1207 = vmax.xlane.f32.xlu1 %v1206_v52 }
 0x5d9   : > { %v1209_v53 = vsel %vm598_vm3, %v1199_v48, -inf }
 0x5da   : > { %1210 = vmax.xlane.f32.xlu0 %v1209_v53 }
 0x5dc   : > { %1219 = vmax.xlane.f32.xlu1 %v1218_v55  ;;  %v3075_v55 = vunpack.c.h.bf16 %v3114_v47 }
 0x5e0   : > { %1222 = vmax.xlane.f32.xlu1 %v1221_v56 }
 0x5f0   : > { %1032 = vrot.lane.b32.xlu0 %v3836_v50, %s3636_s10 }
 0x5f1   : > { %1132 = vrot.lane.b32.xlu1 %v3844_v60, %s3636_s10 }
 0x665   : > { %v1208_v57 = vpop.xlane.xlu1 %1207 }
 0x666   : > { %v1230_v58 = vsub.f32 %v1198_v33, %v1208_v57 }
 0x667   : > { %v1211_v59 = vpop.xlane.xlu0 %1210 }
 0x668   : > { %v1238_v62 = vmul.f32 1.442695, %v1230_v58  ;;  %v1231_v31 = vsub.f32 %v1199_v48, %v1211_v59 }
 0x669   : > { %v1220_v0 = vpop.xlane.xlu1 %1219 }
 0x66a   : > { %3530 = vpow2.f32 %v1238_v62  ;;  %v1240_v1 = vmul.f32 1.442695, %v1231_v31  ;;  %v1234_v2 = vsub.f32 %v1202_v46, %v1220_v0 }
 0x66b   : > { %v1033_v3 = vpop.permute.xlu0 %1032 }
 0x66c   : > { %3532 = vpow2.f32 %v1240_v1  ;;  %v1246_v4 = vmul.f32 1.442695, %v1234_v2  ;;  %v1038_v6 = vsel %vm376_vm2, %v1033_v3, 0 }
 0x66d   : > { %v1223_v7 = vpop.xlane.xlu1 %1222  ;;  %3296 = vmatpush3.bf16.xpose.msra.mxu1 %v1038_v6 }
 0x66e   : > { %3534 = vpow2.f32 %v1246_v4  ;;  %v1235_v8 = vsub.f32 %v1203_v54, %v1223_v7  ;;  %3307 = vmatprep.subr.bf16.mxu1 %v3634_v14  ;;  %v3074_v54 = vunpack.c.l.bf16 %v3114_v47 }
 0x670   : > { %v1248_v11 = vmul.f32 1.442695, %v1235_v8 }
 0x671   : > { %v1133_v12 = vpop.permute.xlu1 %1132 }
 0x672   : > { %3536 = vpow2.f32 %v1248_v11  ;;  %v1138_v63 = vsel %vm376_vm2, %v1133_v12, 0 }
 0x674   : > { %v3531_v15 = vpop.eup %3530  ;;  %3298 = vmatmul.mubr.msk.bf16.vlgmr.msra.gmra.mrb[28].mxu1 %vm376_vm2, %v3836_v50 }
 0x675   : > { %3308 = vmatpush3.bf16.xpose.msra.mxu1 %v1138_v63  ;;  %v1254_v16 = vsel %vm598_vm3, %v3531_v15, 0.0  ;;  %3309 = vmatprep.mubr.msk.bf16.mxu1 %vm3635_vm1, %v3634_v14 }
 0x676   : > { %v3533_v17 = vpop.eup %3532  ;;  %1255 = vadd.xlane.f32.xlu0 %v1254_v16  ;;  %3319 = vmatprep.subr.bf16.mxu1 %v3634_v14 }
 0x677   : > { %v1257_v18 = vsel %vm598_vm3, %v3533_v17, 0.0 }
 0x678   : > { %v3535_v19 = vpop.eup %3534  ;;  %1258 = vadd.xlane.f32.xlu1 %v1257_v18 }
 0x679   : > { %v1266_v20 = vsel %vm598_vm3, %v3535_v19, 0.0 }
 0x67a   : > { %1267 = vadd.xlane.f32.xlu0 %v1266_v20 }
 0x67c   : > { %v3537_v21 = vpop.eup %3536  ;;  %3310 = vmatmul.mubr.msk.bf16.vlgmr.msra.gmra.mrb[32].mxu1 %vm376_vm2, %v3844_v60 }
 0x67d   : > { %v1269_v22 = vsel %vm598_vm3, %v3537_v21, 0.0  ;;  %3321 = vmatprep.mubr.msk.bf16.mxu1 %vm3635_vm1, %v3634_v14 }
 0x67e   : > { %1270 = vadd.xlane.f32.xlu0 %v1269_v22 }
 0x689   : > { %1392 = vrot.lane.b32.xlu1 %v3846_v61, %s3637_s15 }
 0x694   : > { %1298 = vrot.lane.b32.xlu0 %v3838_v51, %s3637_s15  ;;  %v3492_v51 = vld [vmem:[%s4298_s1 + $0x20] sm:$0xff]  }
 0x703   : > { %v1256_v23 = vpop.xlane.xlu0 %1255 }
 0x704   : > { %3538 = vrcp.f32 %v1256_v23 }
 0x705   : > { %v1259_v24 = vpop.xlane.xlu1 %1258 }
 0x706   : > { %3540 = vrcp.f32 %v1259_v24 }
 0x707   : > { %v1268_v25 = vpop.xlane.xlu0 %1267 }
 0x708   : > { %3542 = vrcp.f32 %v1268_v25 }
 0x709   : > { %v1393_v36 = vpop.permute.xlu1 %1392 }
 0x70b   : > { %v1271_v26 = vpop.xlane.xlu0 %1270 }
 0x70c   : > { %3544 = vrcp.f32 %v1271_v26 }
 0x70e   : > { %v3539_v27 = vpop.eup %3538 }
 0x70f   : > { %v1299_v28 = vpop.permute.xlu0 %1298  ;;  %v1286_v30 = vmul.f32 %v3539_v27, %v3531_v15 }
 0x710   : > { %v3541_v29 = vpop.eup %3540  ;;  %3314 = vmatpush3.bf16.msra.mxu0 %v1299_v28 }
 0x711   : > { %v1287_v32 = vmul.f32 %v3541_v29, %v3533_v17  ;;  %3325 = vmatprep.subr.bf16.mxu0 %v3634_v14 }
 0x712   : > { %v3543_v34 = vpop.eup %3542 }
 0x713   : > { %v1294_v61 = vpack.c.bf16 %v1287_v32, %v1286_v30  ;;  %v1290_v39 = vmul.f32 %v3543_v34, %v3535_v19 }
 0x715   : > { %3316 = vmatmul.mubr.msk.bf16.vlgmr.msra.gmra.mrb[28].mxu0 %vm598_vm3, %v1294_v61  ;;  %v2984_v61 = vld [vmem:[%s4299_s2 + $0x2] ss:$0 sm:$0xff] }
 0x716   : > { %v3545_v37 = vpop.eup %3544  ;;  %3326 = vmatpush3.bf16.msra.mxu0 %v1393_v36  ;;  %3327 = vmatprep.mubr.msk.bf16.mxu0 %vm3635_vm1, %v3634_v14 }
 0x717   : > { %v1291_v38 = vmul.f32 %v3545_v37, %v3537_v21  ;;  %3337 = vmatprep.subr.bf16.mxu0 %v3492_v51 }
 0x719   : > { %v1296_v40 = vpack.c.bf16 %v1291_v38, %v1290_v39 }
 0x71d   : > { %3328 = vmatmul.mubr.msk.bf16.vlgmr.msra.gmra.mrb[32].mxu0 %vm598_vm3, %v1296_v40 }
 0x71e   : > { %3338 = vmatpush3.bf16.msra.mxu0 %v3492_v51  ;;  %3341 = vmatprep.mubr.msk.bf16.mxu0 %vm291_vm0, %v3698_v5 }
 0x71f   : > { %3339 = vmatprep.subr.bf16.mxu0 %v3493_v41 }
 0x722   : > { %3340 = vmatpush3.bf16.msra.mxu0 %v3493_v41 }
 0x723   : > { %3361 = vmatprep.subr.bf16.mxu0 %v3634_v14 }
 0x725   : > { %3342 = vmatmul.mubr.msk.bf16.vlgmr.msra.gmra.mrb[36].mxu0 %vm291_vm0, %v3700_v9 }
 0x726   : > { %3345 = vmatprep.mubr.msk.bf16.mxu0 %vm291_vm0, %v3702_v10 }
 0x72d   : > { %3346 = vmatmul.mubr.msk.bf16.gmra.mrb[40].mxu0 %vm291_vm0, %v3706_v13 }
 0x72e   : > { %3363 = vmatprep.mubr.msk.bf16.mxu0 %vm3635_vm1, %v3634_v14 }
 0x747   : > { %v1074_v33 = vpop.f32.mrb[28].mxu1 }
 0x748   : > { %v1200_v44 = vadd.f32 %v3066_v43, %v1074_v33  ;;  %v3299_v45 = vpop.f32.mrb[29].mxu1 }
 0x749   : > { %v1077_v46 = vpop.f32.mrb[30].mxu1 }
 0x74a   : > { %v1201_v48 = vadd.f32 %v3067_v35, %v1077_v46  ;;  %v3300_v49 = vpop.f32.mrb[31].mxu1  ;;  %v1212_v52 = vsel %vm598_vm3, %v1200_v44, -inf }
 0x74b   : > { %1213 = vmax.xlane.f32.xlu1 %v1212_v52 }
 0x74c   : > { %v1215_v53 = vsel %vm598_vm3, %v1201_v48, -inf }
 0x74d   : > { %1216 = vmax.xlane.f32.xlu0 %v1215_v53 }
 0x74f   : > { %v1174_v56 = vpop.f32.mrb[32].mxu1 }
 0x750   : > { %v1204_v57 = vadd.f32 %v3074_v54, %v1174_v56  ;;  %v3311_v58 = vpop.f32.mrb[33].mxu1 }
 0x751   : > { %v1177_v59 = vpop.f32.mrb[34].mxu1 }
 0x752   : > { %v3940_v62 = vadd.f32 %v3075_v55, %v1177_v59  ;;  %v3312_v31 = vpop.f32.mrb[35].mxu1  ;;  %v1224_v0 = vsel %vm598_vm3, %v1204_v57, -inf }
 0x753   : > { %1225 = vmax.xlane.f32.xlu0 %v1224_v0 }
 0x754   : > { %v1227_v1 = vsel %vm598_vm3, %v3940_v62, -inf }
 0x755   : > { %1228 = vmax.xlane.f32.xlu1 %v1227_v1 }
 0x7d8   : > { %v1214_v2 = vpop.xlane.xlu1 %1213 }
 0x7d9   : > { %v1232_v3 = vsub.f32 %v1200_v44, %v1214_v2 }
 0x7da   : > { %v1217_v4 = vpop.xlane.xlu0 %1216 }
 0x7db   : > { %v1242_v6 = vmul.f32 1.442695, %v1232_v3  ;;  %v1233_v7 = vsub.f32 %v1201_v48, %v1217_v4 }
 0x7dd   : > { %3546 = vpow2.f32 %v1242_v6  ;;  %v1244_v8 = vmul.f32 1.442695, %v1233_v7 }
 0x7df   : > { %3548 = vpow2.f32 %v1244_v8 }
 0x7e0   : > { %v1226_v11 = vpop.xlane.xlu0 %1225 }
 0x7e1   : > { %v1236_v12 = vsub.f32 %v1204_v57, %v1226_v11 }
 0x7e2   : > { %v1229_v53 = vpop.xlane.xlu1 %1228 }
 0x7e3   : > { %v1250_v15 = vmul.f32 1.442695, %v1236_v12 }
 0x7e5   : > { %3550 = vpow2.f32 %v1250_v15 }
 0x7e7   : > { %v3547_v63 = vpop.eup %3546 }
 0x7e8   : > { %v3945_v16 = vpop.f32.mrb[28].mxu0  ;;  %v1260_v17 = vsel %vm598_vm3, %v3547_v63, 0.0 }
 0x7e9   : > { %v3549_v18 = vpop.eup %3548  ;;  %1261 = vadd.xlane.f32.xlu0 %v1260_v17  ;;  %v3317_v19 = vpop.f32.mrb[29].mxu0 }
 0x7ea   : > { %v3948_v20 = vpop.f32.mrb[30].mxu0  ;;  %v1263_v21 = vsel %vm598_vm3, %v3549_v18, 0.0 }
 0x7eb   : > { %v1486_v22 = vpack.c.bf16 %v3948_v20, %v3945_v16  ;;  %v3318_v23 = vpop.f32.mrb[31].mxu0  ;;  %1264 = vadd.xlane.f32.xlu1 %v1263_v21 }
 0x7ef   : > { %v3953_v24 = vpop.eup %3550 }
 0x7f0   : > { %v3955_v25 = vpop.f32.mrb[32].mxu0  ;;  %v1272_v26 = vsel %vm598_vm3, %v3953_v24, 0.0 }
 0x7f1   : > { %v3329_v27 = vpop.f32.mrb[33].mxu0  ;;  %1273 = vadd.xlane.f32.xlu0 %v1272_v26 }
 0x7f2   : > { %v3959_v28 = vpop.f32.mrb[34].mxu0 }
 0x7f3   : > { %v1488_v29 = vpack.c.bf16 %v3959_v28, %v3955_v25  ;;  %v3330_v30 = vpop.f32.mrb[35].mxu0 }
 0x7f8   : > { %v3343_v32 = vpop.f32.mrb[36].mxu0 }
 0x7f9   : > { %v1579_v51 = vadd.f32 %v3343_v32, %v2984_v61  ;;  %v1570_v34 = vpop.f32.mrb[37].mxu0 }
 0x7fa   : > { %v1571_v36 = vadd.f32 %v2984_v61, %v1570_v34  ;;  %v3344_v37 = vpop.f32.mrb[38].mxu0 }
 0x7fb   : > { %v1582_v38 = vadd.f32 %v3344_v37, %v2984_v61  ;;  %v1573_v39 = vpop.f32.mrb[39].mxu0  ;;  %v3115_v37 = vld [vmem:[%s4302_s5 + $0x40] sm:$0xff]  }
 0x7fc   : > { %1439 = vrot.lane.b32.xlu1 %v3844_v60, %s3637_s15  ;;  %v1574_v40 = vadd.f32 %v2984_v61, %v1573_v39  ;;  %v1237_v60 = vsub.f32 %v3940_v62, %v1229_v53 }
 0x7fd   : > { %v3968_v41 = vpack.c.bf16 %v1582_v38, %v1579_v51 }
 0x7fe   : > { %v3970_v42 = vpack.c.bf16 %v1574_v40, %v1571_v36  ;;  %v1252_v54 = vmul.f32 1.442695, %v1237_v60  ;;  %v3117_v40 = vld [vmem:[%s4302_s5 + $0x50] sm:$0xff]  }
 0x7ff   : > { %v3087_v53 = vunpack.c.h.bf16 %v3117_v40 }
 0x800   : > { %v3347_v43 = vpop.f32.mrb[40].mxu0  ;;  %3552 = vpow2.f32 %v1252_v54 }
 0x801   : > { %v1595_v35 = vadd.f32 %v3347_v43, %v2984_v61  ;;  %v1586_v33 = vpop.f32.mrb[41].mxu0  ;;  %v3078_v43 = vunpack.c.l.bf16 %v3115_v37 }
 0x802   : > { %v1587_v44 = vadd.f32 %v2984_v61, %v1586_v33  ;;  %v3348_v45 = vpop.f32.mrb[42].mxu0  ;;  %v3079_v33 = vunpack.c.h.bf16 %v3115_v37 }
 0x803   : > { %v1598_v46 = vadd.f32 %v3348_v45, %v2984_v61  ;;  %v1589_v47 = vpop.f32.mrb[43].mxu0 }
 0x804   : > { %v1590_v48 = vadd.f32 %v2984_v61, %v1589_v47 }
 0x805   : > { %v3972_v49 = vpack.c.bf16 %v1598_v46, %v1595_v35  ;;  %v3086_v35 = vunpack.c.l.bf16 %v3117_v40 }
 0x806   : > { %v3974_v52 = vpack.c.bf16 %v1590_v48, %v1587_v44 }
 0x807   : > { %1345 = vrot.lane.b32.xlu0 %v3836_v50, %s3637_s15 }
 0x80a   : > { %v3553_v55 = vpop.eup %3552 }
 0x80b   : > { %1706 = vrot.lane.b32.xlu0 %v3974_v52, %s3636_s10  ;;  %v1275_v56 = vsel %vm598_vm3, %v3553_v55, 0.0 }
 0x820   : > { %1276 = vadd.xlane.f32.xlu1 %v1275_v56 }
 0x831   : > { %1606 = vrot.lane.b32.xlu1 %v3970_v42, %s3636_s10 }
 0x876   : > { %v1262_v57 = vpop.xlane.xlu0 %1261 }
 0x877   : > { %3554 = vrcp.f32 %v1262_v57 }
 0x878   : > { %v1265_v58 = vpop.xlane.xlu1 %1264 }
 0x879   : > { %3556 = vrcp.f32 %v1265_v58 }
 0x87c   : > { %v1440_v6 = vpop.permute.xlu1 %1439 }
 0x87e   : > { %v1274_v59 = vpop.xlane.xlu0 %1273 }
 0x87f   : > { %3558 = vrcp.f32 %v1274_v59 }
 0x881   : > { %v3555_v50 = vpop.eup %3554 }
 0x882   : > { %v1346_v31 = vpop.permute.xlu0 %1345  ;;  %v1288_v0 = vmul.f32 %v3555_v50, %v3547_v63 }
 0x883   : > { %v3557_v62 = vpop.eup %3556  ;;  %3320 = vmatpush3.bf16.msra.mxu1 %v1346_v31 }
 0x884   : > { %v1289_v1 = vmul.f32 %v3557_v62, %v3549_v18  ;;  %3331 = vmatprep.subr.bf16.mxu1 %v3634_v14 }
 0x886   : > { %v1707_v2 = vpop.permute.xlu0 %1706  ;;  %v1295_v3 = vpack.c.bf16 %v1289_v1, %v1288_v0 }
 0x887   : > { %v1712_v4 = vsel %vm376_vm2, %v1707_v2, 0 }
 0x888   : > { %3322 = vmatmul.mubr.msk.bf16.vlgmr.msra.gmra.mrb[36].mxu1 %vm598_vm3, %v1295_v3  ;;  %3362 = vmatpush3.bf16.xpose.msra.mxu0 %v1712_v4 }
 0x889   : > { %3332 = vmatpush3.bf16.msra.mxu1 %v1440_v6  ;;  %3333 = vmatprep.mubr.msk.bf16.mxu1 %vm3635_vm1, %v3634_v14  ;;  %v3559_v8 = vpop.eup %3558 }
 0x88a   : > { %3349 = vmatprep.subr.bf16.mxu1 %v3634_v14  ;;  %3373 = vmatprep.subr.bf16.mxu0 %v3634_v14  ;;  %v1292_v12 = vmul.f32 %v3559_v8, %v3953_v24 }
 0x88f   : > { %3364 = vmatmul.mubr.msk.bf16.vlgmr.msra.gmra.mrb[44].mxu0 %vm376_vm2, %v3974_v52 }
 0x890   : > { %3375 = vmatprep.mubr.msk.bf16.mxu0 %vm3635_vm1, %v3634_v14 }
 0x8ad   : > { %v1277_v7 = vpop.xlane.xlu1 %1276 }
 0x8ae   : > { %3560 = vrcp.f32 %v1277_v7 }
 0x8b1   : > { %v1607_v63 = vpop.permute.xlu1 %1606 }
 0x8b2   : > { %v1612_v18 = vsel %vm376_vm2, %v1607_v63, 0 }
 0x8b8   : > { %v3561_v11 = vpop.eup %3560 }
 0x8b9   : > { %v1293_v15 = vmul.f32 %v3561_v11, %v3553_v55 }
 0x8bb   : > { %v1297_v17 = vpack.c.bf16 %v1293_v15, %v1292_v12 }
 0x8bd   : > { %3334 = vmatmul.mubr.msk.bf16.vlgmr.msra.gmra.mrb[40].mxu1 %vm598_vm3, %v1297_v17 }
 0x8be   : > { %3350 = vmatpush3.bf16.xpose.msra.mxu1 %v1612_v18  ;;  %3351 = vmatprep.mubr.msk.bf16.mxu1 %vm3635_vm1, %v3634_v14 }
 0x8bf   : > { %3355 = vmatprep.subr.bf16.mxu1 %v3634_v14 }
 0x8c5   : > { %3352 = vmatmul.mubr.msk.bf16.vlgmr.msra.gmra.mrb[44].mxu1 %vm376_vm2, %v3970_v42 }
 0x8c6   : > { %3357 = vmatprep.mubr.msk.bf16.mxu1 %vm3635_vm1, %v3634_v14 }
 0x95b   : > { %v4005_v19 = vpop.f32.mrb[36].mxu1 }
 0x95c   : > { %v3323_v21 = vpop.f32.mrb[37].mxu1 }
 0x95d   : > { %v4007_v23 = vpop.f32.mrb[38].mxu1 }
 0x95e   : > { %v1487_v24 = vpack.c.bf16 %v4007_v23, %v4005_v19  ;;  %v3324_v26 = vpop.f32.mrb[39].mxu1 }
 0x962   : > { %v1748_v27 = vpop.f32.mrb[44].mxu0 }
 0x963   : > { %v3365_v30 = vpop.f32.mrb[45].mxu0  ;;  %v1826_v48 = vadd.f32 %v3086_v35, %v1748_v27 }
 0x964   : > { %v1751_v32 = vpop.f32.mrb[46].mxu0 }
 0x965   : > { %v3366_v61 = vpop.f32.mrb[47].mxu0  ;;  %v1827_v57 = vadd.f32 %v3087_v53, %v1751_v32  ;;  %v1842_v58 = vsel %vm598_vm3, %v1826_v48, -inf }
 0x967   : > { %v1845_v59 = vsel %vm598_vm3, %v1827_v57, -inf }
 0x990   : > { %v4011_v51 = vpop.f32.mrb[40].mxu1 }
 0x991   : > { %v3335_v34 = vpop.f32.mrb[41].mxu1 }
 0x992   : > { %v4013_v36 = vpop.f32.mrb[42].mxu1 }
 0x993   : > { %v1489_v38 = vpack.c.bf16 %v4013_v36, %v4011_v51  ;;  %v3336_v39 = vpop.f32.mrb[43].mxu1 }
 0x998   : > { %v1648_v44 = vpop.f32.mrb[44].mxu1 }
 0x999   : > { %v1822_v45 = vadd.f32 %v3078_v43, %v1648_v44  ;;  %v3353_v46 = vpop.f32.mrb[45].mxu1 }
 0x99a   : > { %v1651_v47 = vpop.f32.mrb[46].mxu1 }
 0x99b   : > { %v1823_v60 = vadd.f32 %v3079_v33, %v1651_v47  ;;  %v3354_v54 = vpop.f32.mrb[47].mxu1  ;;  %v1830_v55 = vsel %vm598_vm3, %v1822_v45, -inf }
 0x99c   : > { %1831 = vmax.xlane.f32.xlu1 %v1830_v55 }
 0x99d   : > { %v1833_v56 = vsel %vm598_vm3, %v1823_v60, -inf }
 0x99e   : > { %1834 = vmax.xlane.f32.xlu0 %v1833_v56  ;;  %v3495_v56 = vld [vmem:[%s4298_s1 + $0x38] sm:$0xff]  }
 0x9a0   : > { %1843 = vmax.xlane.f32.xlu1 %v1842_v58 }
 0x9a4   : > { %1846 = vmax.xlane.f32.xlu1 %v1845_v59 }
 0x9b4   : > { %1656 = vrot.lane.b32.xlu0 %v3968_v41, %s3636_s10 }
 0x9b5   : > { %1756 = vrot.lane.b32.xlu1 %v3972_v49, %s3636_s10 }
 0xa29   : > { %v1832_v50 = vpop.xlane.xlu1 %1831 }
 0xa2a   : > { %v1854_v31 = vsub.f32 %v1822_v45, %v1832_v50 }
 0xa2b   : > { %v1835_v62 = vpop.xlane.xlu0 %1834 }
 0xa2c   : > { %v1862_v0 = vmul.f32 1.442695, %v1854_v31  ;;  %v1855_v1 = vsub.f32 %v1823_v60, %v1835_v62 }
 0xa2d   : > { %v1844_v2 = vpop.xlane.xlu1 %1843 }
 0xa2e   : > { %3562 = vpow2.f32 %v1862_v0  ;;  %v1864_v3 = vmul.f32 1.442695, %v1855_v1  ;;  %v1858_v4 = vsub.f32 %v1826_v48, %v1844_v2 }
 0xa2f   : > { %v1657_v6 = vpop.permute.xlu0 %1656 }
 0xa30   : > { %3564 = vpow2.f32 %v1864_v3  ;;  %v1870_v7 = vmul.f32 1.442695, %v1858_v4  ;;  %v1662_v8 = vsel %vm376_vm2, %v1657_v6, 0 }
 0xa31   : > { %v1847_v11 = vpop.xlane.xlu1 %1846  ;;  %3356 = vmatpush3.bf16.xpose.msra.mxu1 %v1662_v8 }
 0xa32   : > { %3566 = vpow2.f32 %v1870_v7  ;;  %v1859_v12 = vsub.f32 %v1827_v57, %v1847_v11  ;;  %3367 = vmatprep.subr.bf16.mxu1 %v3634_v14 }
 0xa34   : > { %v1872_v15 = vmul.f32 1.442695, %v1859_v12 }
 0xa35   : > { %v1757_v63 = vpop.permute.xlu1 %1756 }
 0xa36   : > { %3568 = vpow2.f32 %v1872_v15  ;;  %v1762_v18 = vsel %vm376_vm2, %v1757_v63, 0 }
 0xa38   : > { %v3563_v17 = vpop.eup %3562  ;;  %3358 = vmatmul.mubr.msk.bf16.vlgmr.msra.gmra.mrb[48].mxu1 %vm376_vm2, %v3968_v41 }
 0xa39   : > { %3368 = vmatpush3.bf16.xpose.msra.mxu1 %v1762_v18  ;;  %v1878_v21 = vsel %vm598_vm3, %v3563_v17, 0.0  ;;  %3369 = vmatprep.mubr.msk.bf16.mxu1 %vm3635_vm1, %v3634_v14 }
 0xa3a   : > { %v3565_v26 = vpop.eup %3564  ;;  %1879 = vadd.xlane.f32.xlu0 %v1878_v21  ;;  %3379 = vmatprep.subr.bf16.mxu1 %v3634_v14 }
 0xa3b   : > { %v1881_v27 = vsel %vm598_vm3, %v3565_v26, 0.0 }
 0xa3c   : > { %v3567_v30 = vpop.eup %3566  ;;  %1882 = vadd.xlane.f32.xlu1 %v1881_v27 }
 0xa3d   : > { %v1890_v32 = vsel %vm598_vm3, %v3567_v30, 0.0 }
 0xa3e   : > { %1891 = vadd.xlane.f32.xlu0 %v1890_v32 }
 0xa40   : > { %v3569_v61 = vpop.eup %3568  ;;  %3370 = vmatmul.mubr.msk.bf16.vlgmr.msra.gmra.mrb[52].mxu1 %vm376_vm2, %v3972_v49 }
 0xa41   : > { %v1893_v34 = vsel %vm598_vm3, %v3569_v61, 0.0  ;;  %3381 = vmatprep.mubr.msk.bf16.mxu1 %vm3635_vm1, %v3634_v14 }
 0xa42   : > { %1894 = vadd.xlane.f32.xlu0 %v1893_v34 }
 0xa4d   : > { %2016 = vrot.lane.b32.xlu1 %v3974_v52, %s3637_s15 }
 0xa58   : > { %1922 = vrot.lane.b32.xlu0 %v3970_v42, %s3637_s15  ;;  %v3494_v42 = vld [vmem:[%s4298_s1 + $0x30] sm:$0xff]  }
 0xac7   : > { %v1880_v37 = vpop.xlane.xlu0 %1879 }
 0xac8   : > { %3570 = vrcp.f32 %v1880_v37 }
 0xac9   : > { %v1883_v39 = vpop.xlane.xlu1 %1882 }
 0xaca   : > { %3572 = vrcp.f32 %v1883_v39 }
 0xacb   : > { %v1892_v40 = vpop.xlane.xlu0 %1891 }
 0xacc   : > { %3574 = vrcp.f32 %v1892_v40 }
 0xacd   : > { %v2017_v48 = vpop.permute.xlu1 %2016 }
 0xacf   : > { %v1895_v43 = vpop.xlane.xlu0 %1894 }
 0xad0   : > { %3576 = vrcp.f32 %v1895_v43 }
 0xad2   : > { %v3571_v35 = vpop.eup %3570 }
 0xad3   : > { %v1923_v33 = vpop.permute.xlu0 %1922  ;;  %v1910_v45 = vmul.f32 %v3571_v35, %v3563_v17 }
 0xad4   : > { %v3573_v44 = vpop.eup %3572  ;;  %3374 = vmatpush3.bf16.msra.mxu0 %v1923_v33 }
 0xad5   : > { %v1911_v46 = vmul.f32 %v3573_v44, %v3565_v26  ;;  %3385 = vmatprep.subr.bf16.mxu0 %v3634_v14 }
 0xad6   : > { %v3575_v47 = vpop.eup %3574 }
 0xad7   : > { %v1918_v52 = vpack.c.bf16 %v1911_v46, %v1910_v45  ;;  %v1914_v54 = vmul.f32 %v3575_v47, %v3567_v30 }
 0xad9   : > { %3376 = vmatmul.mubr.msk.bf16.vlgmr.msra.gmra.mrb[48].mxu0 %vm598_vm3, %v1918_v52 }
 0xada   : > { %v3577_v53 = vpop.eup %3576  ;;  %3386 = vmatpush3.bf16.msra.mxu0 %v2017_v48  ;;  %3387 = vmatprep.mubr.msk.bf16.mxu0 %vm3635_vm1, %v3634_v14 }
 0xadb   : > { %v1915_v60 = vmul.f32 %v3577_v53, %v3569_v61  ;;  %3397 = vmatprep.subr.bf16.mxu0 %v3494_v42 }
 0xadd   : > { %v1920_v55 = vpack.c.bf16 %v1915_v60, %v1914_v54 }
 0xae1   : > { %3388 = vmatmul.mubr.msk.bf16.vlgmr.msra.gmra.mrb[52].mxu0 %vm598_vm3, %v1920_v55  ;;  %v3012_v55 = vld [vmem:[%s4299_s2 + $0x3] ss:$0 sm:$0xff] }
 0xae2   : > { %3398 = vmatpush3.bf16.msra.mxu0 %v3494_v42  ;;  %3401 = vmatprep.mubr.msk.bf16.mxu0 %vm291_vm0, %v3698_v5  ;;  %v3116_v5 = vld [vmem:[%s4302_s5 + $0x48] sm:$0xff]  }
 0xae3   : > { %3399 = vmatprep.subr.bf16.mxu0 %v3495_v56  ;;  %v3082_v57 = vunpack.c.l.bf16 %v3116_v5  ;;  %v3083_v58 = vunpack.c.h.bf16 %v3116_v5 }
 0xae6   : > { %3400 = vmatpush3.bf16.msra.mxu0 %v3495_v56 }
 0xae7   : > { %3421 = vmatprep.subr.bf16.mxu0 %v3634_v14 }
 0xae9   : > { %3402 = vmatmul.mubr.msk.bf16.vlgmr.msra.gmra.mrb[56].mxu0 %vm291_vm0, %v3700_v9  ;;  %v3118_v9 = vld [vmem:[%s4302_s5 + $0x58] sm:$0xff]  }
 0xaea   : > { %3405 = vmatprep.mubr.msk.bf16.mxu0 %vm291_vm0, %v3702_v10  ;;  %v3090_v2 = vunpack.c.l.bf16 %v3118_v9  ;;  %v3091_v3 = vunpack.c.h.bf16 %v3118_v9 }
 0xaf1   : > { %3406 = vmatmul.mubr.msk.bf16.gmra.mrb[60].mxu0 %vm291_vm0, %v3706_v13 }
 0xaf2   : > { %3423 = vmatprep.mubr.msk.bf16.mxu0 %vm3635_vm1, %v3634_v14 }
 0xb0b   : > { %v1698_v59 = vpop.f32.mrb[48].mxu1 }
 0xb0c   : > { %v1824_v50 = vadd.f32 %v3082_v57, %v1698_v59  ;;  %v3359_v31 = vpop.f32.mrb[49].mxu1 }
 0xb0d   : > { %v1701_v62 = vpop.f32.mrb[50].mxu1 }
 0xb0e   : > { %v1825_v10 = vadd.f32 %v3083_v58, %v1701_v62  ;;  %v3360_v0 = vpop.f32.mrb[51].mxu1  ;;  %v1836_v13 = vsel %vm598_vm3, %v1824_v50, -inf }
 0xb0f   : > { %1837 = vmax.xlane.f32.xlu1 %v1836_v13 }
 0xb10   : > { %v1839_v1 = vsel %vm598_vm3, %v1825_v10, -inf }
 0xb11   : > { %1840 = vmax.xlane.f32.xlu0 %v1839_v1 }
 0xb13   : > { %v1798_v4 = vpop.f32.mrb[52].mxu1 }
 0xb14   : > { %v1828_v6 = vadd.f32 %v3090_v2, %v1798_v4  ;;  %v3371_v7 = vpop.f32.mrb[53].mxu1 }
 0xb15   : > { %v1801_v8 = vpop.f32.mrb[54].mxu1 }
 0xb16   : > { %v4081_v11 = vadd.f32 %v3091_v3, %v1801_v8  ;;  %v3372_v12 = vpop.f32.mrb[55].mxu1  ;;  %v1848_v15 = vsel %vm598_vm3, %v1828_v6, -inf }
 0xb17   : > { %1849 = vmax.xlane.f32.xlu0 %v1848_v15 }
 0xb18   : > { %v1851_v63 = vsel %vm598_vm3, %v4081_v11, -inf }
 0xb19   : > { %1852 = vmax.xlane.f32.xlu1 %v1851_v63 }
 0xb9c   : > { %v1838_v17 = vpop.xlane.xlu1 %1837 }
 0xb9d   : > { %v1856_v18 = vsub.f32 %v1824_v50, %v1838_v17 }
 0xb9e   : > { %v1841_v21 = vpop.xlane.xlu0 %1840 }
 0xb9f   : > { %v1866_v26 = vmul.f32 1.442695, %v1856_v18  ;;  %v1857_v27 = vsub.f32 %v1825_v10, %v1841_v21 }
 0xba1   : > { %3578 = vpow2.f32 %v1866_v26  ;;  %v1868_v30 = vmul.f32 1.442695, %v1857_v27 }
 0xba3   : > { %3580 = vpow2.f32 %v1868_v30 }
 0xba4   : > { %v1850_v32 = vpop.xlane.xlu0 %1849 }
 0xba5   : > { %v1860_v61 = vsub.f32 %v1828_v6, %v1850_v32 }
 0xba6   : > { %v1853_v15 = vpop.xlane.xlu1 %1852 }
 0xba7   : > { %v1874_v34 = vmul.f32 1.442695, %v1860_v61 }
 0xba9   : > { %3582 = vpow2.f32 %v1874_v34 }
 0xbab   : > { %v3579_v37 = vpop.eup %3578 }
 0xbac   : > { %v4086_v39 = vpop.f32.mrb[48].mxu0  ;;  %v1884_v40 = vsel %vm598_vm3, %v3579_v37, 0.0 }
 0xbad   : > { %v3581_v43 = vpop.eup %3580  ;;  %1885 = vadd.xlane.f32.xlu0 %v1884_v40  ;;  %v3377_v35 = vpop.f32.mrb[49].mxu0 }
 0xbae   : > { %v4089_v33 = vpop.f32.mrb[50].mxu0  ;;  %v1887_v44 = vsel %vm598_vm3, %v3581_v43, 0.0 }
 0xbaf   : > { %v2110_v45 = vpack.c.bf16 %v4089_v33, %v4086_v39  ;;  %v3378_v46 = vpop.f32.mrb[51].mxu0  ;;  %1888 = vadd.xlane.f32.xlu1 %v1887_v44 }
 0xbb3   : > { %v4094_v52 = vpop.eup %3582 }
 0xbb4   : > { %v4096_v42 = vpop.f32.mrb[52].mxu0  ;;  %v1896_v47 = vsel %vm598_vm3, %v4094_v52, 0.0 }
 0xbb5   : > { %v3389_v48 = vpop.f32.mrb[53].mxu0  ;;  %1897 = vadd.xlane.f32.xlu0 %v1896_v47 }
 0xbb6   : > { %v4100_v53 = vpop.f32.mrb[54].mxu0 }
 0xbb7   : > { %v2112_v60 = vpack.c.bf16 %v4100_v53, %v4096_v42  ;;  %v3390_v54 = vpop.f32.mrb[55].mxu0 }
 0xbbc   : > { %v3403_v56 = vpop.f32.mrb[56].mxu0 }
 0xbbd   : > { %v2203_v5 = vadd.f32 %v3403_v56, %v3012_v55  ;;  %v2194_v57 = vpop.f32.mrb[57].mxu0 }
 0xbbe   : > { %v2195_v58 = vadd.f32 %v3012_v55, %v2194_v57  ;;  %v3404_v59 = vpop.f32.mrb[58].mxu0 }
 0xbbf   : > { %v2206_v50 = vadd.f32 %v3404_v59, %v3012_v55  ;;  %v2197_v31 = vpop.f32.mrb[59].mxu0 }
 0xbc0   : > { %2063 = vrot.lane.b32.xlu1 %v3972_v49, %s3637_s15  ;;  %v2198_v62 = vadd.f32 %v3012_v55, %v2197_v31  ;;  %v1861_v49 = vsub.f32 %v4081_v11, %v1853_v15 }
 0xbc1   : > { %v4109_v9 = vpack.c.bf16 %v2206_v50, %v2203_v5 }
 0xbc2   : > { %v4111_v10 = vpack.c.bf16 %v2198_v62, %v2195_v58  ;;  %v1876_v63 = vmul.f32 1.442695, %v1861_v49 }
 0xbc4   : > { %v3407_v0 = vpop.f32.mrb[60].mxu0  ;;  %3584 = vpow2.f32 %v1876_v63 }
 0xbc5   : > { %v2219_v13 = vadd.f32 %v3407_v0, %v3012_v55  ;;  %v2210_v1 = vpop.f32.mrb[61].mxu0 }
 0xbc6   : > { %v2211_v2 = vadd.f32 %v3012_v55, %v2210_v1  ;;  %v3408_v3 = vpop.f32.mrb[62].mxu0 }
 0xbc7   : > { %v2222_v4 = vadd.f32 %v3408_v3, %v3012_v55  ;;  %v2213_v6 = vpop.f32.mrb[63].mxu0 }
 0xbc8   : > { %v2214_v7 = vadd.f32 %v3012_v55, %v2213_v6  ;;  %v3119_v6 = vld [vmem:[%s4302_s5 + $0x60] sm:$0xff]  }
 0xbc9   : > { %v4113_v8 = vpack.c.bf16 %v2222_v4, %v2219_v13 }
 0xbca   : > { %v4115_v12 = vpack.c.bf16 %v2214_v7, %v2211_v2 }
 0xbcb   : > { %1969 = vrot.lane.b32.xlu0 %v3968_v41, %s3637_s15 }
 0xbce   : > { %v3585_v17 = vpop.eup %3584 }
 0xbcf   : > { %2280 = vrot.lane.b32.xlu0 %v4109_v9, %s3636_s10  ;;  %v1899_v18 = vsel %vm598_vm3, %v3585_v17, 0.0 }
 0xbd3   : > { %2380 = vrot.lane.b32.xlu0 %v4113_v8, %s3636_s10 }
 0xbe4   : > { %1900 = vadd.xlane.f32.xlu1 %v1899_v18  ;;  %v3095_v18 = vunpack.c.h.bf16 %v3119_v6 }
 0xbf5   : > { %2230 = vrot.lane.b32.xlu1 %v4111_v10, %s3636_s10 }
 0xbf9   : > { %2330 = vrot.lane.b32.xlu1 %v4115_v12, %s3636_s10 }
 0xc3a   : > { %v1886_v41 = vpop.xlane.xlu0 %1885 }
 0xc3b   : > { %3586 = vrcp.f32 %v1886_v41 }
 0xc3c   : > { %v1889_v11 = vpop.xlane.xlu1 %1888 }
 0xc3d   : > { %3588 = vrcp.f32 %v1889_v11 }
 0xc40   : > { %v2064_v40 = vpop.permute.xlu1 %2063 }
 0xc42   : > { %v1898_v21 = vpop.xlane.xlu0 %1897 }
 0xc43   : > { %3590 = vrcp.f32 %v1898_v21 }
 0xc45   : > { %v3587_v26 = vpop.eup %3586 }
 0xc46   : > { %v1970_v27 = vpop.permute.xlu0 %1969  ;;  %v1912_v32 = vmul.f32 %v3587_v26, %v3579_v37 }
 0xc47   : > { %v3589_v30 = vpop.eup %3588  ;;  %3380 = vmatpush3.bf16.msra.mxu1 %v1970_v27  ;;  %v3120_v27 = vld [vmem:[%s4302_s5 + $0x68] sm:$0xff]  }
 0xc48   : > { %v1913_v61 = vmul.f32 %v3589_v30, %v3581_v43  ;;  %3391 = vmatprep.subr.bf16.mxu1 %v3634_v14 }
 0xc4a   : > { %v1919_v34 = vpack.c.bf16 %v1913_v61, %v1912_v32  ;;  %v2281_v5 = vpop.permute.xlu0 %2280 }
 0xc4c   : > { %3382 = vmatmul.mubr.msk.bf16.vlgmr.msra.gmra.mrb[56].mxu1 %vm598_vm3, %v1919_v34  ;;  %v3121_v34 = vld [vmem:[%s4302_s5 + $0x70] sm:$0xff]  }
 0xc4d   : > { %3392 = vmatpush3.bf16.msra.mxu1 %v2064_v40  ;;  %3393 = vmatprep.mubr.msk.bf16.mxu1 %vm3635_vm1, %v3634_v14  ;;  %v3591_v47 = vpop.eup %3590 }
 0xc4e   : > { %3409 = vmatprep.subr.bf16.mxu1 %v3634_v14  ;;  %v1916_v48 = vmul.f32 %v3591_v47, %v4094_v52  ;;  %v2286_v52 = vsel %vm376_vm2, %v2281_v5, 0  ;;  %v2381_v57 = vpop.permute.xlu0 %2380 }
 0xc4f   : > { %v2386_v58 = vsel %vm376_vm2, %v2381_v57, 0 }
 0xc71   : > { %v1901_v35 = vpop.xlane.xlu1 %1900 }
 0xc72   : > { %3592 = vrcp.f32 %v1901_v35  ;;  %v3098_v35 = vunpack.c.l.bf16 %v3120_v27 }
 0xc75   : > { %v2231_v44 = vpop.permute.xlu1 %2230 }
 0xc76   : > { %v2236_v56 = vsel %vm376_vm2, %v2231_v44, 0  ;;  %v3102_v44 = vunpack.c.l.bf16 %v3121_v34 }
 0xc79   : > { %v2331_v46 = vpop.permute.xlu1 %2330 }
 0xc7a   : > { %v2336_v37 = vsel %vm376_vm2, %v2331_v46, 0  ;;  %v3099_v46 = vunpack.c.h.bf16 %v3120_v27 }
 0xc7b   : > { %3422 = vmatpush3.bf16.xpose.msra.mxu0 %v2336_v37  ;;  %v3103_v37 = vunpack.c.h.bf16 %v3121_v34 }
 0xc7c   : > { %v3593_v43 = vpop.eup %3592  ;;  %3433 = vmatprep.subr.bf16.mxu0 %v3634_v14 }
 0xc7d   : > { %v1917_v54 = vmul.f32 %v3593_v43, %v3585_v17  ;;  %v3094_v17 = vunpack.c.l.bf16 %v3119_v6 }
 0xc7f   : > { %v1921_v55 = vpack.c.bf16 %v1917_v54, %v1916_v48 }
 0xc81   : > { %3394 = vmatmul.mubr.msk.bf16.vlgmr.msra.gmra.mrb[60].mxu1 %vm598_vm3, %v1921_v55  ;;  %v3122_v55 = vld [vmem:[%s4302_s5 + $0x78] sm:$0xff]  }
 0xc82   : > { %3410 = vmatpush3.bf16.xpose.msra.mxu1 %v2236_v56  ;;  %3424 = vmatmul.mubr.msk.bf16.vlgmr.msra.gmra.mrb[64].mxu0 %vm376_vm2, %v4115_v12 }
 0xc83   : > { %3411 = vmatprep.mubr.msk.bf16.mxu1 %vm3635_vm1, %v3634_v14  ;;  %3415 = vmatprep.subr.bf16.mxu1 %v3634_v14 }
 0xc84   : > { %3435 = vmatprep.mubr.msk.bf16.mxu0 %vm3635_vm1, %v3634_v14 }
 0xc89   : > { %3412 = vmatmul.mubr.msk.bf16.vlgmr.msra.gmra.mrb[64].mxu1 %vm376_vm2, %v4111_v10 }
 0xc8a   : > { %3416 = vmatpush3.bf16.xpose.msra.mxu1 %v2286_v52  ;;  %3417 = vmatprep.mubr.msk.bf16.mxu1 %vm3635_vm1, %v3634_v14 }
 0xc8b   : > { %3427 = vmatprep.subr.bf16.mxu1 %v3634_v14 }
 0xc91   : > { %3418 = vmatmul.mubr.msk.bf16.vlgmr.msra.gmra.mrb[68].mxu1 %vm376_vm2, %v4109_v9 }
 0xc92   : > { %3428 = vmatpush3.bf16.xpose.msra.mxu1 %v2386_v58  ;;  %3429 = vmatprep.mubr.msk.bf16.mxu1 %vm3635_vm1, %v3634_v14 }
 0xc93   : > { %3439 = vmatprep.subr.bf16.mxu1 %v3634_v14 }
 0xc99   : > { %3430 = vmatmul.mubr.msk.bf16.vlgmr.msra.gmra.mrb[72].mxu1 %vm376_vm2, %v4113_v8 }
 0xc9a   : > { %3441 = vmatprep.mubr.msk.bf16.mxu1 %vm3635_vm1, %v3634_v14 }
 0xd1f   : > { %v4162_v59 = vpop.f32.mrb[56].mxu1 }
 0xd20   : > { %v3383_v50 = vpop.f32.mrb[57].mxu1 }
 0xd21   : > { %v4164_v31 = vpop.f32.mrb[58].mxu1 }
 0xd22   : > { %v2111_v62 = vpack.c.bf16 %v4164_v31, %v4162_v59  ;;  %v3384_v0 = vpop.f32.mrb[59].mxu1 }
 0xd23   : > { %v3106_v0 = vunpack.c.l.bf16 %v3122_v55 }
 0xd54   : > { %v4168_v13 = vpop.f32.mrb[60].mxu1 }
 0xd55   : > { %v3395_v1 = vpop.f32.mrb[61].mxu1  ;;  %v2372_v2 = vpop.f32.mrb[64].mxu0 }
 0xd56   : > { %v4170_v3 = vpop.f32.mrb[62].mxu1  ;;  %v3425_v4 = vpop.f32.mrb[65].mxu0  ;;  %v2450_v56 = vadd.f32 %v3102_v44, %v2372_v2 }
 0xd57   : > { %v2113_v7 = vpack.c.bf16 %v4170_v3, %v4168_v13  ;;  %v3396_v15 = vpop.f32.mrb[63].mxu1  ;;  %v2375_v49 = vpop.f32.mrb[66].mxu0  ;;  %v3107_v4 = vunpack.c.h.bf16 %v3122_v55 }
 0xd58   : > { %v3426_v63 = vpop.f32.mrb[67].mxu0  ;;  %v2451_v58 = vadd.f32 %v3103_v37, %v2375_v49  ;;  %v2466_v1 = vsel %vm598_vm3, %v2450_v56, -inf }
 0xd5c   : > { %v2272_v41 = vpop.f32.mrb[64].mxu1 }
 0xd5d   : > { %v2446_v11 = vadd.f32 %v3094_v17, %v2272_v41  ;;  %v3413_v21 = vpop.f32.mrb[65].mxu1  ;;  %v2469_v17 = vsel %vm598_vm3, %v2451_v58, -inf }
 0xd5e   : > { %v2275_v26 = vpop.f32.mrb[66].mxu1 }
 0xd5f   : > { %v2447_v30 = vadd.f32 %v3095_v18, %v2275_v26  ;;  %v3414_v32 = vpop.f32.mrb[67].mxu1  ;;  %v2454_v61 = vsel %vm598_vm3, %v2446_v11, -inf }
 0xd60   : > { %2455 = vmax.xlane.f32.xlu1 %v2454_v61 }
 0xd61   : > { %v2457_v40 = vsel %vm598_vm3, %v2447_v30, -inf }
 0xd62   : > { %2458 = vmax.xlane.f32.xlu0 %v2457_v40 }
 0xd64   : > { %v2322_v47 = vpop.f32.mrb[68].mxu1 }
 0xd65   : > { %v2448_v43 = vadd.f32 %v3098_v35, %v2322_v47  ;;  %v3419_v48 = vpop.f32.mrb[69].mxu1 }
 0xd66   : > { %v2325_v54 = vpop.f32.mrb[70].mxu1 }
 0xd67   : > { %v2449_v5 = vadd.f32 %v3099_v46, %v2325_v54  ;;  %v3420_v52 = vpop.f32.mrb[71].mxu1  ;;  %v2460_v57 = vsel %vm598_vm3, %v2448_v43, -inf }
 0xd68   : > { %2461 = vmax.xlane.f32.xlu0 %v2460_v57 }
 0xd69   : > { %v2463_v50 = vsel %vm598_vm3, %v2449_v5, -inf }
 0xd6a   : > { %2464 = vmax.xlane.f32.xlu1 %v2463_v50 }
 0xd6c   : > { %2467 = vmax.xlane.f32.xlu0 %v2466_v1  ;;  %v2422_v6 = vpop.f32.mrb[72].mxu1 }
 0xd6d   : > { %v2452_v15 = vadd.f32 %v3106_v0, %v2422_v6  ;;  %v3431_v63 = vpop.f32.mrb[73].mxu1 }
 0xd6e   : > { %2470 = vmax.xlane.f32.xlu1 %v2469_v17  ;;  %v2425_v2 = vpop.f32.mrb[74].mxu1 }
 0xd6f   : > { %v2453_v18 = vadd.f32 %v3107_v4, %v2425_v2  ;;  %v3432_v41 = vpop.f32.mrb[75].mxu1  ;;  %v2472_v21 = vsel %vm598_vm3, %v2452_v15, -inf }
 0xd70   : > { %2473 = vmax.xlane.f32.xlu0 %v2472_v21 }
 0xd71   : > { %v2475_v49 = vsel %vm598_vm3, %v2453_v18, -inf }
 0xd72   : > { %2476 = vmax.xlane.f32.xlu1 %v2475_v49 }
 0xd83   : > { %2593 = vrot.lane.b32.xlu1 %v4109_v9, %s3637_s15 }
 0xd86   : > { %2546 = vrot.lane.b32.xlu0 %v4111_v10, %s3637_s15 }
 0xded   : > { %v2456_v26 = vpop.xlane.xlu1 %2455 }
 0xdee   : > { %v2478_v27 = vsub.f32 %v2446_v11, %v2456_v26 }
 0xdef   : > { %v2459_v32 = vpop.xlane.xlu0 %2458 }
 0xdf0   : > { %v2486_v61 = vmul.f32 1.442695, %v2478_v27  ;;  %v2479_v34 = vsub.f32 %v2447_v30, %v2459_v32 }
 0xdf2   : > { %3594 = vpow2.f32 %v2486_v61  ;;  %v2488_v40 = vmul.f32 1.442695, %v2479_v34 }
 0xdf4   : > { %3596 = vpow2.f32 %v2488_v40 }
 0xdf5   : > { %v2462_v35 = vpop.xlane.xlu0 %2461 }
 0xdf6   : > { %v2480_v44 = vsub.f32 %v2448_v43, %v2462_v35 }
 0xdf7   : > { %v2465_v46 = vpop.xlane.xlu1 %2464 }
 0xdf8   : > { %v2490_v47 = vmul.f32 1.442695, %v2480_v44  ;;  %v2481_v37 = vsub.f32 %v2449_v5, %v2465_v46 }
 0xdf9   : > { %v2468_v48 = vpop.xlane.xlu0 %2467 }
 0xdfa   : > { %3598 = vpow2.f32 %v2490_v47  ;;  %v2492_v54 = vmul.f32 1.442695, %v2481_v37  ;;  %v2482_v9 = vsub.f32 %v2450_v56, %v2468_v48 }
 0xdfb   : > { %v2471_v55 = vpop.xlane.xlu1 %2470 }
 0xdfc   : > { %v4198_v52 = vpop.eup %3594  ;;  %3600 = vpow2.f32 %v2492_v54  ;;  %v2494_v10 = vmul.f32 1.442695, %v2482_v9  ;;  %v2483_v11 = vsub.f32 %v2451_v58, %v2471_v55 }
 0xdfd   : > { %v2474_v57 = vpop.xlane.xlu0 %2473  ;;  %v2502_v30 = vsel %vm598_vm3, %v4198_v52, 0.0 }
 0xdfe   : > { %v3597_v50 = vpop.eup %3596  ;;  %3602 = vpow2.f32 %v2494_v10  ;;  %v2496_v43 = vmul.f32 1.442695, %v2483_v11  ;;  %v2484_v0 = vsub.f32 %v2452_v15, %v2474_v57  ;;  %2503 = vadd.xlane.f32.xlu0 %v2502_v30 }
 0xdff   : > { %v2477_v5 = vpop.xlane.xlu1 %2476  ;;  %v2505_v1 = vsel %vm598_vm3, %v3597_v50, 0.0 }
 0xe00   : > { %3604 = vpow2.f32 %v2496_v43  ;;  %v2498_v56 = vmul.f32 1.442695, %v2484_v0  ;;  %v2485_v4 = vsub.f32 %v2453_v18, %v2477_v5  ;;  %2506 = vadd.xlane.f32.xlu1 %v2505_v1 }
 0xe01   : > { %v2547_v6 = vpop.permute.xlu0 %2546 }
 0xe02   : > { %3606 = vpow2.f32 %v2498_v56  ;;  %v2500_v63 = vmul.f32 1.442695, %v2485_v4  ;;  %3434 = vmatpush3.bf16.msra.mxu0 %v2547_v6  ;;  %v3497_v4 = vld [vmem:[%s4300_s3 + $0x8] sm:$0xff]  }
 0xe03   : > { %v2594_v58 = vpop.permute.xlu1 %2593  ;;  %3445 = vmatprep.subr.bf16.mxu0 %v3634_v14 }
 0xe04   : > { %v3599_v17 = vpop.eup %3598  ;;  %3608 = vpow2.f32 %v2500_v63  ;;  %3440 = vmatpush3.bf16.msra.mxu1 %v2594_v58 }
 0xe05   : > { %v2508_v15 = vsel %vm598_vm3, %v3599_v17, 0.0  ;;  %3451 = vmatprep.subr.bf16.mxu1 %v3634_v14 }
 0xe06   : > { %v3601_v2 = vpop.eup %3600  ;;  %2509 = vadd.xlane.f32.xlu0 %v2508_v15 }
 0xe07   : > { %v2511_v41 = vsel %vm598_vm3, %v3601_v2, 0.0 }
 0xe08   : > { %v3603_v18 = vpop.eup %3602  ;;  %2512 = vadd.xlane.f32.xlu1 %v2511_v41 }
 0xe09   : > { %v2514_v21 = vsel %vm598_vm3, %v3603_v18, 0.0 }
 0xe0a   : > { %v3605_v49 = vpop.eup %3604  ;;  %2515 = vadd.xlane.f32.xlu0 %v2514_v21 }
 0xe0b   : > { %v2517_v26 = vsel %vm598_vm3, %v3605_v49, 0.0 }
 0xe0c   : > { %v4209_v27 = vpop.eup %3606  ;;  %2518 = vadd.xlane.f32.xlu1 %v2517_v26 }
 0xe0d   : > { %v2520_v32 = vsel %vm598_vm3, %v4209_v27, 0.0 }
 0xe0e   : > { %v4213_v61 = vpop.eup %3608  ;;  %2521 = vadd.xlane.f32.xlu0 %v2520_v32 }
 0xe0f   : > { %v2523_v34 = vsel %vm598_vm3, %v4213_v61, 0.0 }
 0xe10   : > { %2524 = vadd.xlane.f32.xlu1 %v2523_v34 }
 0xe21   : > { %2640 = vrot.lane.b32.xlu1 %v4115_v12, %s3637_s15 }
 0xe24   : > { %2687 = vrot.lane.b32.xlu0 %v4113_v8, %s3637_s15 }
 0xe25   : > { %1494 = vrot.lane.b32.xlu1 %v1486_v22, %s3638_s24 }
 0xe28   : > { %1496 = vrot.lane.b32.xlu0 %v1487_v24, %s3638_s24 }
 0xe29   : > { %2118 = vrot.lane.b32.xlu1 %v2110_v45, %s3639_s26 }
 0xe2c   : > { %2120 = vrot.lane.b32.xlu0 %v2111_v62, %s3639_s26 }
 0xe2d   : > { %1498 = vrot.lane.b32.xlu1 %v1488_v29, %s3638_s24 }
 0xe30   : > { %1500 = vrot.lane.b32.xlu0 %v1489_v38, %s3638_s24 }
 0xe8b   : > { %v2504_v16 = vpop.xlane.xlu0 %2503 }
 0xe8c   : > { %3610 = vrcp.f32 %v2504_v16 }
 0xe8d   : > { %v2507_v20 = vpop.xlane.xlu1 %2506 }
 0xe8e   : > { %3612 = vrcp.f32 %v2507_v20 }
 0xe93   : > { %v2510_v22 = vpop.xlane.xlu0 %2509 }
 0xe94   : > { %3614 = vrcp.f32 %v2510_v22 }
 0xe95   : > { %v2513_v19 = vpop.xlane.xlu1 %2512 }
 0xe96   : > { %v3611_v23 = vpop.eup %3610  ;;  %3616 = vrcp.f32 %v2513_v19 }
 0xe97   : > { %v2516_v24 = vpop.xlane.xlu0 %2515  ;;  %v2534_v33 = vmul.f32 %v3611_v23, %v4198_v52  ;;  %v3035_v23 = vld [vmem:[%s4301_s4] ss:$0 sm:$0xff] }
 0xe98   : > { %v3613_v39 = vpop.eup %3612  ;;  %3618 = vrcp.f32 %v2516_v24 }
 0xe99   : > { %v2535_v25 = vmul.f32 %v3613_v39, %v3597_v50  ;;  %v2519_v28 = vpop.xlane.xlu1 %2518 }
 0xe9a   : > { %3620 = vrcp.f32 %v2519_v28 }
 0xe9b   : > { %v2522_v29 = vpop.xlane.xlu0 %2521  ;;  %v2542_v51 = vpack.c.bf16 %v2535_v25, %v2534_v33 }
 0xe9c   : > { %3622 = vrcp.f32 %v2522_v29 }
 0xe9d   : > { %v2525_v36 = vpop.xlane.xlu1 %2524  ;;  %3436 = vmatmul.mubr.msk.bf16.vlgmr.msra.gmra.mrb[68].mxu0 %vm598_vm3, %v2542_v51 }
 0xe9e   : > { %v3615_v38 = vpop.eup %3614  ;;  %3624 = vrcp.f32 %v2525_v36  ;;  %3447 = vmatprep.mubr.msk.bf16.mxu0 %vm3635_vm1, %v3634_v14 }
 0xe9f   : > { %v2688_v45 = vpop.permute.xlu0 %2687  ;;  %v2536_v12 = vmul.f32 %v3615_v38, %v3599_v17 }
 0xea0   : > { %v3617_v8 = vpop.eup %3616 }
 0xea1   : > { %v2537_v59 = vmul.f32 %v3617_v8, %v3601_v2  ;;  %v2641_v31 = vpop.permute.xlu1 %2640 }
 0xea2   : > { %v3619_v62 = vpop.eup %3618  ;;  %3446 = vmatpush3.bf16.msra.mxu0 %v2641_v31 }
 0xea3   : > { %v1497_v40 = vpop.permute.xlu0 %1496  ;;  %v2543_v35 = vpack.c.bf16 %v2537_v59, %v2536_v12  ;;  %v2538_v46 = vmul.f32 %v3619_v62, %v3603_v18 }
 0xea4   : > { %v3621_v44 = vpop.eup %3620  ;;  %1508 = vst.msk [vmem:[#allocation2 + $0x8] sm:$0xff] %vm1506_vm4, %v1497_v40 }
 0xea5   : > { %v2539_v47 = vmul.f32 %v3621_v44, %v3605_v49  ;;  %v1495_v37 = vpop.permute.xlu1 %1494  ;;  %3442 = vmatmul.mubr.msk.bf16.vlgmr.msra.gmra.mrb[76].mxu1 %vm598_vm3, %v2543_v35 }
 0xea6   : > { %v3623_v48 = vpop.eup %3622  ;;  %1507 = vst.msk [vmem:[#allocation2] sm:$0xff] %vm1506_vm4, %v1495_v37  ;;  %3452 = vmatpush3.bf16.msra.mxu1 %v2688_v45  ;;  %3453 = vmatprep.mubr.msk.bf16.mxu1 %vm3635_vm1, %v3634_v14  ;;  %v3496_v14 = vld [vmem:[%s4300_s3] sm:$0xff]  }
 0xea7   : > { %v2121_v54 = vpop.permute.xlu0 %2120  ;;  %v2544_v9 = vpack.c.bf16 %v2539_v47, %v2538_v46  ;;  %v2540_v52 = vmul.f32 %v3623_v48, %v4209_v27  ;;  %3457 = vmatprep.subr.bf16.mxu0 %v3496_v14 }
 0xea8   : > { %v3625_v55 = vpop.eup %3624  ;;  %2132 = vst.msk [vmem:[#allocation2 + $0x8] sm:$0xff] %vm2130_vm5, %v2121_v54 }
 0xea9   : > { %v2541_v10 = vmul.f32 %v3625_v55, %v4213_v61  ;;  %v2119_v11 = vpop.permute.xlu1 %2118  ;;  %3448 = vmatmul.mubr.msk.bf16.vlgmr.msra.gmra.mrb[72].mxu0 %vm598_vm3, %v2544_v9 }
 0xeaa   : > { %2131 = vst.msk [vmem:[#allocation2] sm:$0xff] %vm2130_vm5, %v2119_v11  ;;  %3458 = vmatpush3.bf16.msra.mxu0 %v3496_v14 }
 0xeab   : > { %v1501_v57 = vpop.permute.xlu0 %1500  ;;  %v2545_v30 = vpack.c.bf16 %v2541_v10, %v2540_v52  ;;  %3459 = vmatprep.subr.bf16.mxu0 %v3497_v4 }
 0xeac   : > { %1510 = vst.msk [vmem:[#allocation2 + $0x18] sm:$0xff] %vm1506_vm4, %v1501_v57 }
 0xead   : > { %v1499_v50 = vpop.permute.xlu1 %1498  ;;  %3454 = vmatmul.mubr.msk.bf16.vlgmr.msra.gmra.mrb[80].mxu1 %vm598_vm3, %v2545_v30 }
 0xeae   : > { %1509 = vst.msk [vmem:[#allocation2 + $0x10] sm:$0xff] %vm1506_vm4, %v1499_v50  ;;  %3460 = vmatpush3.bf16.msra.mxu0 %v3497_v4 }
 0xf70   : > { %v2586_v43 = vpop.f32.mrb[68].mxu0 }
 0xf71   : > { %v3437_v0 = vpop.f32.mrb[69].mxu0 }
 0xf72   : > { %v2589_v5 = vpop.f32.mrb[70].mxu0 }
 0xf73   : > { %v2734_v1 = vpack.c.bf16 %v2589_v5, %v2586_v43  ;;  %v3438_v56 = vpop.f32.mrb[71].mxu0 }
 0xf75   : > { %2742 = vrot.lane.b32.xlu1 %v2734_v1, %s3640_s7 }
 0xf78   : > { %v2633_v6 = vpop.f32.mrb[76].mxu1 }
 0xf79   : > { %2122 = vrot.lane.b32.xlu1 %v2112_v60, %s3639_s26  ;;  %v3443_v63 = vpop.f32.mrb[77].mxu1 }
 0xf7a   : > { %v2636_v58 = vpop.f32.mrb[78].mxu1 }
 0xf7b   : > { %v2735_v17 = vpack.c.bf16 %v2636_v58, %v2633_v6  ;;  %v3444_v15 = vpop.f32.mrb[79].mxu1 }
 0xf7c   : > { %v2680_v2 = vpop.f32.mrb[72].mxu0 }
 0xf7d   : > { %2744 = vrot.lane.b32.xlu0 %v2735_v17, %s3640_s7  ;;  %v3449_v41 = vpop.f32.mrb[73].mxu0 }
 0xf7e   : > { %v2683_v18 = vpop.f32.mrb[74].mxu0 }
 0xf7f   : > { %v2736_v21 = vpack.c.bf16 %v2683_v18, %v2680_v2  ;;  %v3450_v49 = vpop.f32.mrb[75].mxu0 }
 0xf80   : > { %v2727_v26 = vpop.f32.mrb[80].mxu1 }
 0xf81   : > { %2124 = vrot.lane.b32.xlu0 %v2113_v7, %s3639_s26  ;;  %2746 = vrot.lane.b32.xlu1 %v2736_v21, %s3640_s7  ;;  %v3455_v27 = vpop.f32.mrb[81].mxu1 }
 0xf82   : > { %v2730_v42 = vpop.f32.mrb[82].mxu1 }
 0xf83   : > { %v2737_v53 = vpack.c.bf16 %v2730_v42, %v2727_v26  ;;  %v3456_v60 = vpop.f32.mrb[83].mxu1 }
 0xf85   : > { %2748 = vrot.lane.b32.xlu0 %v2737_v53, %s3640_s7 }
 0xfe7   : > { %v2743_v32 = vpop.permute.xlu1 %2742 }
 0xfe8   : > { %2755 = vst.msk [vmem:[#allocation2] sm:$0xff] %vm2754_vm6, %v2743_v32 }
 0xfeb   : > { %v2123_v61 = vpop.permute.xlu1 %2122 }
 0xfec   : > { %2133 = vst.msk [vmem:[#allocation2 + $0x10] sm:$0xff] %vm2130_vm5, %v2123_v61 }
 0xfef   : > { %v2745_v34 = vpop.permute.xlu0 %2744  ;;  %v2759_v16 = vld [vmem:[#allocation2] sm:$0xff] }
 0xff0   : > { %2756 = vst.msk [vmem:[#allocation2 + $0x8] sm:$0xff] %vm2754_vm6, %v2745_v34  ;;  %3461 = vmatprep.mubr.msk.bf16.mxu0 %vm291_vm0, %v2759_v16 }
 0xff3   : > { %v2747_v13 = vpop.permute.xlu1 %2746  ;;  %v2125_v3 = vpop.permute.xlu0 %2124 }
 0xff4   : > { %2757 = vst.msk [vmem:[#allocation2 + $0x10] sm:$0xff] %vm2754_vm6, %v2747_v13 }
 0xff5   : > { %2134 = vst.msk [vmem:[#allocation2 + $0x18] sm:$0xff] %vm2130_vm5, %v2125_v3 }
 0xff7   : > { %v2749_v7 = vpop.permute.xlu0 %2748  ;;  %v2760_v20 = vld [vmem:[#allocation2 + $0x8] sm:$0xff] }
 0xff8   : > { %2758 = vst.msk [vmem:[#allocation2 + $0x18] sm:$0xff] %vm2754_vm6, %v2749_v7  ;;  %3462 = vmatmul.mubr.msk.bf16.vlgmr.msra.gmra.mrb[76].mxu0 %vm291_vm0, %v2760_v20 }
 0xffb   : > { %v2761_v22 = vld [vmem:[#allocation2 + $0x10] sm:$0xff] }
 0xffc   : > { %3465 = vmatprep.mubr.msk.bf16.mxu0 %vm291_vm0, %v2761_v22 }
 0xfff   : > { %v2762_v19 = vld [vmem:[#allocation2 + $0x18] sm:$0xff] }
0x1000   : > { %3466 = vmatmul.mubr.msk.bf16.gmra.mrb[80].mxu0 %vm291_vm0, %v2762_v19 }
0x10cb   : > { %v3463_v24 = vpop.f32.mrb[76].mxu0 }
0x10cc   : > { %v2841_v39 = vadd.f32 %v3463_v24, %v3035_v23  ;;  %v2832_v33 = vpop.f32.mrb[77].mxu0 }
0x10cd   : > { %v2833_v25 = vadd.f32 %v3035_v23, %v2832_v33  ;;  %v3464_v28 = vpop.f32.mrb[78].mxu0 }
0x10ce   : > { %2865 = vst.msk [vmem:[%s253_s13 + $0x10] sm:$0xff] %vm291_vm0, %v2841_v39  ;;  %v2844_v29 = vadd.f32 %v3464_v28, %v3035_v23  ;;  %v2835_v51 = vpop.f32.mrb[79].mxu0 }
0x10cf   : > { %2863 = vst.msk [vmem:[%s253_s13] sm:$0xff] %vm291_vm0, %v2833_v25  ;;  %v2836_v36 = vadd.f32 %v3035_v23, %v2835_v51 }
0x10d0   : > { %2866 = vst.msk [vmem:[%s253_s13 + $0x18] sm:$0xff] %vm291_vm0, %v2844_v29 }
0x10d1   : > { %2864 = vst.msk [vmem:[%s253_s13 + $0x8] sm:$0xff] %vm291_vm0, %v2836_v36 }
0x10d3   : > { %v3467_v38 = vpop.f32.mrb[80].mxu0 }
0x10d4   : > { %v2857_v45 = vadd.f32 %v3467_v38, %v3035_v23  ;;  %v2848_v8 = vpop.f32.mrb[81].mxu0 }
0x10d5   : > { %v2849_v12 = vadd.f32 %v3035_v23, %v2848_v8  ;;  %v3468_v59 = vpop.f32.mrb[82].mxu0 }
0x10d6   : > { %2869 = vst.msk [vmem:[%s253_s13 + $0x30] sm:$0xff] %vm291_vm0, %v2857_v45  ;;  %v2860_v31 = vadd.f32 %v3468_v59, %v3035_v23  ;;  %v2851_v62 = vpop.f32.mrb[83].mxu0 }
0x10d7   : > { %2867 = vst.msk [vmem:[%s253_s13 + $0x20] sm:$0xff] %vm291_vm0, %v2849_v12  ;;  %v2852_v40 = vadd.f32 %v3035_v23, %v2851_v62 }
0x10d8   : > { %2870 = vst.msk [vmem:[%s253_s13 + $0x38] sm:$0xff] %vm291_vm0, %v2860_v31 }
0x10d9   : > { %2868 = vst.msk [vmem:[%s253_s13 + $0x28] sm:$0xff] %vm291_vm0, %v2852_v40 }
0x10da PF: > { %s16_s21 = sadd.s32 1, %s3632_s21  }
0x10db   : > { %p13_p4 = scmp.ge.s32.totalorder %s16_s21, 4  }
0x10dd   :  { %15 = sbr.rel (!%p13_p4) target bundleno = 1 (0x1), region = 83 }

// kernel: tpu_custom_call.1
= control target key start
LH: loop header
LB: loop body
LE: loop exit
PB: predicated region body
PF: predicated region fallthrough
CT: control target
= control target key end

     0   :  { %s3676_s21 = smov 0   ;;  %s4297_s0 = inlined_call_operand.vmem [shape: f32[128,32], index: 0, kind: input, shape index: {}]   ;;  %s4298_s1 = inlined_call_operand.vmem [shape: bf16[4,32,24], index: 1, kind: input, shape index: {}]   ;;  %s4299_s2 = inlined_call_operand.vmem [shape: f32[4,1,24], index: 2, kind: input, shape index: {}]   ;;  %s4300_s3 = inlined_call_operand.vmem [shape: bf16[32,32], index: 3, kind: input, shape index: {}]   ;;  %s4301_s4 = inlined_call_operand.vmem [shape: f32[1,32], index: 4, kind: input, shape index: {}]   ;;  %s4302_s5 = inlined_call_operand.vmem [shape: bf16[4,4,16,16], index: 5, kind: input, shape index: {}]   ;;  %s4303_s6 = inlined_call_operand.vmem [shape: f32[128,32], index: 6, kind: output, shape index: {}]  }
   0x1 LB: > { %s2927_s22 = sadd.s32 4294967295, %s3632_s21   ;;  %p2931_p0 = scmp.ge.s32.totalorder %s3632_s21, 1  ;;  %s3632_s21 = sphi %s3676_s21, %s16_s21  }
   0x2   : > { %p213_p1 = scmp.lt.s32.totalorder %s3632_s21, 3 }
   0x4   : > { %p214_p2 = pnand %p2931_p0, %p213_p1 }
   0x5   : > { %v3488_v0 = vld [vmem:[%s4298_s1] sm:$0xff] (!%p214_p2)   ;;  %s2932_s25 = sshll.u32 (!%p214_p2), %s2927_s22, 3  ;;  %v3489_v1 = vld [vmem:[%s4298_s1 + $0x8] sm:$0xff] (!%p214_p2)   ;;  %vm291_vm0 = vcmask (!%p214_p2), 261120   ;;  %v3634_v14 = vmov (!%p214_p2), 0.0   ;;  %vm3635_vm1 = vmmov (!%p214_p2), 0  }
   0x6   : > { %217 = sbr.rel (%p214_p2) target bundleno = 4314 (0x10da), region = 44  ;;  %p244_p3 = scmp.lt.s32.totalorder (!%p214_p2), %s2932_s25, 15  ;;  %3217 = vmatprep.subr.bf16.mxu0 (!%p214_p2), %v3488_v0  ;;  %3469 = vmatprep.subr.bf16.mxu1 (!%p214_p2), %v3488_v0  ;;  %v2936_v16 = vld [vmem:[%s4299_s2] ss:$0 sm:$0xff] (!%p214_p2)  ;;  %vm376_vm2 = vcmask (!%p214_p2), 64512   ;;  %v3109_v44 = vld [vmem:[%s4302_s5 + $0x10] sm:$0xff] (!%p214_p2)  }
   0x7   : > { %3218 = vmatpush3.bf16.msra.mxu0 (!%p214_p2), %v3488_v0  ;;  %3471 = vmatpush3.bf16.msra.mxu1 (!%p214_p2), %v3488_v0  ;;  %s3636_s10 = smov (!%p214_p2), 120   ;;  %v3045_v42 = vld [vmem:[%s4302_s5] sm:$0xff] (!%p214_p2)   ;;  %vm598_vm3 = vcmask (!%p214_p2), 130048   ;;  %v3054_v48 = vunpack.c.l.bf16 (!%p214_p2), %v3109_v44  ;;  %v3055_v53 = vunpack.c.h.bf16 (!%p214_p2), %v3109_v44  ;;  %s3637_s15 = smov (!%p214_p2), 112   ;;  %vm1506_vm4 = vcmask (!%p214_p2), 130112  }
   0x8   : > { %3219 = vmatprep.subr.bf16.mxu0 (!%p214_p2), %v3489_v1  ;;  %3470 = vmatprep.subr.bf16.mxu1 (!%p214_p2), %v3489_v1  ;;  %v3046_v43 = vunpack.c.l.bf16 (!%p214_p2), %v3045_v42  ;;  %v3047_v50 = vunpack.c.h.bf16 (!%p214_p2), %v3045_v42  ;;  %s3638_s24 = smov (!%p214_p2), 8   ;;  %s3639_s26 = smov (!%p214_p2), 16   ;;  %vm2130_vm5 = vcmask (!%p214_p2), 195712   ;;  %vm2754_vm6 = vcmask (!%p214_p2), 261312  }
   0xb   : > { %3220 = vmatpush3.bf16.msra.mxu0 (!%p214_p2), %v3489_v1  ;;  %3472 = vmatpush3.bf16.msra.mxu1 (!%p214_p2), %v3489_v1 }
   0xc   : > { %3229 = vmatprep.subr.bf16.mxu1 (!%p214_p2), %v3634_v14  ;;  %3241 = vmatprep.subr.bf16.mxu0 (!%p214_p2), %v3634_v14 }
   0xd   : > { %s4305_s25 = smov (!%p244_p3, %s2932_s25), 15 }
   0xe   : > { %s2933_s28 = sshll.u32 %s4305_s25, 3 }
   0xf   : > { %s247_s7 = scalar_lea.vmem %s4297_s0, %s2933_s28  ;;  %s253_s13 = scalar_lea.vmem %s4303_s6, %s2933_s28 }
  0x10   : > { %v256_v2 = vld [vmem:[%s247_s7] sm:$0xff]  ;;  %v257_v3 = vld [vmem:[%s247_s7 + $0x8] sm:$0xff]  ;;  %v258_v4 = vld [vmem:[%s247_s7 + $0x10] sm:$0xff] }
  0x11   : > { %v3698_v5 = vpack.c.bf16 %v257_v3, %v256_v2  ;;  %v259_v6 = vld [vmem:[%s247_s7 + $0x18] sm:$0xff]  ;;  %v260_v7 = vld [vmem:[%s247_s7 + $0x20] sm:$0xff]  ;;  %v261_v8 = vld [vmem:[%s247_s7 + $0x28] sm:$0xff] }
  0x12   : > { %v3700_v9 = vpack.c.bf16 %v259_v6, %v258_v4  ;;  %v3702_v10 = vpack.c.bf16 %v261_v8, %v260_v7  ;;  %v262_v11 = vld [vmem:[%s247_s7 + $0x30] sm:$0xff]  ;;  %v263_v12 = vld [vmem:[%s247_s7 + $0x38] sm:$0xff]  ;;  %s3640_s7 = smov 24  }
  0x13   : > { %3221 = vmatprep.mubr.msk.bf16.mxu0 %vm291_vm0, %v3698_v5  ;;  %v3706_v13 = vpack.c.bf16 %v263_v12, %v262_v11 }
  0x14   : > { %3222 = vmatmul.mubr.msk.bf16.vlgmr.msra.gmra.mrb[0].mxu0 %vm291_vm0, %v3700_v9  ;;  %3225 = vmatprep.mubr.msk.bf16.mxu1 %vm291_vm0, %v3702_v10 }
  0x15   : > { %3226 = vmatmul.mubr.msk.bf16.vlgmr.msra.gmra.mrb[0].mxu1 %vm291_vm0, %v3706_v13  ;;  %3243 = vmatprep.mubr.msk.bf16.mxu0 %vm3635_vm1, %v3634_v14 }
  0x16   : > { %3231 = vmatprep.mubr.msk.bf16.mxu1 %vm3635_vm1, %v3634_v14 }
  0xe7   : > { %v3223_v15 = vpop.f32.mrb[0].mxu0 }
  0xe8   : > { %v338_v17 = vpop.f32.mrb[1].mxu0  ;;  %v3227_v18 = vpop.f32.mrb[0].mxu1  ;;  %v347_v22 = vadd.f32 %v3223_v15, %v2936_v16 }
  0xe9   : > { %v363_v19 = vadd.f32 %v3227_v18, %v2936_v16  ;;  %v3224_v20 = vpop.f32.mrb[2].mxu0  ;;  %v354_v21 = vpop.f32.mrb[1].mxu1  ;;  %v339_v27 = vadd.f32 %v2936_v16, %v338_v17 }
  0xea   : > { %v350_v23 = vadd.f32 %v3224_v20, %v2936_v16  ;;  %v355_v24 = vadd.f32 %v2936_v16, %v354_v21  ;;  %v341_v25 = vpop.f32.mrb[3].mxu0  ;;  %v3228_v26 = vpop.f32.mrb[2].mxu1 }
  0xeb   : > { %v342_v28 = vadd.f32 %v2936_v16, %v341_v25  ;;  %v366_v29 = vadd.f32 %v3228_v26, %v2936_v16  ;;  %v357_v30 = vpop.f32.mrb[3].mxu1 }
  0xec   : > { %v3723_v31 = vpack.c.bf16 %v350_v23, %v347_v22  ;;  %v358_v32 = vadd.f32 %v2936_v16, %v357_v30 }
  0xed   : > { %v3725_v33 = vpack.c.bf16 %v342_v28, %v339_v27  ;;  %v3727_v34 = vpack.c.bf16 %v366_v29, %v363_v19 }
  0xee   : > { %v3729_v35 = vpack.c.bf16 %v358_v32, %v355_v24  ;;  %v3108_v32 = vld [vmem:[%s4302_s5 + $0x8] sm:$0xff]  }
  0xef   : > { %374 = vrot.lane.b32.xlu0 %v3725_v33, %s3636_s10 }
  0xf3   : > { %475 = vrot.lane.b32.xlu0 %v3729_v35, %s3636_s10 }
  0xf7   : > { %425 = vrot.lane.b32.xlu0 %v3723_v31, %s3636_s10 }
 0x161   : > { %v375_v36 = vpop.permute.xlu0 %374 }
 0x162   : > { %v381_v37 = vsel %vm376_vm2, %v375_v36, 0  ;;  %v3051_v36 = vunpack.c.h.bf16 %v3108_v32 }
 0x163   : > { %3230 = vmatpush3.bf16.xpose.msra.mxu1 %v381_v37 }
 0x164   : > { %3235 = vmatprep.subr.bf16.mxu1 %v3634_v14 }
 0x165   : > { %v476_v38 = vpop.permute.xlu0 %475 }
 0x166   : > { %v481_v39 = vsel %vm376_vm2, %v476_v38, 0 }
 0x167   : > { %3242 = vmatpush3.bf16.xpose.msra.mxu0 %v481_v39  ;;  %v3050_v39 = vunpack.c.l.bf16 %v3108_v32 }
 0x168   : > { %3253 = vmatprep.subr.bf16.mxu0 %v3634_v14 }
 0x169   : > { %v426_v40 = vpop.permute.xlu0 %425 }
 0x16a   : > { %v431_v41 = vsel %vm376_vm2, %v426_v40, 0  ;;  %3232 = vmatmul.mubr.msk.bf16.vlgmr.msra.gmra.mrb[4].mxu1 %vm376_vm2, %v3725_v33 }
 0x16b   : > { %3236 = vmatpush3.bf16.xpose.msra.mxu1 %v431_v41  ;;  %3237 = vmatprep.mubr.msk.bf16.mxu1 %vm3635_vm1, %v3634_v14 }
 0x16c   : > { %3247 = vmatprep.subr.bf16.mxu1 %v3634_v14 }
 0x16e   : > { %3244 = vmatmul.mubr.msk.bf16.vlgmr.msra.gmra.mrb[4].mxu0 %vm376_vm2, %v3729_v35 }
 0x16f   : > { %3255 = vmatprep.mubr.msk.bf16.mxu0 %vm3635_vm1, %v3634_v14 }
 0x172   : > { %3238 = vmatmul.mubr.msk.bf16.vlgmr.msra.gmra.mrb[8].mxu1 %vm376_vm2, %v3723_v31 }
 0x173   : > { %3249 = vmatprep.mubr.msk.bf16.mxu1 %vm3635_vm1, %v3634_v14 }
 0x23d   : > { %v417_v45 = vpop.f32.mrb[4].mxu1 }
 0x23e   : > { %v590_v46 = vadd.f32 %v3046_v43, %v417_v45  ;;  %v3233_v47 = vpop.f32.mrb[5].mxu1 }
 0x23f   : > { %v420_v49 = vpop.f32.mrb[6].mxu1 }
 0x240   : > { %v3234_v51 = vpop.f32.mrb[7].mxu1  ;;  %v599_v52 = vsel %vm598_vm3, %v590_v46, -inf  ;;  %v591_v58 = vadd.f32 %v3047_v50, %v420_v49  ;;  %v3490_v50 = vld [vmem:[%s4298_s1 + $0x10] sm:$0xff]  }
 0x241   : > { %600 = vmax.xlane.f32.xlu1 %v599_v52  ;;  %v517_v54 = vpop.f32.mrb[4].mxu0 }
 0x242   : > { %v594_v55 = vadd.f32 %v3054_v48, %v517_v54  ;;  %v3245_v56 = vpop.f32.mrb[5].mxu0  ;;  %v602_v3 = vsel %vm598_vm3, %v591_v58, -inf }
 0x243   : > { %v520_v57 = vpop.f32.mrb[6].mxu0 }
 0x244   : > { %v595_v59 = vadd.f32 %v3055_v53, %v520_v57  ;;  %v3246_v60 = vpop.f32.mrb[7].mxu0  ;;  %v611_v61 = vsel %vm598_vm3, %v594_v55, -inf  ;;  %v3491_v57 = vld [vmem:[%s4298_s1 + $0x18] sm:$0xff]  }
 0x245   : > { %612 = vmax.xlane.f32.xlu1 %v611_v61  ;;  %v467_v62 = vpop.f32.mrb[8].mxu1 }
 0x246   : > { %v3239_v63 = vpop.f32.mrb[9].mxu1  ;;  %v614_v0 = vsel %vm598_vm3, %v595_v59, -inf  ;;  %v592_v40 = vadd.f32 %v3050_v39, %v467_v62 }
 0x247   : > { %615 = vmax.xlane.f32.xlu0 %v614_v0  ;;  %v470_v1 = vpop.f32.mrb[10].mxu1 }
 0x248   : > { %v3240_v2 = vpop.f32.mrb[11].mxu1  ;;  %v593_v37 = vadd.f32 %v3051_v36, %v470_v1  ;;  %v605_v41 = vsel %vm598_vm3, %v592_v40, -inf  ;;  %v3110_v1 = vld [vmem:[%s4302_s5 + $0x18] sm:$0xff]  }
 0x249   : > { %603 = vmax.xlane.f32.xlu1 %v602_v3  ;;  %v3058_v3 = vunpack.c.l.bf16 %v3110_v1 }
 0x24a   : > { %v608_v38 = vsel %vm598_vm3, %v593_v37, -inf }
 0x25a   : > { %525 = vrot.lane.b32.xlu1 %v3727_v34, %s3636_s10 }
 0x2ce   : > { %v601_v4 = vpop.xlane.xlu1 %600 }
 0x2cf   : > { %v623_v6 = vsub.f32 %v590_v46, %v601_v4  ;;  %v3059_v4 = vunpack.c.h.bf16 %v3110_v1 }
 0x2d1   : > { %v631_v7 = vmul.f32 1.442695, %v623_v6 }
 0x2d2   : > { %v613_v8 = vpop.xlane.xlu1 %612 }
 0x2d3   : > { %3498 = vpow2.f32 %v631_v7  ;;  %v627_v11 = vsub.f32 %v594_v55, %v613_v8 }
 0x2d4   : > { %v616_v12 = vpop.xlane.xlu0 %615 }
 0x2d5   : > { %v639_v15 = vmul.f32 1.442695, %v627_v11  ;;  %v628_v16 = vsub.f32 %v595_v59, %v616_v12 }
 0x2d6   : > { %v604_v17 = vpop.xlane.xlu1 %603 }
 0x2d7   : > { %3500 = vpow2.f32 %v639_v15  ;;  %v624_v18 = vsub.f32 %v591_v58, %v604_v17  ;;  %v641_v19 = vmul.f32 1.442695, %v628_v16 }
 0x2d9   : > { %v633_v20 = vmul.f32 1.442695, %v624_v18 }
 0x2da   : > { %v526_v21 = vpop.permute.xlu1 %525 }
 0x2db   : > { %3502 = vpow2.f32 %v633_v20  ;;  %v531_v22 = vsel %vm376_vm2, %v526_v21, 0 }
 0x2dc   : > { %3248 = vmatpush3.bf16.xpose.msra.mxu1 %v531_v22  ;;  %3504 = vpow2.f32 %v641_v19 }
 0x2dd   : > { %v3499_v23 = vpop.eup %3498  ;;  %3259 = vmatprep.subr.bf16.mxu1 %v3634_v14 }
 0x2de   : > { %v647_v24 = vsel %vm598_vm3, %v3499_v23, 0.0 }
 0x2df   : > { %648 = vadd.xlane.f32.xlu1 %v647_v24 }
 0x2e1   : > { %v3501_v25 = vpop.eup %3500 }
 0x2e2   : > { %v659_v26 = vsel %vm598_vm3, %v3501_v25, 0.0 }
 0x2e3   : > { %660 = vadd.xlane.f32.xlu0 %v659_v26  ;;  %3250 = vmatmul.mubr.msk.bf16.vlgmr.msra.gmra.mrb[12].mxu1 %vm376_vm2, %v3727_v34 }
 0x2e4   : > { %3261 = vmatprep.mubr.msk.bf16.mxu1 %vm3635_vm1, %v3634_v14 }
 0x2e5   : > { %v3503_v27 = vpop.eup %3502 }
 0x2e6   : > { %v650_v28 = vsel %vm598_vm3, %v3503_v27, 0.0  ;;  %v3505_v29 = vpop.eup %3504 }
 0x2e7   : > { %651 = vadd.xlane.f32.xlu0 %v650_v28  ;;  %v662_v30 = vsel %vm598_vm3, %v3505_v29, 0.0 }
 0x2eb   : > { %663 = vadd.xlane.f32.xlu0 %v662_v30 }
 0x2f0   : > { %785 = vrot.lane.b32.xlu1 %v3729_v35, %s3637_s15 }
 0x301   : > { %691 = vrot.lane.b32.xlu0 %v3725_v33, %s3637_s15 }
 0x314   : > { %609 = vmax.xlane.f32.xlu1 %v608_v38 }
 0x320   : > { %606 = vmax.xlane.f32.xlu0 %v605_v41 }
 0x36c   : > { %v649_v42 = vpop.xlane.xlu1 %648 }
 0x36d   : > { %3506 = vrcp.f32 %v649_v42 }
 0x370   : > { %v661_v43 = vpop.xlane.xlu0 %660  ;;  %v786_v52 = vpop.permute.xlu1 %785 }
 0x374   : > { %v652_v35 = vpop.xlane.xlu0 %651 }
 0x375   : > { %3508 = vrcp.f32 %v652_v35  ;;  %v2956_v35 = vld [vmem:[%s4299_s2 + $0x1] ss:$0 sm:$0xff] }
 0x377   : > { %v3507_v45 = vpop.eup %3506 }
 0x378   : > { %v664_v33 = vpop.xlane.xlu0 %663  ;;  %v679_v47 = vmul.f32 %v3507_v45, %v3499_v23 }
 0x379   : > { %3510 = vrcp.f32 %v664_v33 }
 0x37a   : > { %3512 = vrcp.f32 %v661_v43 }
 0x37c   : > { %v692_v44 = vpop.permute.xlu0 %691 }
 0x37d   : > { %3254 = vmatpush3.bf16.msra.mxu0 %v692_v44 }
 0x37e   : > { %3265 = vmatprep.subr.bf16.mxu0 %v3634_v14 }
 0x37f   : > { %v3509_v46 = vpop.eup %3508 }
 0x380   : > { %v680_v48 = vmul.f32 %v3509_v46, %v3503_v27 }
 0x382   : > { %v687_v49 = vpack.c.bf16 %v680_v48, %v679_v47 }
 0x383   : > { %v3511_v51 = vpop.eup %3510 }
 0x384   : > { %3256 = vmatmul.mubr.msk.bf16.vlgmr.msra.gmra.mrb[8].mxu0 %vm598_vm3, %v687_v49  ;;  %v3513_v53 = vpop.eup %3512  ;;  %v684_v54 = vmul.f32 %v3511_v51, %v3505_v29 }
 0x385   : > { %3266 = vmatpush3.bf16.msra.mxu0 %v786_v52  ;;  %3267 = vmatprep.mubr.msk.bf16.mxu0 %vm3635_vm1, %v3634_v14  ;;  %v683_v55 = vmul.f32 %v3513_v53, %v3501_v25 }
 0x386   : > { %3277 = vmatprep.subr.bf16.mxu0 %v3490_v50 }
 0x387   : > { %v689_v56 = vpack.c.bf16 %v684_v54, %v683_v55 }
 0x38c   : > { %3268 = vmatmul.mubr.msk.bf16.vlgmr.msra.gmra.mrb[12].mxu0 %vm598_vm3, %v689_v56 }
 0x38d   : > { %3278 = vmatpush3.bf16.msra.mxu0 %v3490_v50  ;;  %3281 = vmatprep.mubr.msk.bf16.mxu0 %vm291_vm0, %v3698_v5 }
 0x38e   : > { %3279 = vmatprep.subr.bf16.mxu0 %v3491_v57 }
 0x391   : > { %3280 = vmatpush3.bf16.msra.mxu0 %v3491_v57 }
 0x392   : > { %3301 = vmatprep.subr.bf16.mxu0 %v3634_v14 }
 0x394   : > { %3282 = vmatmul.mubr.msk.bf16.vlgmr.msra.gmra.mrb[16].mxu0 %vm291_vm0, %v3700_v9 }
 0x395   : > { %3285 = vmatprep.mubr.msk.bf16.mxu0 %vm291_vm0, %v3702_v10 }
 0x39c   : > { %3286 = vmatmul.mubr.msk.bf16.gmra.mrb[20].mxu0 %vm291_vm0, %v3706_v13 }
 0x39d   : > { %3303 = vmatprep.mubr.msk.bf16.mxu0 %vm3635_vm1, %v3634_v14 }
 0x3a1   : > { %v610_v58 = vpop.xlane.xlu1 %609 }
 0x3a2   : > { %v626_v59 = vsub.f32 %v593_v37, %v610_v58 }
 0x3a4   : > { %v637_v60 = vmul.f32 1.442695, %v626_v59 }
 0x3a6   : > { %3514 = vpow2.f32 %v637_v60 }
 0x3ad   : > { %v607_v61 = vpop.xlane.xlu0 %606 }
 0x3ae   : > { %v625_v62 = vsub.f32 %v592_v40, %v607_v61 }
 0x3b0   : > { %v3808_v63 = vpop.eup %3514  ;;  %v635_v0 = vmul.f32 1.442695, %v625_v62 }
 0x3b1   : > { %v656_v2 = vsel %vm598_vm3, %v3808_v63, 0.0 }
 0x3b2   : > { %657 = vadd.xlane.f32.xlu1 %v656_v2  ;;  %3516 = vpow2.f32 %v635_v0 }
 0x3b6   : > { %v567_v6 = vpop.f32.mrb[12].mxu1 }
 0x3b7   : > { %v596_v7 = vadd.f32 %v3058_v3, %v567_v6  ;;  %v3251_v8 = vpop.f32.mrb[13].mxu1 }
 0x3b8   : > { %v570_v11 = vpop.f32.mrb[14].mxu1 }
 0x3b9   : > { %v597_v12 = vadd.f32 %v3059_v4, %v570_v11  ;;  %v3252_v15 = vpop.f32.mrb[15].mxu1  ;;  %v617_v16 = vsel %vm598_vm3, %v596_v7, -inf }
 0x3ba   : > { %618 = vmax.xlane.f32.xlu0 %v617_v16 }
 0x3bb   : > { %v620_v17 = vsel %vm598_vm3, %v597_v12, -inf }
 0x3bc   : > { %v3817_v18 = vpop.eup %3516 }
 0x3bd   : > { %v653_v19 = vsel %vm598_vm3, %v3817_v18, 0.0 }
 0x3be   : > { %621 = vmax.xlane.f32.xlu0 %v620_v17 }
 0x3c2   : > { %654 = vadd.xlane.f32.xlu0 %v653_v19 }
 0x3c3   : > { %832 = vrot.lane.b32.xlu1 %v3727_v34, %s3637_s15 }
 0x447   : > { %v619_v20 = vpop.xlane.xlu0 %618 }
 0x448   : > { %v629_v21 = vsub.f32 %v596_v7, %v619_v20 }
 0x44a   : > { %v643_v22 = vmul.f32 1.442695, %v629_v21 }
 0x44b   : > { %v622_v23 = vpop.xlane.xlu0 %621 }
 0x44c   : > { %3518 = vpow2.f32 %v643_v22  ;;  %v630_v24 = vsub.f32 %v597_v12, %v622_v23 }
 0x44e   : > { %v645_v25 = vmul.f32 1.442695, %v630_v24 }
 0x44f   : > { %v655_v62 = vpop.xlane.xlu0 %654 }
 0x450   : > { %3520 = vpow2.f32 %v645_v25 }
 0x451   : > { %3522 = vrcp.f32 %v655_v62 }
 0x456   : > { %v3823_v26 = vpop.eup %3518 }
 0x457   : > { %v731_v27 = vpop.f32.mrb[8].mxu0  ;;  %v665_v28 = vsel %vm598_vm3, %v3823_v26, 0.0 }
 0x458   : > { %v3257_v29 = vpop.f32.mrb[9].mxu0  ;;  %666 = vadd.xlane.f32.xlu0 %v665_v28 }
 0x459   : > { %v734_v30 = vpop.f32.mrb[10].mxu0 }
 0x45a   : > { %v3827_v32 = vpop.eup %3520  ;;  %v879_v34 = vpack.c.bf16 %v734_v30, %v731_v27  ;;  %v3258_v36 = vpop.f32.mrb[11].mxu0 }
 0x45b   : > { %v668_v37 = vsel %vm598_vm3, %v3827_v32, 0.0  ;;  %v3523_v0 = vpop.eup %3522 }
 0x45c   : > { %883 = vst.msk [vmem:[#allocation2] sm:$0xff] %vm376_vm2, %v879_v34  ;;  %669 = vadd.xlane.f32.xlu1 %v668_v37  ;;  %v681_v4 = vmul.f32 %v3523_v0, %v3817_v18  ;;  %v3111_v37 = vld [vmem:[%s4302_s5 + $0x20] sm:$0xff]  }
 0x45f   : > { %v825_v38 = vpop.f32.mrb[12].mxu0 }
 0x460   : > { %v3269_v39 = vpop.f32.mrb[13].mxu0 }
 0x461   : > { %v828_v40 = vpop.f32.mrb[14].mxu0 }
 0x462   : > { %v881_v41 = vpack.c.bf16 %v828_v40, %v825_v38  ;;  %v3270_v42 = vpop.f32.mrb[15].mxu0  ;;  %v3113_v40 = vld [vmem:[%s4302_s5 + $0x30] sm:$0xff]  }
 0x463   : > { %v3070_v42 = vunpack.c.l.bf16 %v3113_v40 }
 0x464   : > { %885 = vst.msk [vmem:[#allocation2 + $0x10] sm:$0xff] %vm376_vm2, %v881_v41  ;;  %v3062_v41 = vunpack.c.l.bf16 %v3111_v37 }
 0x467   : > { %v3283_v43 = vpop.f32.mrb[16].mxu0 }
 0x468   : > { %v955_v33 = vadd.f32 %v3283_v43, %v2956_v35  ;;  %v946_v44 = vpop.f32.mrb[17].mxu0  ;;  %v3063_v43 = vunpack.c.h.bf16 %v3111_v37 }
 0x469   : > { %v947_v45 = vadd.f32 %v2956_v35, %v946_v44  ;;  %v3284_v46 = vpop.f32.mrb[18].mxu0 }
 0x46a   : > { %v958_v47 = vadd.f32 %v3284_v46, %v2956_v35  ;;  %v949_v48 = vpop.f32.mrb[19].mxu0 }
 0x46b   : > { %v950_v49 = vadd.f32 %v2956_v35, %v949_v48 }
 0x46c   : > { %v3836_v50 = vpack.c.bf16 %v958_v47, %v955_v33  ;;  %v3071_v47 = vunpack.c.h.bf16 %v3113_v40 }
 0x46d   : > { %v3838_v51 = vpack.c.bf16 %v950_v49, %v947_v45 }
 0x46e   : > { %738 = vrot.lane.b32.xlu0 %v3723_v31, %s3637_s15  ;;  %v658_v31 = vpop.xlane.xlu1 %657 }
 0x46f   : > { %v3287_v52 = vpop.f32.mrb[20].mxu0  ;;  %982 = vrot.lane.b32.xlu1 %v3838_v51, %s3636_s10  ;;  %3524 = vrcp.f32 %v658_v31 }
 0x470   : > { %v971_v53 = vadd.f32 %v3287_v52, %v2956_v35  ;;  %v962_v54 = vpop.f32.mrb[21].mxu0 }
 0x471   : > { %v963_v55 = vadd.f32 %v2956_v35, %v962_v54  ;;  %v3288_v56 = vpop.f32.mrb[22].mxu0 }
 0x472   : > { %v974_v57 = vadd.f32 %v3288_v56, %v2956_v35  ;;  %v965_v58 = vpop.f32.mrb[23].mxu0  ;;  %v833_v1 = vpop.permute.xlu1 %832 }
 0x473   : > { %v966_v59 = vadd.f32 %v2956_v35, %v965_v58 }
 0x474   : > { %v3844_v60 = vpack.c.bf16 %v974_v57, %v971_v53 }
 0x475   : > { %v3846_v61 = vpack.c.bf16 %v966_v59, %v963_v55 }
 0x477   : > { %1082 = vrot.lane.b32.xlu0 %v3846_v61, %s3636_s10 }
 0x479   : > { %v3525_v3 = vpop.eup %3524 }
 0x47a   : > { %v682_v6 = vmul.f32 %v3525_v3, %v3808_v63 }
 0x47c   : > { %v688_v11 = vpack.c.bf16 %v682_v6, %v681_v4 }
 0x4e5   : > { %v667_v2 = vpop.xlane.xlu0 %666 }
 0x4e6   : > { %3526 = vrcp.f32 %v667_v2 }
 0x4e9   : > { %v670_v7 = vpop.xlane.xlu1 %669  ;;  %v739_v8 = vpop.permute.xlu0 %738 }
 0x4ea   : > { %3528 = vrcp.f32 %v670_v7  ;;  %3260 = vmatpush3.bf16.msra.mxu1 %v739_v8 }
 0x4eb   : > { %3271 = vmatprep.subr.bf16.mxu1 %v3634_v14 }
 0x4ed   : > { %3262 = vmatmul.mubr.msk.bf16.vlgmr.msra.gmra.mrb[16].mxu1 %vm598_vm3, %v688_v11  ;;  %v1083_v12 = vpop.permute.xlu0 %1082  ;;  %v983_v19 = vpop.permute.xlu1 %982 }
 0x4ee   : > { %v1088_v15 = vsel %vm376_vm2, %v1083_v12, 0  ;;  %3272 = vmatpush3.bf16.msra.mxu1 %v833_v1  ;;  %3273 = vmatprep.mubr.msk.bf16.mxu1 %vm3635_vm1, %v3634_v14  ;;  %v988_v21 = vsel %vm376_vm2, %v983_v19, 0 }
 0x4ef   : > { %3302 = vmatpush3.bf16.xpose.msra.mxu0 %v1088_v15  ;;  %3289 = vmatprep.subr.bf16.mxu1 %v3634_v14 }
 0x4f0   : > { %3313 = vmatprep.subr.bf16.mxu0 %v3634_v14  ;;  %v3527_v63 = vpop.eup %3526 }
 0x4f1   : > { %v685_v17 = vmul.f32 %v3527_v63, %v3823_v26 }
 0x4f4   : > { %v3529_v16 = vpop.eup %3528 }
 0x4f5   : > { %v686_v18 = vmul.f32 %v3529_v16, %v3827_v32 }
 0x4f6   : > { %3304 = vmatmul.mubr.msk.bf16.vlgmr.msra.gmra.mrb[24].mxu0 %vm376_vm2, %v3846_v61 }
 0x4f7   : > { %v690_v20 = vpack.c.bf16 %v686_v18, %v685_v17  ;;  %3315 = vmatprep.mubr.msk.bf16.mxu0 %vm3635_vm1, %v3634_v14 }
 0x4f9   : > { %3274 = vmatmul.mubr.msk.bf16.vlgmr.msra.gmra.mrb[20].mxu1 %vm598_vm3, %v690_v20 }
 0x4fa   : > { %3290 = vmatpush3.bf16.xpose.msra.mxu1 %v988_v21  ;;  %3291 = vmatprep.mubr.msk.bf16.mxu1 %vm3635_vm1, %v3634_v14 }
 0x4fb   : > { %3295 = vmatprep.subr.bf16.mxu1 %v3634_v14 }
 0x501   : > { %3292 = vmatmul.mubr.msk.bf16.vlgmr.msra.gmra.mrb[24].mxu1 %vm376_vm2, %v3838_v51 }
 0x502   : > { %3297 = vmatprep.mubr.msk.bf16.mxu1 %vm3635_vm1, %v3634_v14 }
 0x5c0   : > { %v778_v22 = vpop.f32.mrb[16].mxu1 }
 0x5c1   : > { %v3263_v23 = vpop.f32.mrb[17].mxu1 }
 0x5c2   : > { %v781_v24 = vpop.f32.mrb[18].mxu1 }
 0x5c3   : > { %v880_v25 = vpack.c.bf16 %v781_v24, %v778_v22  ;;  %v3264_v26 = vpop.f32.mrb[19].mxu1 }
 0x5c5   : > { %884 = vst.msk [vmem:[#allocation2 + $0x8] sm:$0xff] %vm376_vm2, %v880_v25 }
 0x5c9   : > { %v1124_v27 = vpop.f32.mrb[24].mxu0 }
 0x5ca   : > { %v3305_v28 = vpop.f32.mrb[25].mxu0  ;;  %v1202_v46 = vadd.f32 %v3070_v42, %v1124_v27  ;;  %v3112_v42 = vld [vmem:[%s4302_s5 + $0x28] sm:$0xff]  }
 0x5cb   : > { %v1127_v29 = vpop.f32.mrb[26].mxu0 }
 0x5cc   : > { %v872_v30 = vpop.f32.mrb[20].mxu1  ;;  %v3306_v32 = vpop.f32.mrb[27].mxu0  ;;  %v1203_v54 = vadd.f32 %v3071_v47, %v1127_v29  ;;  %v1218_v55 = vsel %vm598_vm3, %v1202_v46, -inf  ;;  %v3114_v47 = vld [vmem:[%s4302_s5 + $0x38] sm:$0xff]  }
 0x5cd   : > { %v3275_v34 = vpop.f32.mrb[21].mxu1 }
 0x5ce   : > { %v875_v36 = vpop.f32.mrb[22].mxu1  ;;  %v1221_v56 = vsel %vm598_vm3, %v1203_v54, -inf }
 0x5cf   : > { %v882_v38 = vpack.c.bf16 %v875_v36, %v872_v30  ;;  %v3276_v39 = vpop.f32.mrb[23].mxu1 }
 0x5d1   : > { %886 = vst.msk [vmem:[#allocation2 + $0x18] sm:$0xff] %vm376_vm2, %v882_v38 }
 0x5d4   : > { %v1024_v35 = vpop.f32.mrb[24].mxu1 }
 0x5d5   : > { %v1198_v33 = vadd.f32 %v3062_v41, %v1024_v35  ;;  %v3293_v44 = vpop.f32.mrb[25].mxu1  ;;  %v3493_v41 = vld [vmem:[%s4298_s1 + $0x28] sm:$0xff]   ;;  %v3067_v35 = vunpack.c.h.bf16 %v3112_v42 }
 0x5d6   : > { %v1027_v45 = vpop.f32.mrb[26].mxu1 }
 0x5d7   : > { %v1199_v48 = vadd.f32 %v3063_v43, %v1027_v45  ;;  %v3294_v49 = vpop.f32.mrb[27].mxu1  ;;  %v1206_v52 = vsel %vm598_vm3, %v1198_v33, -inf  ;;  %v3066_v43 = vunpack.c.l.bf16 %v3112_v42 }
 0x5d8   : > { %1207 = vmax.xlane.f32.xlu1 %v1206_v52 }
 0x5d9   : > { %v1209_v53 = vsel %vm598_vm3, %v1199_v48, -inf }
 0x5da   : > { %1210 = vmax.xlane.f32.xlu0 %v1209_v53 }
 0x5dc   : > { %1219 = vmax.xlane.f32.xlu1 %v1218_v55  ;;  %v3075_v55 = vunpack.c.h.bf16 %v3114_v47 }
 0x5e0   : > { %1222 = vmax.xlane.f32.xlu1 %v1221_v56 }
 0x5f0   : > { %1032 = vrot.lane.b32.xlu0 %v3836_v50, %s3636_s10 }
 0x5f1   : > { %1132 = vrot.lane.b32.xlu1 %v3844_v60, %s3636_s10 }
 0x665   : > { %v1208_v57 = vpop.xlane.xlu1 %1207 }
 0x666   : > { %v1230_v58 = vsub.f32 %v1198_v33, %v1208_v57 }
 0x667   : > { %v1211_v59 = vpop.xlane.xlu0 %1210 }
 0x668   : > { %v1238_v62 = vmul.f32 1.442695, %v1230_v58  ;;  %v1231_v31 = vsub.f32 %v1199_v48, %v1211_v59 }
 0x669   : > { %v1220_v0 = vpop.xlane.xlu1 %1219 }
 0x66a   : > { %3530 = vpow2.f32 %v1238_v62  ;;  %v1240_v1 = vmul.f32 1.442695, %v1231_v31  ;;  %v1234_v2 = vsub.f32 %v1202_v46, %v1220_v0 }
 0x66b   : > { %v1033_v3 = vpop.permute.xlu0 %1032 }
 0x66c   : > { %3532 = vpow2.f32 %v1240_v1  ;;  %v1246_v4 = vmul.f32 1.442695, %v1234_v2  ;;  %v1038_v6 = vsel %vm376_vm2, %v1033_v3, 0 }
 0x66d   : > { %v1223_v7 = vpop.xlane.xlu1 %1222  ;;  %3296 = vmatpush3.bf16.xpose.msra.mxu1 %v1038_v6 }
 0x66e   : > { %3534 = vpow2.f32 %v1246_v4  ;;  %v1235_v8 = vsub.f32 %v1203_v54, %v1223_v7  ;;  %3307 = vmatprep.subr.bf16.mxu1 %v3634_v14  ;;  %v3074_v54 = vunpack.c.l.bf16 %v3114_v47 }
 0x670   : > { %v1248_v11 = vmul.f32 1.442695, %v1235_v8 }
 0x671   : > { %v1133_v12 = vpop.permute.xlu1 %1132 }
 0x672   : > { %3536 = vpow2.f32 %v1248_v11  ;;  %v1138_v63 = vsel %vm376_vm2, %v1133_v12, 0 }
 0x674   : > { %v3531_v15 = vpop.eup %3530  ;;  %3298 = vmatmul.mubr.msk.bf16.vlgmr.msra.gmra.mrb[28].mxu1 %vm376_vm2, %v3836_v50 }
 0x675   : > { %3308 = vmatpush3.bf16.xpose.msra.mxu1 %v1138_v63  ;;  %v1254_v16 = vsel %vm598_vm3, %v3531_v15, 0.0  ;;  %3309 = vmatprep.mubr.msk.bf16.mxu1 %vm3635_vm1, %v3634_v14 }
 0x676   : > { %v3533_v17 = vpop.eup %3532  ;;  %1255 = vadd.xlane.f32.xlu0 %v1254_v16  ;;  %3319 = vmatprep.subr.bf16.mxu1 %v3634_v14 }
 0x677   : > { %v1257_v18 = vsel %vm598_vm3, %v3533_v17, 0.0 }
 0x678   : > { %v3535_v19 = vpop.eup %3534  ;;  %1258 = vadd.xlane.f32.xlu1 %v1257_v18 }
 0x679   : > { %v1266_v20 = vsel %vm598_vm3, %v3535_v19, 0.0 }
 0x67a   : > { %1267 = vadd.xlane.f32.xlu0 %v1266_v20 }
 0x67c   : > { %v3537_v21 = vpop.eup %3536  ;;  %3310 = vmatmul.mubr.msk.bf16.vlgmr.msra.gmra.mrb[32].mxu1 %vm376_vm2, %v3844_v60 }
 0x67d   : > { %v1269_v22 = vsel %vm598_vm3, %v3537_v21, 0.0  ;;  %3321 = vmatprep.mubr.msk.bf16.mxu1 %vm3635_vm1, %v3634_v14 }
 0x67e   : > { %1270 = vadd.xlane.f32.xlu0 %v1269_v22 }
 0x689   : > { %1392 = vrot.lane.b32.xlu1 %v3846_v61, %s3637_s15 }
 0x694   : > { %1298 = vrot.lane.b32.xlu0 %v3838_v51, %s3637_s15  ;;  %v3492_v51 = vld [vmem:[%s4298_s1 + $0x20] sm:$0xff]  }
 0x703   : > { %v1256_v23 = vpop.xlane.xlu0 %1255 }
 0x704   : > { %3538 = vrcp.f32 %v1256_v23 }
 0x705   : > { %v1259_v24 = vpop.xlane.xlu1 %1258 }
 0x706   : > { %3540 = vrcp.f32 %v1259_v24 }
 0x707   : > { %v1268_v25 = vpop.xlane.xlu0 %1267 }
 0x708   : > { %3542 = vrcp.f32 %v1268_v25 }
 0x709   : > { %v1393_v36 = vpop.permute.xlu1 %1392 }
 0x70b   : > { %v1271_v26 = vpop.xlane.xlu0 %1270 }
 0x70c   : > { %3544 = vrcp.f32 %v1271_v26 }
 0x70e   : > { %v3539_v27 = vpop.eup %3538 }
 0x70f   : > { %v1299_v28 = vpop.permute.xlu0 %1298  ;;  %v1286_v30 = vmul.f32 %v3539_v27, %v3531_v15 }
 0x710   : > { %v3541_v29 = vpop.eup %3540  ;;  %3314 = vmatpush3.bf16.msra.mxu0 %v1299_v28 }
 0x711   : > { %v1287_v32 = vmul.f32 %v3541_v29, %v3533_v17  ;;  %3325 = vmatprep.subr.bf16.mxu0 %v3634_v14 }
 0x712   : > { %v3543_v34 = vpop.eup %3542 }
 0x713   : > { %v1294_v61 = vpack.c.bf16 %v1287_v32, %v1286_v30  ;;  %v1290_v39 = vmul.f32 %v3543_v34, %v3535_v19 }
 0x715   : > { %3316 = vmatmul.mubr.msk.bf16.vlgmr.msra.gmra.mrb[28].mxu0 %vm598_vm3, %v1294_v61  ;;  %v2984_v61 = vld [vmem:[%s4299_s2 + $0x2] ss:$0 sm:$0xff] }
 0x716   : > { %v3545_v37 = vpop.eup %3544  ;;  %3326 = vmatpush3.bf16.msra.mxu0 %v1393_v36  ;;  %3327 = vmatprep.mubr.msk.bf16.mxu0 %vm3635_vm1, %v3634_v14 }
 0x717   : > { %v1291_v38 = vmul.f32 %v3545_v37, %v3537_v21  ;;  %3337 = vmatprep.subr.bf16.mxu0 %v3492_v51 }
 0x719   : > { %v1296_v40 = vpack.c.bf16 %v1291_v38, %v1290_v39 }
 0x71d   : > { %3328 = vmatmul.mubr.msk.bf16.vlgmr.msra.gmra.mrb[32].mxu0 %vm598_vm3, %v1296_v40 }
 0x71e   : > { %3338 = vmatpush3.bf16.msra.mxu0 %v3492_v51  ;;  %3341 = vmatprep.mubr.msk.bf16.mxu0 %vm291_vm0, %v3698_v5 }
 0x71f   : > { %3339 = vmatprep.subr.bf16.mxu0 %v3493_v41 }
 0x722   : > { %3340 = vmatpush3.bf16.msra.mxu0 %v3493_v41 }
 0x723   : > { %3361 = vmatprep.subr.bf16.mxu0 %v3634_v14 }
 0x725   : > { %3342 = vmatmul.mubr.msk.bf16.vlgmr.msra.gmra.mrb[36].mxu0 %vm291_vm0, %v3700_v9 }
 0x726   : > { %3345 = vmatprep.mubr.msk.bf16.mxu0 %vm291_vm0, %v3702_v10 }
 0x72d   : > { %3346 = vmatmul.mubr.msk.bf16.gmra.mrb[40].mxu0 %vm291_vm0, %v3706_v13 }
 0x72e   : > { %3363 = vmatprep.mubr.msk.bf16.mxu0 %vm3635_vm1, %v3634_v14 }
 0x747   : > { %v1074_v33 = vpop.f32.mrb[28].mxu1 }
 0x748   : > { %v1200_v44 = vadd.f32 %v3066_v43, %v1074_v33  ;;  %v3299_v45 = vpop.f32.mrb[29].mxu1 }
 0x749   : > { %v1077_v46 = vpop.f32.mrb[30].mxu1 }
 0x74a   : > { %v1201_v48 = vadd.f32 %v3067_v35, %v1077_v46  ;;  %v3300_v49 = vpop.f32.mrb[31].mxu1  ;;  %v1212_v52 = vsel %vm598_vm3, %v1200_v44, -inf }
 0x74b   : > { %1213 = vmax.xlane.f32.xlu1 %v1212_v52 }
 0x74c   : > { %v1215_v53 = vsel %vm598_vm3, %v1201_v48, -inf }
 0x74d   : > { %1216 = vmax.xlane.f32.xlu0 %v1215_v53 }
 0x74f   : > { %v1174_v56 = vpop.f32.mrb[32].mxu1 }
 0x750   : > { %v1204_v57 = vadd.f32 %v3074_v54, %v1174_v56  ;;  %v3311_v58 = vpop.f32.mrb[33].mxu1 }
 0x751   : > { %v1177_v59 = vpop.f32.mrb[34].mxu1 }
 0x752   : > { %v3940_v62 = vadd.f32 %v3075_v55, %v1177_v59  ;;  %v3312_v31 = vpop.f32.mrb[35].mxu1  ;;  %v1224_v0 = vsel %vm598_vm3, %v1204_v57, -inf }
 0x753   : > { %1225 = vmax.xlane.f32.xlu0 %v1224_v0 }
 0x754   : > { %v1227_v1 = vsel %vm598_vm3, %v3940_v62, -inf }
 0x755   : > { %1228 = vmax.xlane.f32.xlu1 %v1227_v1 }
 0x7d8   : > { %v1214_v2 = vpop.xlane.xlu1 %1213 }
 0x7d9   : > { %v1232_v3 = vsub.f32 %v1200_v44, %v1214_v2 }
 0x7da   : > { %v1217_v4 = vpop.xlane.xlu0 %1216 }
 0x7db   : > { %v1242_v6 = vmul.f32 1.442695, %v1232_v3  ;;  %v1233_v7 = vsub.f32 %v1201_v48, %v1217_v4 }
 0x7dd   : > { %3546 = vpow2.f32 %v1242_v6  ;;  %v1244_v8 = vmul.f32 1.442695, %v1233_v7 }
 0x7df   : > { %3548 = vpow2.f32 %v1244_v8 }
 0x7e0   : > { %v1226_v11 = vpop.xlane.xlu0 %1225 }
 0x7e1   : > { %v1236_v12 = vsub.f32 %v1204_v57, %v1226_v11 }
 0x7e2   : > { %v1229_v53 = vpop.xlane.xlu1 %1228 }
 0x7e3   : > { %v1250_v15 = vmul.f32 1.442695, %v1236_v12 }
 0x7e5   : > { %3550 = vpow2.f32 %v1250_v15 }
 0x7e7   : > { %v3547_v63 = vpop.eup %3546 }
 0x7e8   : > { %v3945_v16 = vpop.f32.mrb[28].mxu0  ;;  %v1260_v17 = vsel %vm598_vm3, %v3547_v63, 0.0 }
 0x7e9   : > { %v3549_v18 = vpop.eup %3548  ;;  %1261 = vadd.xlane.f32.xlu0 %v1260_v17  ;;  %v3317_v19 = vpop.f32.mrb[29].mxu0 }
 0x7ea   : > { %v3948_v20 = vpop.f32.mrb[30].mxu0  ;;  %v1263_v21 = vsel %vm598_vm3, %v3549_v18, 0.0 }
 0x7eb   : > { %v1486_v22 = vpack.c.bf16 %v3948_v20, %v3945_v16  ;;  %v3318_v23 = vpop.f32.mrb[31].mxu0  ;;  %1264 = vadd.xlane.f32.xlu1 %v1263_v21 }
 0x7ef   : > { %v3953_v24 = vpop.eup %3550 }
 0x7f0   : > { %v3955_v25 = vpop.f32.mrb[32].mxu0  ;;  %v1272_v26 = vsel %vm598_vm3, %v3953_v24, 0.0 }
 0x7f1   : > { %v3329_v27 = vpop.f32.mrb[33].mxu0  ;;  %1273 = vadd.xlane.f32.xlu0 %v1272_v26 }
 0x7f2   : > { %v3959_v28 = vpop.f32.mrb[34].mxu0 }
 0x7f3   : > { %v1488_v29 = vpack.c.bf16 %v3959_v28, %v3955_v25  ;;  %v3330_v30 = vpop.f32.mrb[35].mxu0 }
 0x7f8   : > { %v3343_v32 = vpop.f32.mrb[36].mxu0 }
 0x7f9   : > { %v1579_v51 = vadd.f32 %v3343_v32, %v2984_v61  ;;  %v1570_v34 = vpop.f32.mrb[37].mxu0 }
 0x7fa   : > { %v1571_v36 = vadd.f32 %v2984_v61, %v1570_v34  ;;  %v3344_v37 = vpop.f32.mrb[38].mxu0 }
 0x7fb   : > { %v1582_v38 = vadd.f32 %v3344_v37, %v2984_v61  ;;  %v1573_v39 = vpop.f32.mrb[39].mxu0  ;;  %v3115_v37 = vld [vmem:[%s4302_s5 + $0x40] sm:$0xff]  }
 0x7fc   : > { %1439 = vrot.lane.b32.xlu1 %v3844_v60, %s3637_s15  ;;  %v1574_v40 = vadd.f32 %v2984_v61, %v1573_v39  ;;  %v1237_v60 = vsub.f32 %v3940_v62, %v1229_v53 }
 0x7fd   : > { %v3968_v41 = vpack.c.bf16 %v1582_v38, %v1579_v51 }
 0x7fe   : > { %v3970_v42 = vpack.c.bf16 %v1574_v40, %v1571_v36  ;;  %v1252_v54 = vmul.f32 1.442695, %v1237_v60  ;;  %v3117_v40 = vld [vmem:[%s4302_s5 + $0x50] sm:$0xff]  }
 0x7ff   : > { %v3087_v53 = vunpack.c.h.bf16 %v3117_v40 }
 0x800   : > { %v3347_v43 = vpop.f32.mrb[40].mxu0  ;;  %3552 = vpow2.f32 %v1252_v54 }
 0x801   : > { %v1595_v35 = vadd.f32 %v3347_v43, %v2984_v61  ;;  %v1586_v33 = vpop.f32.mrb[41].mxu0  ;;  %v3078_v43 = vunpack.c.l.bf16 %v3115_v37 }
 0x802   : > { %v1587_v44 = vadd.f32 %v2984_v61, %v1586_v33  ;;  %v3348_v45 = vpop.f32.mrb[42].mxu0  ;;  %v3079_v33 = vunpack.c.h.bf16 %v3115_v37 }
 0x803   : > { %v1598_v46 = vadd.f32 %v3348_v45, %v2984_v61  ;;  %v1589_v47 = vpop.f32.mrb[43].mxu0 }
 0x804   : > { %v1590_v48 = vadd.f32 %v2984_v61, %v1589_v47 }
 0x805   : > { %v3972_v49 = vpack.c.bf16 %v1598_v46, %v1595_v35  ;;  %v3086_v35 = vunpack.c.l.bf16 %v3117_v40 }
 0x806   : > { %v3974_v52 = vpack.c.bf16 %v1590_v48, %v1587_v44 }
 0x807   : > { %1345 = vrot.lane.b32.xlu0 %v3836_v50, %s3637_s15 }
 0x80a   : > { %v3553_v55 = vpop.eup %3552 }
 0x80b   : > { %1706 = vrot.lane.b32.xlu0 %v3974_v52, %s3636_s10  ;;  %v1275_v56 = vsel %vm598_vm3, %v3553_v55, 0.0 }
 0x820   : > { %1276 = vadd.xlane.f32.xlu1 %v1275_v56 }
 0x831   : > { %1606 = vrot.lane.b32.xlu1 %v3970_v42, %s3636_s10 }
 0x876   : > { %v1262_v57 = vpop.xlane.xlu0 %1261 }
 0x877   : > { %3554 = vrcp.f32 %v1262_v57 }
 0x878   : > { %v1265_v58 = vpop.xlane.xlu1 %1264 }
 0x879   : > { %3556 = vrcp.f32 %v1265_v58 }
 0x87c   : > { %v1440_v6 = vpop.permute.xlu1 %1439 }
 0x87e   : > { %v1274_v59 = vpop.xlane.xlu0 %1273 }
 0x87f   : > { %3558 = vrcp.f32 %v1274_v59 }
 0x881   : > { %v3555_v50 = vpop.eup %3554 }
 0x882   : > { %v1346_v31 = vpop.permute.xlu0 %1345  ;;  %v1288_v0 = vmul.f32 %v3555_v50, %v3547_v63 }
 0x883   : > { %v3557_v62 = vpop.eup %3556  ;;  %3320 = vmatpush3.bf16.msra.mxu1 %v1346_v31 }
 0x884   : > { %v1289_v1 = vmul.f32 %v3557_v62, %v3549_v18  ;;  %3331 = vmatprep.subr.bf16.mxu1 %v3634_v14 }
 0x886   : > { %v1707_v2 = vpop.permute.xlu0 %1706  ;;  %v1295_v3 = vpack.c.bf16 %v1289_v1, %v1288_v0 }
 0x887   : > { %v1712_v4 = vsel %vm376_vm2, %v1707_v2, 0 }
 0x888   : > { %3322 = vmatmul.mubr.msk.bf16.vlgmr.msra.gmra.mrb[36].mxu1 %vm598_vm3, %v1295_v3  ;;  %3362 = vmatpush3.bf16.xpose.msra.mxu0 %v1712_v4 }
 0x889   : > { %3332 = vmatpush3.bf16.msra.mxu1 %v1440_v6  ;;  %3333 = vmatprep.mubr.msk.bf16.mxu1 %vm3635_vm1, %v3634_v14  ;;  %v3559_v8 = vpop.eup %3558 }
 0x88a   : > { %3349 = vmatprep.subr.bf16.mxu1 %v3634_v14  ;;  %3373 = vmatprep.subr.bf16.mxu0 %v3634_v14  ;;  %v1292_v12 = vmul.f32 %v3559_v8, %v3953_v24 }
 0x88f   : > { %3364 = vmatmul.mubr.msk.bf16.vlgmr.msra.gmra.mrb[44].mxu0 %vm376_vm2, %v3974_v52 }
 0x890   : > { %3375 = vmatprep.mubr.msk.bf16.mxu0 %vm3635_vm1, %v3634_v14 }
 0x8ad   : > { %v1277_v7 = vpop.xlane.xlu1 %1276 }
 0x8ae   : > { %3560 = vrcp.f32 %v1277_v7 }
 0x8b1   : > { %v1607_v63 = vpop.permute.xlu1 %1606 }
 0x8b2   : > { %v1612_v18 = vsel %vm376_vm2, %v1607_v63, 0 }
 0x8b8   : > { %v3561_v11 = vpop.eup %3560 }
 0x8b9   : > { %v1293_v15 = vmul.f32 %v3561_v11, %v3553_v55 }
 0x8bb   : > { %v1297_v17 = vpack.c.bf16 %v1293_v15, %v1292_v12 }
 0x8bd   : > { %3334 = vmatmul.mubr.msk.bf16.vlgmr.msra.gmra.mrb[40].mxu1 %vm598_vm3, %v1297_v17 }
 0x8be   : > { %3350 = vmatpush3.bf16.xpose.msra.mxu1 %v1612_v18  ;;  %3351 = vmatprep.mubr.msk.bf16.mxu1 %vm3635_vm1, %v3634_v14 }
 0x8bf   : > { %3355 = vmatprep.subr.bf16.mxu1 %v3634_v14 }
 0x8c5   : > { %3352 = vmatmul.mubr.msk.bf16.vlgmr.msra.gmra.mrb[44].mxu1 %vm376_vm2, %v3970_v42 }
 0x8c6   : > { %3357 = vmatprep.mubr.msk.bf16.mxu1 %vm3635_vm1, %v3634_v14 }
 0x95b   : > { %v4005_v19 = vpop.f32.mrb[36].mxu1 }
 0x95c   : > { %v3323_v21 = vpop.f32.mrb[37].mxu1 }
 0x95d   : > { %v4007_v23 = vpop.f32.mrb[38].mxu1 }
 0x95e   : > { %v1487_v24 = vpack.c.bf16 %v4007_v23, %v4005_v19  ;;  %v3324_v26 = vpop.f32.mrb[39].mxu1 }
 0x962   : > { %v1748_v27 = vpop.f32.mrb[44].mxu0 }
 0x963   : > { %v3365_v30 = vpop.f32.mrb[45].mxu0  ;;  %v1826_v48 = vadd.f32 %v3086_v35, %v1748_v27 }
 0x964   : > { %v1751_v32 = vpop.f32.mrb[46].mxu0 }
 0x965   : > { %v3366_v61 = vpop.f32.mrb[47].mxu0  ;;  %v1827_v57 = vadd.f32 %v3087_v53, %v1751_v32  ;;  %v1842_v58 = vsel %vm598_vm3, %v1826_v48, -inf }
 0x967   : > { %v1845_v59 = vsel %vm598_vm3, %v1827_v57, -inf }
 0x990   : > { %v4011_v51 = vpop.f32.mrb[40].mxu1 }
 0x991   : > { %v3335_v34 = vpop.f32.mrb[41].mxu1 }
 0x992   : > { %v4013_v36 = vpop.f32.mrb[42].mxu1 }
 0x993   : > { %v1489_v38 = vpack.c.bf16 %v4013_v36, %v4011_v51  ;;  %v3336_v39 = vpop.f32.mrb[43].mxu1 }
 0x998   : > { %v1648_v44 = vpop.f32.mrb[44].mxu1 }
 0x999   : > { %v1822_v45 = vadd.f32 %v3078_v43, %v1648_v44  ;;  %v3353_v46 = vpop.f32.mrb[45].mxu1 }
 0x99a   : > { %v1651_v47 = vpop.f32.mrb[46].mxu1 }
 0x99b   : > { %v1823_v60 = vadd.f32 %v3079_v33, %v1651_v47  ;;  %v3354_v54 = vpop.f32.mrb[47].mxu1  ;;  %v1830_v55 = vsel %vm598_vm3, %v1822_v45, -inf }
 0x99c   : > { %1831 = vmax.xlane.f32.xlu1 %v1830_v55 }
 0x99d   : > { %v1833_v56 = vsel %vm598_vm3, %v1823_v60, -inf }
 0x99e   : > { %1834 = vmax.xlane.f32.xlu0 %v1833_v56  ;;  %v3495_v56 = vld [vmem:[%s4298_s1 + $0x38] sm:$0xff]  }
 0x9a0   : > { %1843 = vmax.xlane.f32.xlu1 %v1842_v58 }
 0x9a4   : > { %1846 = vmax.xlane.f32.xlu1 %v1845_v59 }
 0x9b4   : > { %1656 = vrot.lane.b32.xlu0 %v3968_v41, %s3636_s10 }
 0x9b5   : > { %1756 = vrot.lane.b32.xlu1 %v3972_v49, %s3636_s10 }
 0xa29   : > { %v1832_v50 = vpop.xlane.xlu1 %1831 }
 0xa2a   : > { %v1854_v31 = vsub.f32 %v1822_v45, %v1832_v50 }
 0xa2b   : > { %v1835_v62 = vpop.xlane.xlu0 %1834 }
 0xa2c   : > { %v1862_v0 = vmul.f32 1.442695, %v1854_v31  ;;  %v1855_v1 = vsub.f32 %v1823_v60, %v1835_v62 }
 0xa2d   : > { %v1844_v2 = vpop.xlane.xlu1 %1843 }
 0xa2e   : > { %3562 = vpow2.f32 %v1862_v0  ;;  %v1864_v3 = vmul.f32 1.442695, %v1855_v1  ;;  %v1858_v4 = vsub.f32 %v1826_v48, %v1844_v2 }
 0xa2f   : > { %v1657_v6 = vpop.permute.xlu0 %1656 }
 0xa30   : > { %3564 = vpow2.f32 %v1864_v3  ;;  %v1870_v7 = vmul.f32 1.442695, %v1858_v4  ;;  %v1662_v8 = vsel %vm376_vm2, %v1657_v6, 0 }
 0xa31   : > { %v1847_v11 = vpop.xlane.xlu1 %1846  ;;  %3356 = vmatpush3.bf16.xpose.msra.mxu1 %v1662_v8 }
 0xa32   : > { %3566 = vpow2.f32 %v1870_v7  ;;  %v1859_v12 = vsub.f32 %v1827_v57, %v1847_v11  ;;  %3367 = vmatprep.subr.bf16.mxu1 %v3634_v14 }
 0xa34   : > { %v1872_v15 = vmul.f32 1.442695, %v1859_v12 }
 0xa35   : > { %v1757_v63 = vpop.permute.xlu1 %1756 }
 0xa36   : > { %3568 = vpow2.f32 %v1872_v15  ;;  %v1762_v18 = vsel %vm376_vm2, %v1757_v63, 0 }
 0xa38   : > { %v3563_v17 = vpop.eup %3562  ;;  %3358 = vmatmul.mubr.msk.bf16.vlgmr.msra.gmra.mrb[48].mxu1 %vm376_vm2, %v3968_v41 }
 0xa39   : > { %3368 = vmatpush3.bf16.xpose.msra.mxu1 %v1762_v18  ;;  %v1878_v21 = vsel %vm598_vm3, %v3563_v17, 0.0  ;;  %3369 = vmatprep.mubr.msk.bf16.mxu1 %vm3635_vm1, %v3634_v14 }
 0xa3a   : > { %v3565_v26 = vpop.eup %3564  ;;  %1879 = vadd.xlane.f32.xlu0 %v1878_v21  ;;  %3379 = vmatprep.subr.bf16.mxu1 %v3634_v14 }
 0xa3b   : > { %v1881_v27 = vsel %vm598_vm3, %v3565_v26, 0.0 }
 0xa3c   : > { %v3567_v30 = vpop.eup %3566  ;;  %1882 = vadd.xlane.f32.xlu1 %v1881_v27 }
 0xa3d   : > { %v1890_v32 = vsel %vm598_vm3, %v3567_v30, 0.0 }
 0xa3e   : > { %1891 = vadd.xlane.f32.xlu0 %v1890_v32 }
 0xa40   : > { %v3569_v61 = vpop.eup %3568  ;;  %3370 = vmatmul.mubr.msk.bf16.vlgmr.msra.gmra.mrb[52].mxu1 %vm376_vm2, %v3972_v49 }
 0xa41   : > { %v1893_v34 = vsel %vm598_vm3, %v3569_v61, 0.0  ;;  %3381 = vmatprep.mubr.msk.bf16.mxu1 %vm3635_vm1, %v3634_v14 }
 0xa42   : > { %1894 = vadd.xlane.f32.xlu0 %v1893_v34 }
 0xa4d   : > { %2016 = vrot.lane.b32.xlu1 %v3974_v52, %s3637_s15 }
 0xa58   : > { %1922 = vrot.lane.b32.xlu0 %v3970_v42, %s3637_s15  ;;  %v3494_v42 = vld [vmem:[%s4298_s1 + $0x30] sm:$0xff]  }
 0xac7   : > { %v1880_v37 = vpop.xlane.xlu0 %1879 }
 0xac8   : > { %3570 = vrcp.f32 %v1880_v37 }
 0xac9   : > { %v1883_v39 = vpop.xlane.xlu1 %1882 }
 0xaca   : > { %3572 = vrcp.f32 %v1883_v39 }
 0xacb   : > { %v1892_v40 = vpop.xlane.xlu0 %1891 }
 0xacc   : > { %3574 = vrcp.f32 %v1892_v40 }
 0xacd   : > { %v2017_v48 = vpop.permute.xlu1 %2016 }
 0xacf   : > { %v1895_v43 = vpop.xlane.xlu0 %1894 }
 0xad0   : > { %3576 = vrcp.f32 %v1895_v43 }
 0xad2   : > { %v3571_v35 = vpop.eup %3570 }
 0xad3   : > { %v1923_v33 = vpop.permute.xlu0 %1922  ;;  %v1910_v45 = vmul.f32 %v3571_v35, %v3563_v17 }
 0xad4   : > { %v3573_v44 = vpop.eup %3572  ;;  %3374 = vmatpush3.bf16.msra.mxu0 %v1923_v33 }
 0xad5   : > { %v1911_v46 = vmul.f32 %v3573_v44, %v3565_v26  ;;  %3385 = vmatprep.subr.bf16.mxu0 %v3634_v14 }
 0xad6   : > { %v3575_v47 = vpop.eup %3574 }
 0xad7   : > { %v1918_v52 = vpack.c.bf16 %v1911_v46, %v1910_v45  ;;  %v1914_v54 = vmul.f32 %v3575_v47, %v3567_v30 }
 0xad9   : > { %3376 = vmatmul.mubr.msk.bf16.vlgmr.msra.gmra.mrb[48].mxu0 %vm598_vm3, %v1918_v52 }
 0xada   : > { %v3577_v53 = vpop.eup %3576  ;;  %3386 = vmatpush3.bf16.msra.mxu0 %v2017_v48  ;;  %3387 = vmatprep.mubr.msk.bf16.mxu0 %vm3635_vm1, %v3634_v14 }
 0xadb   : > { %v1915_v60 = vmul.f32 %v3577_v53, %v3569_v61  ;;  %3397 = vmatprep.subr.bf16.mxu0 %v3494_v42 }
 0xadd   : > { %v1920_v55 = vpack.c.bf16 %v1915_v60, %v1914_v54 }
 0xae1   : > { %3388 = vmatmul.mubr.msk.bf16.vlgmr.msra.gmra.mrb[52].mxu0 %vm598_vm3, %v1920_v55  ;;  %v3012_v55 = vld [vmem:[%s4299_s2 + $0x3] ss:$0 sm:$0xff] }
 0xae2   : > { %3398 = vmatpush3.bf16.msra.mxu0 %v3494_v42  ;;  %3401 = vmatprep.mubr.msk.bf16.mxu0 %vm291_vm0, %v3698_v5  ;;  %v3116_v5 = vld [vmem:[%s4302_s5 + $0x48] sm:$0xff]  }
 0xae3   : > { %3399 = vmatprep.subr.bf16.mxu0 %v3495_v56  ;;  %v3082_v57 = vunpack.c.l.bf16 %v3116_v5  ;;  %v3083_v58 = vunpack.c.h.bf16 %v3116_v5 }
 0xae6   : > { %3400 = vmatpush3.bf16.msra.mxu0 %v3495_v56 }
 0xae7   : > { %3421 = vmatprep.subr.bf16.mxu0 %v3634_v14 }
 0xae9   : > { %3402 = vmatmul.mubr.msk.bf16.vlgmr.msra.gmra.mrb[56].mxu0 %vm291_vm0, %v3700_v9  ;;  %v3118_v9 = vld [vmem:[%s4302_s5 + $0x58] sm:$0xff]  }
 0xaea   : > { %3405 = vmatprep.mubr.msk.bf16.mxu0 %vm291_vm0, %v3702_v10  ;;  %v3090_v2 = vunpack.c.l.bf16 %v3118_v9  ;;  %v3091_v3 = vunpack.c.h.bf16 %v3118_v9 }
 0xaf1   : > { %3406 = vmatmul.mubr.msk.bf16.gmra.mrb[60].mxu0 %vm291_vm0, %v3706_v13 }
 0xaf2   : > { %3423 = vmatprep.mubr.msk.bf16.mxu0 %vm3635_vm1, %v3634_v14 }
 0xb0b   : > { %v1698_v59 = vpop.f32.mrb[48].mxu1 }
 0xb0c   : > { %v1824_v50 = vadd.f32 %v3082_v57, %v1698_v59  ;;  %v3359_v31 = vpop.f32.mrb[49].mxu1 }
 0xb0d   : > { %v1701_v62 = vpop.f32.mrb[50].mxu1 }
 0xb0e   : > { %v1825_v10 = vadd.f32 %v3083_v58, %v1701_v62  ;;  %v3360_v0 = vpop.f32.mrb[51].mxu1  ;;  %v1836_v13 = vsel %vm598_vm3, %v1824_v50, -inf }
 0xb0f   : > { %1837 = vmax.xlane.f32.xlu1 %v1836_v13 }
 0xb10   : > { %v1839_v1 = vsel %vm598_vm3, %v1825_v10, -inf }
 0xb11   : > { %1840 = vmax.xlane.f32.xlu0 %v1839_v1 }
 0xb13   : > { %v1798_v4 = vpop.f32.mrb[52].mxu1 }
 0xb14   : > { %v1828_v6 = vadd.f32 %v3090_v2, %v1798_v4  ;;  %v3371_v7 = vpop.f32.mrb[53].mxu1 }
 0xb15   : > { %v1801_v8 = vpop.f32.mrb[54].mxu1 }
 0xb16   : > { %v4081_v11 = vadd.f32 %v3091_v3, %v1801_v8  ;;  %v3372_v12 = vpop.f32.mrb[55].mxu1  ;;  %v1848_v15 = vsel %vm598_vm3, %v1828_v6, -inf }
 0xb17   : > { %1849 = vmax.xlane.f32.xlu0 %v1848_v15 }
 0xb18   : > { %v1851_v63 = vsel %vm598_vm3, %v4081_v11, -inf }
 0xb19   : > { %1852 = vmax.xlane.f32.xlu1 %v1851_v63 }
 0xb9c   : > { %v1838_v17 = vpop.xlane.xlu1 %1837 }
 0xb9d   : > { %v1856_v18 = vsub.f32 %v1824_v50, %v1838_v17 }
 0xb9e   : > { %v1841_v21 = vpop.xlane.xlu0 %1840 }
 0xb9f   : > { %v1866_v26 = vmul.f32 1.442695, %v1856_v18  ;;  %v1857_v27 = vsub.f32 %v1825_v10, %v1841_v21 }
 0xba1   : > { %3578 = vpow2.f32 %v1866_v26  ;;  %v1868_v30 = vmul.f32 1.442695, %v1857_v27 }
 0xba3   : > { %3580 = vpow2.f32 %v1868_v30 }
 0xba4   : > { %v1850_v32 = vpop.xlane.xlu0 %1849 }
 0xba5   : > { %v1860_v61 = vsub.f32 %v1828_v6, %v1850_v32 }
 0xba6   : > { %v1853_v15 = vpop.xlane.xlu1 %1852 }
 0xba7   : > { %v1874_v34 = vmul.f32 1.442695, %v1860_v61 }
 0xba9   : > { %3582 = vpow2.f32 %v1874_v34 }
 0xbab   : > { %v3579_v37 = vpop.eup %3578 }
 0xbac   : > { %v4086_v39 = vpop.f32.mrb[48].mxu0  ;;  %v1884_v40 = vsel %vm598_vm3, %v3579_v37, 0.0 }
 0xbad   : > { %v3581_v43 = vpop.eup %3580  ;;  %1885 = vadd.xlane.f32.xlu0 %v1884_v40  ;;  %v3377_v35 = vpop.f32.mrb[49].mxu0 }
 0xbae   : > { %v4089_v33 = vpop.f32.mrb[50].mxu0  ;;  %v1887_v44 = vsel %vm598_vm3, %v3581_v43, 0.0 }
 0xbaf   : > { %v2110_v45 = vpack.c.bf16 %v4089_v33, %v4086_v39  ;;  %v3378_v46 = vpop.f32.mrb[51].mxu0  ;;  %1888 = vadd.xlane.f32.xlu1 %v1887_v44 }
 0xbb3   : > { %v4094_v52 = vpop.eup %3582 }
 0xbb4   : > { %v4096_v42 = vpop.f32.mrb[52].mxu0  ;;  %v1896_v47 = vsel %vm598_vm3, %v4094_v52, 0.0 }
 0xbb5   : > { %v3389_v48 = vpop.f32.mrb[53].mxu0  ;;  %1897 = vadd.xlane.f32.xlu0 %v1896_v47 }
 0xbb6   : > { %v4100_v53 = vpop.f32.mrb[54].mxu0 }
 0xbb7   : > { %v2112_v60 = vpack.c.bf16 %v4100_v53, %v4096_v42  ;;  %v3390_v54 = vpop.f32.mrb[55].mxu0 }
 0xbbc   : > { %v3403_v56 = vpop.f32.mrb[56].mxu0 }
 0xbbd   : > { %v2203_v5 = vadd.f32 %v3403_v56, %v3012_v55  ;;  %v2194_v57 = vpop.f32.mrb[57].mxu0 }
 0xbbe   : > { %v2195_v58 = vadd.f32 %v3012_v55, %v2194_v57  ;;  %v3404_v59 = vpop.f32.mrb[58].mxu0 }
 0xbbf   : > { %v2206_v50 = vadd.f32 %v3404_v59, %v3012_v55  ;;  %v2197_v31 = vpop.f32.mrb[59].mxu0 }
 0xbc0   : > { %2063 = vrot.lane.b32.xlu1 %v3972_v49, %s3637_s15  ;;  %v2198_v62 = vadd.f32 %v3012_v55, %v2197_v31  ;;  %v1861_v49 = vsub.f32 %v4081_v11, %v1853_v15 }
 0xbc1   : > { %v4109_v9 = vpack.c.bf16 %v2206_v50, %v2203_v5 }
 0xbc2   : > { %v4111_v10 = vpack.c.bf16 %v2198_v62, %v2195_v58  ;;  %v1876_v63 = vmul.f32 1.442695, %v1861_v49 }
 0xbc4   : > { %v3407_v0 = vpop.f32.mrb[60].mxu0  ;;  %3584 = vpow2.f32 %v1876_v63 }
 0xbc5   : > { %v2219_v13 = vadd.f32 %v3407_v0, %v3012_v55  ;;  %v2210_v1 = vpop.f32.mrb[61].mxu0 }
 0xbc6   : > { %v2211_v2 = vadd.f32 %v3012_v55, %v2210_v1  ;;  %v3408_v3 = vpop.f32.mrb[62].mxu0 }
 0xbc7   : > { %v2222_v4 = vadd.f32 %v3408_v3, %v3012_v55  ;;  %v2213_v6 = vpop.f32.mrb[63].mxu0 }
 0xbc8   : > { %v2214_v7 = vadd.f32 %v3012_v55, %v2213_v6  ;;  %v3119_v6 = vld [vmem:[%s4302_s5 + $0x60] sm:$0xff]  }
 0xbc9   : > { %v4113_v8 = vpack.c.bf16 %v2222_v4, %v2219_v13 }
 0xbca   : > { %v4115_v12 = vpack.c.bf16 %v2214_v7, %v2211_v2 }
 0xbcb   : > { %1969 = vrot.lane.b32.xlu0 %v3968_v41, %s3637_s15 }
 0xbce   : > { %v3585_v17 = vpop.eup %3584 }
 0xbcf   : > { %2280 = vrot.lane.b32.xlu0 %v4109_v9, %s3636_s10  ;;  %v1899_v18 = vsel %vm598_vm3, %v3585_v17, 0.0 }
 0xbd3   : > { %2380 = vrot.lane.b32.xlu0 %v4113_v8, %s3636_s10 }
 0xbe4   : > { %1900 = vadd.xlane.f32.xlu1 %v1899_v18  ;;  %v3095_v18 = vunpack.c.h.bf16 %v3119_v6 }
 0xbf5   : > { %2230 = vrot.lane.b32.xlu1 %v4111_v10, %s3636_s10 }
 0xbf9   : > { %2330 = vrot.lane.b32.xlu1 %v4115_v12, %s3636_s10 }
 0xc3a   : > { %v1886_v41 = vpop.xlane.xlu0 %1885 }
 0xc3b   : > { %3586 = vrcp.f32 %v1886_v41 }
 0xc3c   : > { %v1889_v11 = vpop.xlane.xlu1 %1888 }
 0xc3d   : > { %3588 = vrcp.f32 %v1889_v11 }
 0xc40   : > { %v2064_v40 = vpop.permute.xlu1 %2063 }
 0xc42   : > { %v1898_v21 = vpop.xlane.xlu0 %1897 }
 0xc43   : > { %3590 = vrcp.f32 %v1898_v21 }
 0xc45   : > { %v3587_v26 = vpop.eup %3586 }
 0xc46   : > { %v1970_v27 = vpop.permute.xlu0 %1969  ;;  %v1912_v32 = vmul.f32 %v3587_v26, %v3579_v37 }
 0xc47   : > { %v3589_v30 = vpop.eup %3588  ;;  %3380 = vmatpush3.bf16.msra.mxu1 %v1970_v27  ;;  %v3120_v27 = vld [vmem:[%s4302_s5 + $0x68] sm:$0xff]  }
 0xc48   : > { %v1913_v61 = vmul.f32 %v3589_v30, %v3581_v43  ;;  %3391 = vmatprep.subr.bf16.mxu1 %v3634_v14 }
 0xc4a   : > { %v1919_v34 = vpack.c.bf16 %v1913_v61, %v1912_v32  ;;  %v2281_v5 = vpop.permute.xlu0 %2280 }
 0xc4c   : > { %3382 = vmatmul.mubr.msk.bf16.vlgmr.msra.gmra.mrb[56].mxu1 %vm598_vm3, %v1919_v34  ;;  %v3121_v34 = vld [vmem:[%s4302_s5 + $0x70] sm:$0xff]  }
 0xc4d   : > { %3392 = vmatpush3.bf16.msra.mxu1 %v2064_v40  ;;  %3393 = vmatprep.mubr.msk.bf16.mxu1 %vm3635_vm1, %v3634_v14  ;;  %v3591_v47 = vpop.eup %3590 }
 0xc4e   : > { %3409 = vmatprep.subr.bf16.mxu1 %v3634_v14  ;;  %v1916_v48 = vmul.f32 %v3591_v47, %v4094_v52  ;;  %v2286_v52 = vsel %vm376_vm2, %v2281_v5, 0  ;;  %v2381_v57 = vpop.permute.xlu0 %2380 }
 0xc4f   : > { %v2386_v58 = vsel %vm376_vm2, %v2381_v57, 0 }
 0xc71   : > { %v1901_v35 = vpop.xlane.xlu1 %1900 }
 0xc72   : > { %3592 = vrcp.f32 %v1901_v35  ;;  %v3098_v35 = vunpack.c.l.bf16 %v3120_v27 }
 0xc75   : > { %v2231_v44 = vpop.permute.xlu1 %2230 }
 0xc76   : > { %v2236_v56 = vsel %vm376_vm2, %v2231_v44, 0  ;;  %v3102_v44 = vunpack.c.l.bf16 %v3121_v34 }
 0xc79   : > { %v2331_v46 = vpop.permute.xlu1 %2330 }
 0xc7a   : > { %v2336_v37 = vsel %vm376_vm2, %v2331_v46, 0  ;;  %v3099_v46 = vunpack.c.h.bf16 %v3120_v27 }
 0xc7b   : > { %3422 = vmatpush3.bf16.xpose.msra.mxu0 %v2336_v37  ;;  %v3103_v37 = vunpack.c.h.bf16 %v3121_v34 }
 0xc7c   : > { %v3593_v43 = vpop.eup %3592  ;;  %3433 = vmatprep.subr.bf16.mxu0 %v3634_v14 }
 0xc7d   : > { %v1917_v54 = vmul.f32 %v3593_v43, %v3585_v17  ;;  %v3094_v17 = vunpack.c.l.bf16 %v3119_v6 }
 0xc7f   : > { %v1921_v55 = vpack.c.bf16 %v1917_v54, %v1916_v48 }
 0xc81   : > { %3394 = vmatmul.mubr.msk.bf16.vlgmr.msra.gmra.mrb[60].mxu1 %vm598_vm3, %v1921_v55  ;;  %v3122_v55 = vld [vmem:[%s4302_s5 + $0x78] sm:$0xff]  }
 0xc82   : > { %3410 = vmatpush3.bf16.xpose.msra.mxu1 %v2236_v56  ;;  %3424 = vmatmul.mubr.msk.bf16.vlgmr.msra.gmra.mrb[64].mxu0 %vm376_vm2, %v4115_v12 }
 0xc83   : > { %3411 = vmatprep.mubr.msk.bf16.mxu1 %vm3635_vm1, %v3634_v14  ;;  %3415 = vmatprep.subr.bf16.mxu1 %v3634_v14 }
 0xc84   : > { %3435 = vmatprep.mubr.msk.bf16.mxu0 %vm3635_vm1, %v3634_v14 }
 0xc89   : > { %3412 = vmatmul.mubr.msk.bf16.vlgmr.msra.gmra.mrb[64].mxu1 %vm376_vm2, %v4111_v10 }
 0xc8a   : > { %3416 = vmatpush3.bf16.xpose.msra.mxu1 %v2286_v52  ;;  %3417 = vmatprep.mubr.msk.bf16.mxu1 %vm3635_vm1, %v3634_v14 }
 0xc8b   : > { %3427 = vmatprep.subr.bf16.mxu1 %v3634_v14 }
 0xc91   : > { %3418 = vmatmul.mubr.msk.bf16.vlgmr.msra.gmra.mrb[68].mxu1 %vm376_vm2, %v4109_v9 }
 0xc92   : > { %3428 = vmatpush3.bf16.xpose.msra.mxu1 %v2386_v58  ;;  %3429 = vmatprep.mubr.msk.bf16.mxu1 %vm3635_vm1, %v3634_v14 }
 0xc93   : > { %3439 = vmatprep.subr.bf16.mxu1 %v3634_v14 }
 0xc99   : > { %3430 = vmatmul.mubr.msk.bf16.vlgmr.msra.gmra.mrb[72].mxu1 %vm376_vm2, %v4113_v8 }
 0xc9a   : > { %3441 = vmatprep.mubr.msk.bf16.mxu1 %vm3635_vm1, %v3634_v14 }
 0xd1f   : > { %v4162_v59 = vpop.f32.mrb[56].mxu1 }
 0xd20   : > { %v3383_v50 = vpop.f32.mrb[57].mxu1 }
 0xd21   : > { %v4164_v31 = vpop.f32.mrb[58].mxu1 }
 0xd22   : > { %v2111_v62 = vpack.c.bf16 %v4164_v31, %v4162_v59  ;;  %v3384_v0 = vpop.f32.mrb[59].mxu1 }
 0xd23   : > { %v3106_v0 = vunpack.c.l.bf16 %v3122_v55 }
 0xd54   : > { %v4168_v13 = vpop.f32.mrb[60].mxu1 }
 0xd55   : > { %v3395_v1 = vpop.f32.mrb[61].mxu1  ;;  %v2372_v2 = vpop.f32.mrb[64].mxu0 }
 0xd56   : > { %v4170_v3 = vpop.f32.mrb[62].mxu1  ;;  %v3425_v4 = vpop.f32.mrb[65].mxu0  ;;  %v2450_v56 = vadd.f32 %v3102_v44, %v2372_v2 }
 0xd57   : > { %v2113_v7 = vpack.c.bf16 %v4170_v3, %v4168_v13  ;;  %v3396_v15 = vpop.f32.mrb[63].mxu1  ;;  %v2375_v49 = vpop.f32.mrb[66].mxu0  ;;  %v3107_v4 = vunpack.c.h.bf16 %v3122_v55 }
 0xd58   : > { %v3426_v63 = vpop.f32.mrb[67].mxu0  ;;  %v2451_v58 = vadd.f32 %v3103_v37, %v2375_v49  ;;  %v2466_v1 = vsel %vm598_vm3, %v2450_v56, -inf }
 0xd5c   : > { %v2272_v41 = vpop.f32.mrb[64].mxu1 }
 0xd5d   : > { %v2446_v11 = vadd.f32 %v3094_v17, %v2272_v41  ;;  %v3413_v21 = vpop.f32.mrb[65].mxu1  ;;  %v2469_v17 = vsel %vm598_vm3, %v2451_v58, -inf }
 0xd5e   : > { %v2275_v26 = vpop.f32.mrb[66].mxu1 }
 0xd5f   : > { %v2447_v30 = vadd.f32 %v3095_v18, %v2275_v26  ;;  %v3414_v32 = vpop.f32.mrb[67].mxu1  ;;  %v2454_v61 = vsel %vm598_vm3, %v2446_v11, -inf }
 0xd60   : > { %2455 = vmax.xlane.f32.xlu1 %v2454_v61 }
 0xd61   : > { %v2457_v40 = vsel %vm598_vm3, %v2447_v30, -inf }
 0xd62   : > { %2458 = vmax.xlane.f32.xlu0 %v2457_v40 }
 0xd64   : > { %v2322_v47 = vpop.f32.mrb[68].mxu1 }
 0xd65   : > { %v2448_v43 = vadd.f32 %v3098_v35, %v2322_v47  ;;  %v3419_v48 = vpop.f32.mrb[69].mxu1 }
 0xd66   : > { %v2325_v54 = vpop.f32.mrb[70].mxu1 }
 0xd67   : > { %v2449_v5 = vadd.f32 %v3099_v46, %v2325_v54  ;;  %v3420_v52 = vpop.f32.mrb[71].mxu1  ;;  %v2460_v57 = vsel %vm598_vm3, %v2448_v43, -inf }
 0xd68   : > { %2461 = vmax.xlane.f32.xlu0 %v2460_v57 }
 0xd69   : > { %v2463_v50 = vsel %vm598_vm3, %v2449_v5, -inf }
 0xd6a   : > { %2464 = vmax.xlane.f32.xlu1 %v2463_v50 }
 0xd6c   : > { %2467 = vmax.xlane.f32.xlu0 %v2466_v1  ;;  %v2422_v6 = vpop.f32.mrb[72].mxu1 }
 0xd6d   : > { %v2452_v15 = vadd.f32 %v3106_v0, %v2422_v6  ;;  %v3431_v63 = vpop.f32.mrb[73].mxu1 }
 0xd6e   : > { %2470 = vmax.xlane.f32.xlu1 %v2469_v17  ;;  %v2425_v2 = vpop.f32.mrb[74].mxu1 }
 0xd6f   : > { %v2453_v18 = vadd.f32 %v3107_v4, %v2425_v2  ;;  %v3432_v41 = vpop.f32.mrb[75].mxu1  ;;  %v2472_v21 = vsel %vm598_vm3, %v2452_v15, -inf }
 0xd70   : > { %2473 = vmax.xlane.f32.xlu0 %v2472_v21 }
 0xd71   : > { %v2475_v49 = vsel %vm598_vm3, %v2453_v18, -inf }
 0xd72   : > { %2476 = vmax.xlane.f32.xlu1 %v2475_v49 }
 0xd83   : > { %2593 = vrot.lane.b32.xlu1 %v4109_v9, %s3637_s15 }
 0xd86   : > { %2546 = vrot.lane.b32.xlu0 %v4111_v10, %s3637_s15 }
 0xded   : > { %v2456_v26 = vpop.xlane.xlu1 %2455 }
 0xdee   : > { %v2478_v27 = vsub.f32 %v2446_v11, %v2456_v26 }
 0xdef   : > { %v2459_v32 = vpop.xlane.xlu0 %2458 }
 0xdf0   : > { %v2486_v61 = vmul.f32 1.442695, %v2478_v27  ;;  %v2479_v34 = vsub.f32 %v2447_v30, %v2459_v32 }
 0xdf2   : > { %3594 = vpow2.f32 %v2486_v61  ;;  %v2488_v40 = vmul.f32 1.442695, %v2479_v34 }
 0xdf4   : > { %3596 = vpow2.f32 %v2488_v40 }
 0xdf5   : > { %v2462_v35 = vpop.xlane.xlu0 %2461 }
 0xdf6   : > { %v2480_v44 = vsub.f32 %v2448_v43, %v2462_v35 }
 0xdf7   : > { %v2465_v46 = vpop.xlane.xlu1 %2464 }
 0xdf8   : > { %v2490_v47 = vmul.f32 1.442695, %v2480_v44  ;;  %v2481_v37 = vsub.f32 %v2449_v5, %v2465_v46 }
 0xdf9   : > { %v2468_v48 = vpop.xlane.xlu0 %2467 }
 0xdfa   : > { %3598 = vpow2.f32 %v2490_v47  ;;  %v2492_v54 = vmul.f32 1.442695, %v2481_v37  ;;  %v2482_v9 = vsub.f32 %v2450_v56, %v2468_v48 }
 0xdfb   : > { %v2471_v55 = vpop.xlane.xlu1 %2470 }
 0xdfc   : > { %v4198_v52 = vpop.eup %3594  ;;  %3600 = vpow2.f32 %v2492_v54  ;;  %v2494_v10 = vmul.f32 1.442695, %v2482_v9  ;;  %v2483_v11 = vsub.f32 %v2451_v58, %v2471_v55 }
 0xdfd   : > { %v2474_v57 = vpop.xlane.xlu0 %2473  ;;  %v2502_v30 = vsel %vm598_vm3, %v4198_v52, 0.0 }
 0xdfe   : > { %v3597_v50 = vpop.eup %3596  ;;  %3602 = vpow2.f32 %v2494_v10  ;;  %v2496_v43 = vmul.f32 1.442695, %v2483_v11  ;;  %v2484_v0 = vsub.f32 %v2452_v15, %v2474_v57  ;;  %2503 = vadd.xlane.f32.xlu0 %v2502_v30 }
 0xdff   : > { %v2477_v5 = vpop.xlane.xlu1 %2476  ;;  %v2505_v1 = vsel %vm598_vm3, %v3597_v50, 0.0 }
 0xe00   : > { %3604 = vpow2.f32 %v2496_v43  ;;  %v2498_v56 = vmul.f32 1.442695, %v2484_v0  ;;  %v2485_v4 = vsub.f32 %v2453_v18, %v2477_v5  ;;  %2506 = vadd.xlane.f32.xlu1 %v2505_v1 }
 0xe01   : > { %v2547_v6 = vpop.permute.xlu0 %2546 }
 0xe02   : > { %3606 = vpow2.f32 %v2498_v56  ;;  %v2500_v63 = vmul.f32 1.442695, %v2485_v4  ;;  %3434 = vmatpush3.bf16.msra.mxu0 %v2547_v6  ;;  %v3497_v4 = vld [vmem:[%s4300_s3 + $0x8] sm:$0xff]  }
 0xe03   : > { %v2594_v58 = vpop.permute.xlu1 %2593  ;;  %3445 = vmatprep.subr.bf16.mxu0 %v3634_v14 }
 0xe04   : > { %v3599_v17 = vpop.eup %3598  ;;  %3608 = vpow2.f32 %v2500_v63  ;;  %3440 = vmatpush3.bf16.msra.mxu1 %v2594_v58 }
 0xe05   : > { %v2508_v15 = vsel %vm598_vm3, %v3599_v17, 0.0  ;;  %3451 = vmatprep.subr.bf16.mxu1 %v3634_v14 }
 0xe06   : > { %v3601_v2 = vpop.eup %3600  ;;  %2509 = vadd.xlane.f32.xlu0 %v2508_v15 }
 0xe07   : > { %v2511_v41 = vsel %vm598_vm3, %v3601_v2, 0.0 }
 0xe08   : > { %v3603_v18 = vpop.eup %3602  ;;  %2512 = vadd.xlane.f32.xlu1 %v2511_v41 }
 0xe09   : > { %v2514_v21 = vsel %vm598_vm3, %v3603_v18, 0.0 }
 0xe0a   : > { %v3605_v49 = vpop.eup %3604  ;;  %2515 = vadd.xlane.f32.xlu0 %v2514_v21 }
 0xe0b   : > { %v2517_v26 = vsel %vm598_vm3, %v3605_v49, 0.0 }
 0xe0c   : > { %v4209_v27 = vpop.eup %3606  ;;  %2518 = vadd.xlane.f32.xlu1 %v2517_v26 }
 0xe0d   : > { %v2520_v32 = vsel %vm598_vm3, %v4209_v27, 0.0 }
 0xe0e   : > { %v4213_v61 = vpop.eup %3608  ;;  %2521 = vadd.xlane.f32.xlu0 %v2520_v32 }
 0xe0f   : > { %v2523_v34 = vsel %vm598_vm3, %v4213_v61, 0.0 }
 0xe10   : > { %2524 = vadd.xlane.f32.xlu1 %v2523_v34 }
 0xe21   : > { %2640 = vrot.lane.b32.xlu1 %v4115_v12, %s3637_s15 }
 0xe24   : > { %2687 = vrot.lane.b32.xlu0 %v4113_v8, %s3637_s15 }
 0xe25   : > { %1494 = vrot.lane.b32.xlu1 %v1486_v22, %s3638_s24 }
 0xe28   : > { %1496 = vrot.lane.b32.xlu0 %v1487_v24, %s3638_s24 }
 0xe29   : > { %2118 = vrot.lane.b32.xlu1 %v2110_v45, %s3639_s26 }
 0xe2c   : > { %2120 = vrot.lane.b32.xlu0 %v2111_v62, %s3639_s26 }
 0xe2d   : > { %1498 = vrot.lane.b32.xlu1 %v1488_v29, %s3638_s24 }
 0xe30   : > { %1500 = vrot.lane.b32.xlu0 %v1489_v38, %s3638_s24 }
 0xe8b   : > { %v2504_v16 = vpop.xlane.xlu0 %2503 }
 0xe8c   : > { %3610 = vrcp.f32 %v2504_v16 }
 0xe8d   : > { %v2507_v20 = vpop.xlane.xlu1 %2506 }
 0xe8e   : > { %3612 = vrcp.f32 %v2507_v20 }
 0xe93   : > { %v2510_v22 = vpop.xlane.xlu0 %2509 }
 0xe94   : > { %3614 = vrcp.f32 %v2510_v22 }
 0xe95   : > { %v2513_v19 = vpop.xlane.xlu1 %2512 }
 0xe96   : > { %v3611_v23 = vpop.eup %3610  ;;  %3616 = vrcp.f32 %v2513_v19 }
 0xe97   : > { %v2516_v24 = vpop.xlane.xlu0 %2515  ;;  %v2534_v33 = vmul.f32 %v3611_v23, %v4198_v52  ;;  %v3035_v23 = vld [vmem:[%s4301_s4] ss:$0 sm:$0xff] }
 0xe98   : > { %v3613_v39 = vpop.eup %3612  ;;  %3618 = vrcp.f32 %v2516_v24 }
 0xe99   : > { %v2535_v25 = vmul.f32 %v3613_v39, %v3597_v50  ;;  %v2519_v28 = vpop.xlane.xlu1 %2518 }
 0xe9a   : > { %3620 = vrcp.f32 %v2519_v28 }
 0xe9b   : > { %v2522_v29 = vpop.xlane.xlu0 %2521  ;;  %v2542_v51 = vpack.c.bf16 %v2535_v25, %v2534_v33 }
 0xe9c   : > { %3622 = vrcp.f32 %v2522_v29 }
 0xe9d   : > { %v2525_v36 = vpop.xlane.xlu1 %2524  ;;  %3436 = vmatmul.mubr.msk.bf16.vlgmr.msra.gmra.mrb[68].mxu0 %vm598_vm3, %v2542_v51 }
 0xe9e   : > { %v3615_v38 = vpop.eup %3614  ;;  %3624 = vrcp.f32 %v2525_v36  ;;  %3447 = vmatprep.mubr.msk.bf16.mxu0 %vm3635_vm1, %v3634_v14 }
 0xe9f   : > { %v2688_v45 = vpop.permute.xlu0 %2687  ;;  %v2536_v12 = vmul.f32 %v3615_v38, %v3599_v17 }
 0xea0   : > { %v3617_v8 = vpop.eup %3616 }
 0xea1   : > { %v2537_v59 = vmul.f32 %v3617_v8, %v3601_v2  ;;  %v2641_v31 = vpop.permute.xlu1 %2640 }
 0xea2   : > { %v3619_v62 = vpop.eup %3618  ;;  %3446 = vmatpush3.bf16.msra.mxu0 %v2641_v31 }
 0xea3   : > { %v1497_v40 = vpop.permute.xlu0 %1496  ;;  %v2543_v35 = vpack.c.bf16 %v2537_v59, %v2536_v12  ;;  %v2538_v46 = vmul.f32 %v3619_v62, %v3603_v18 }
 0xea4   : > { %v3621_v44 = vpop.eup %3620  ;;  %1508 = vst.msk [vmem:[#allocation2 + $0x8] sm:$0xff] %vm1506_vm4, %v1497_v40 }
 0xea5   : > { %v2539_v47 = vmul.f32 %v3621_v44, %v3605_v49  ;;  %v1495_v37 = vpop.permute.xlu1 %1494  ;;  %3442 = vmatmul.mubr.msk.bf16.vlgmr.msra.gmra.mrb[76].mxu1 %vm598_vm3, %v2543_v35 }
 0xea6   : > { %v3623_v48 = vpop.eup %3622  ;;  %1507 = vst.msk [vmem:[#allocation2] sm:$0xff] %vm1506_vm4, %v1495_v37  ;;  %3452 = vmatpush3.bf16.msra.mxu1 %v2688_v45  ;;  %3453 = vmatprep.mubr.msk.bf16.mxu1 %vm3635_vm1, %v3634_v14  ;;  %v3496_v14 = vld [vmem:[%s4300_s3] sm:$0xff]  }
 0xea7   : > { %v2121_v54 = vpop.permute.xlu0 %2120  ;;  %v2544_v9 = vpack.c.bf16 %v2539_v47, %v2538_v46  ;;  %v2540_v52 = vmul.f32 %v3623_v48, %v4209_v27  ;;  %3457 = vmatprep.subr.bf16.mxu0 %v3496_v14 }
 0xea8   : > { %v3625_v55 = vpop.eup %3624  ;;  %2132 = vst.msk [vmem:[#allocation2 + $0x8] sm:$0xff] %vm2130_vm5, %v2121_v54 }
 0xea9   : > { %v2541_v10 = vmul.f32 %v3625_v55, %v4213_v61  ;;  %v2119_v11 = vpop.permute.xlu1 %2118  ;;  %3448 = vmatmul.mubr.msk.bf16.vlgmr.msra.gmra.mrb[72].mxu0 %vm598_vm3, %v2544_v9 }
 0xeaa   : > { %2131 = vst.msk [vmem:[#allocation2] sm:$0xff] %vm2130_vm5, %v2119_v11  ;;  %3458 = vmatpush3.bf16.msra.mxu0 %v3496_v14 }
 0xeab   : > { %v1501_v57 = vpop.permute.xlu0 %1500  ;;  %v2545_v30 = vpack.c.bf16 %v2541_v10, %v2540_v52  ;;  %3459 = vmatprep.subr.bf16.mxu0 %v3497_v4 }
 0xeac   : > { %1510 = vst.msk [vmem:[#allocation2 + $0x18] sm:$0xff] %vm1506_vm4, %v1501_v57 }
 0xead   : > { %v1499_v50 = vpop.permute.xlu1 %1498  ;;  %3454 = vmatmul.mubr.msk.bf16.vlgmr.msra.gmra.mrb[80].mxu1 %vm598_vm3, %v2545_v30 }
 0xeae   : > { %1509 = vst.msk [vmem:[#allocation2 + $0x10] sm:$0xff] %vm1506_vm4, %v1499_v50  ;;  %3460 = vmatpush3.bf16.msra.mxu0 %v3497_v4 }
 0xf70   : > { %v2586_v43 = vpop.f32.mrb[68].mxu0 }
 0xf71   : > { %v3437_v0 = vpop.f32.mrb[69].mxu0 }
 0xf72   : > { %v2589_v5 = vpop.f32.mrb[70].mxu0 }
 0xf73   : > { %v2734_v1 = vpack.c.bf16 %v2589_v5, %v2586_v43  ;;  %v3438_v56 = vpop.f32.mrb[71].mxu0 }
 0xf75   : > { %2742 = vrot.lane.b32.xlu1 %v2734_v1, %s3640_s7 }
 0xf78   : > { %v2633_v6 = vpop.f32.mrb[76].mxu1 }
 0xf79   : > { %2122 = vrot.lane.b32.xlu1 %v2112_v60, %s3639_s26  ;;  %v3443_v63 = vpop.f32.mrb[77].mxu1 }
 0xf7a   : > { %v2636_v58 = vpop.f32.mrb[78].mxu1 }
 0xf7b   : > { %v2735_v17 = vpack.c.bf16 %v2636_v58, %v2633_v6  ;;  %v3444_v15 = vpop.f32.mrb[79].mxu1 }
 0xf7c   : > { %v2680_v2 = vpop.f32.mrb[72].mxu0 }
 0xf7d   : > { %2744 = vrot.lane.b32.xlu0 %v2735_v17, %s3640_s7  ;;  %v3449_v41 = vpop.f32.mrb[73].mxu0 }
 0xf7e   : > { %v2683_v18 = vpop.f32.mrb[74].mxu0 }
 0xf7f   : > { %v2736_v21 = vpack.c.bf16 %v2683_v18, %v2680_v2  ;;  %v3450_v49 = vpop.f32.mrb[75].mxu0 }
 0xf80   : > { %v2727_v26 = vpop.f32.mrb[80].mxu1 }
 0xf81   : > { %2124 = vrot.lane.b32.xlu0 %v2113_v7, %s3639_s26  ;;  %2746 = vrot.lane.b32.xlu1 %v2736_v21, %s3640_s7  ;;  %v3455_v27 = vpop.f32.mrb[81].mxu1 }
 0xf82   : > { %v2730_v42 = vpop.f32.mrb[82].mxu1 }
 0xf83   : > { %v2737_v53 = vpack.c.bf16 %v2730_v42, %v2727_v26  ;;  %v3456_v60 = vpop.f32.mrb[83].mxu1 }
 0xf85   : > { %2748 = vrot.lane.b32.xlu0 %v2737_v53, %s3640_s7 }
 0xfe7   : > { %v2743_v32 = vpop.permute.xlu1 %2742 }
 0xfe8   : > { %2755 = vst.msk [vmem:[#allocation2] sm:$0xff] %vm2754_vm6, %v2743_v32 }
 0xfeb   : > { %v2123_v61 = vpop.permute.xlu1 %2122 }
 0xfec   : > { %2133 = vst.msk [vmem:[#allocation2 + $0x10] sm:$0xff] %vm2130_vm5, %v2123_v61 }
 0xfef   : > { %v2745_v34 = vpop.permute.xlu0 %2744  ;;  %v2759_v16 = vld [vmem:[#allocation2] sm:$0xff] }
 0xff0   : > { %2756 = vst.msk [vmem:[#allocation2 + $0x8] sm:$0xff] %vm2754_vm6, %v2745_v34  ;;  %3461 = vmatprep.mubr.msk.bf16.mxu0 %vm291_vm0, %v2759_v16 }
 0xff3   : > { %v2747_v13 = vpop.permute.xlu1 %2746  ;;  %v2125_v3 = vpop.permute.xlu0 %2124 }
 0xff4   : > { %2757 = vst.msk [vmem:[#allocation2 + $0x10] sm:$0xff] %vm2754_vm6, %v2747_v13 }
 0xff5   : > { %2134 = vst.msk [vmem:[#allocation2 + $0x18] sm:$0xff] %vm2130_vm5, %v2125_v3 }
 0xff7   : > { %v2749_v7 = vpop.permute.xlu0 %2748  ;;  %v2760_v20 = vld [vmem:[#allocation2 + $0x8] sm:$0xff] }
 0xff8   : > { %2758 = vst.msk [vmem:[#allocation2 + $0x18] sm:$0xff] %vm2754_vm6, %v2749_v7  ;;  %3462 = vmatmul.mubr.msk.bf16.vlgmr.msra.gmra.mrb[76].mxu0 %vm291_vm0, %v2760_v20 }
 0xffb   : > { %v2761_v22 = vld [vmem:[#allocation2 + $0x10] sm:$0xff] }
 0xffc   : > { %3465 = vmatprep.mubr.msk.bf16.mxu0 %vm291_vm0, %v2761_v22 }
 0xfff   : > { %v2762_v19 = vld [vmem:[#allocation2 + $0x18] sm:$0xff] }
0x1000   : > { %3466 = vmatmul.mubr.msk.bf16.gmra.mrb[80].mxu0 %vm291_vm0, %v2762_v19 }
0x10cb   : > { %v3463_v24 = vpop.f32.mrb[76].mxu0 }
0x10cc   : > { %v2841_v39 = vadd.f32 %v3463_v24, %v3035_v23  ;;  %v2832_v33 = vpop.f32.mrb[77].mxu0 }
0x10cd   : > { %v2833_v25 = vadd.f32 %v3035_v23, %v2832_v33  ;;  %v3464_v28 = vpop.f32.mrb[78].mxu0 }
0x10ce   : > { %2865 = vst.msk [vmem:[%s253_s13 + $0x10] sm:$0xff] %vm291_vm0, %v2841_v39  ;;  %v2844_v29 = vadd.f32 %v3464_v28, %v3035_v23  ;;  %v2835_v51 = vpop.f32.mrb[79].mxu0 }
0x10cf   : > { %2863 = vst.msk [vmem:[%s253_s13] sm:$0xff] %vm291_vm0, %v2833_v25  ;;  %v2836_v36 = vadd.f32 %v3035_v23, %v2835_v51 }
0x10d0   : > { %2866 = vst.msk [vmem:[%s253_s13 + $0x18] sm:$0xff] %vm291_vm0, %v2844_v29 }
0x10d1   : > { %2864 = vst.msk [vmem:[%s253_s13 + $0x8] sm:$0xff] %vm291_vm0, %v2836_v36 }
0x10d3   : > { %v3467_v38 = vpop.f32.mrb[80].mxu0 }
0x10d4   : > { %v2857_v45 = vadd.f32 %v3467_v38, %v3035_v23  ;;  %v2848_v8 = vpop.f32.mrb[81].mxu0 }
0x10d5   : > { %v2849_v12 = vadd.f32 %v3035_v23, %v2848_v8  ;;  %v3468_v59 = vpop.f32.mrb[82].mxu0 }
0x10d6   : > { %2869 = vst.msk [vmem:[%s253_s13 + $0x30] sm:$0xff] %vm291_vm0, %v2857_v45  ;;  %v2860_v31 = vadd.f32 %v3468_v59, %v3035_v23  ;;  %v2851_v62 = vpop.f32.mrb[83].mxu0 }
0x10d7   : > { %2867 = vst.msk [vmem:[%s253_s13 + $0x20] sm:$0xff] %vm291_vm0, %v2849_v12  ;;  %v2852_v40 = vadd.f32 %v3035_v23, %v2851_v62 }
0x10d8   : > { %2870 = vst.msk [vmem:[%s253_s13 + $0x38] sm:$0xff] %vm291_vm0, %v2860_v31 }
0x10d9   : > { %2868 = vst.msk [vmem:[%s253_s13 + $0x28] sm:$0xff] %vm291_vm0, %v2852_v40 }
0x10da PF: > { %s16_s21 = sadd.s32 1, %s3632_s21  }
0x10db   : > { %p13_p4 = scmp.ge.s32.totalorder %s16_s21, 4  }
0x10dd   :  { %15 = sbr.rel (!%p13_p4) target bundleno = 1 (0x1), region = 83 }

</bundles_post_ra>
